<compile_context>
chip_gen: v5e
topology: v5e:2x2
jax: 0.10.0
libtpu: 0.0.40
codegen_flags: <defaults>
</compile_context>

<pallas_src>
import jax
import jax.numpy as jnp
from jax.experimental import pallas as pl
from jax.experimental.pallas import tpu as pltpu

K_RAW = 28 * 28        # 784 (flattened input; Mosaic lane-pads internally)
H = 512                # hidden width
N_OUT = 10
N_OUT_PAD = 128        # lane-dense output width


def mlp_kernel(x_ref, w1_ref, b1_ref, w2_ref, b2_ref, w3_ref, b3_ref,
               w4_ref, b4_ref, o_ref):
    # In-kernel f32 -> bf16 cast of the input tile (hidden under the fc1 matmul).
    x = x_ref[...].astype(jnp.bfloat16)
    # fc1 + relu  (bf16 operands, f32 MXU accumulation, f32 bias/ReLU)
    h = jnp.dot(x, w1_ref[...], preferred_element_type=jnp.float32)
    h = jnp.maximum(h + b1_ref[...], 0.0).astype(jnp.bfloat16)
    # fc2 + relu
    h = jnp.dot(h, w2_ref[...], preferred_element_type=jnp.float32)
    h = jnp.maximum(h + b2_ref[...], 0.0).astype(jnp.bfloat16)
    # fc3 + relu
    h = jnp.dot(h, w3_ref[...], preferred_element_type=jnp.float32)
    h = jnp.maximum(h + b3_ref[...], 0.0).astype(jnp.bfloat16)
    # fc4 (no activation); lane-padded to 128 output columns
    h = jnp.dot(h, w4_ref[...], preferred_element_type=jnp.float32)
    o_ref[...] = (h + b4_ref[...]).astype(o_ref.dtype)


def _cdiv(a, m):
    return -(-a // m)


def _round_up(a, m):
    return _cdiv(a, m) * m


def _pick_tiling(B, tile_b):
    """Balanced batch tiling: tb multiple of 16 (bf16 sublane packing),
    padding waste < one alignment group per tile, and >= 2 grid steps for
    mid-size batches so the v7x megacore can shard the parallel axis."""
    n_tiles = _cdiv(B, tile_b)
    if n_tiles == 1 and B > 256:
        n_tiles = 2
    tb = _round_up(_cdiv(B, n_tiles), 16)
    return tb, n_tiles, tb * n_tiles


def net_forward(x_nchw, params, tile_b=1024):
    """x_nchw: (B, 1, 28, 28) float32.  Returns logits (B, 10) float32."""
    B = x_nchw.shape[0]
    w1, b1, w2, b2, w3, b3, w4, b4 = params

    tb, n_tiles, B_pad = _pick_tiling(B, tile_b)

    # --- flatten NCHW (same as nn.Flatten); keep f32, no wrapper-side cast ---
    x = x_nchw.reshape(B, K_RAW)
    if B_pad != B:
        x = jnp.pad(x, ((0, B_pad - B), (0, 0)))

    # --- weights: bf16 (f32 MXU accumulation in-kernel); biases stay f32 ---
    w1p = w1.astype(jnp.bfloat16)                                     # (784, 512)
    w2p = w2.astype(jnp.bfloat16)                                     # (512, 512)
    w3p = w3.astype(jnp.bfloat16)                                     # (512, 512)
    w4p = jnp.pad(w4, ((0, 0), (0, N_OUT_PAD - N_OUT))).astype(jnp.bfloat16)
    b1p = b1.astype(jnp.float32)
    b2p = b2.astype(jnp.float32)
    b3p = b3.astype(jnp.float32)
    b4p = jnp.pad(b4, ((0, 0), (0, N_OUT_PAD - N_OUT))).astype(jnp.float32)

    # Weights/biases: constant index_map (fetched once, VMEM-resident) and
    # single-buffered (never re-fetched -> no need for a second pipeline buffer).
    def resident(a):
        return pl.BlockSpec(a.shape, lambda i: (0,) * a.ndim,
                            pipeline_mode=pl.Buffered(1))

    flops = 2 * B_pad * (K_RAW * H + H * H + H * H + H * N_OUT)
    bytes_accessed = (
        x.size * 4
        + (w1p.size + w2p.size + w3p.size + w4p.size) * 2
        + (b1p.size + b2p.size + b3p.size + b4p.size) * 4
        + B_pad * N_OUT_PAD * 4)

    out = pl.pallas_call(
        mlp_kernel,
        out_shape=jax.ShapeDtypeStruct((B_pad, N_OUT_PAD), jnp.float32),
        grid=(n_tiles,),
        in_specs=[
            pl.BlockSpec((tb, K_RAW), lambda i: (i, 0)),   # x: tiled over batch
            resident(w1p), resident(b1p),
            resident(w2p), resident(b2p),
            resident(w3p), resident(b3p),
            resident(w4p), resident(b4p),
        ],
        out_specs=pl.BlockSpec((tb, N_OUT_PAD), lambda i: (i, 0)),
        compiler_params=pltpu.CompilerParams(
            dimension_semantics=("parallel",),
            vmem_limit_bytes=48 << 20,
        ),
        cost_estimate=pl.CostEstimate(
            flops=flops, transcendentals=0, bytes_accessed=bytes_accessed),
    )(x, w1p, b1p, w2p, b2p, w3p, b3p, w4p, b4p)

    return out[:B, :N_OUT]


def init_params(key):
    """PyTorch nn.Linear default init (U(-k, k), k=1/sqrt(fan_in)).
    Weights stored transposed relative to PyTorch: (in_features, out_features)."""
    dims = [(K_RAW, H), (H, H), (H, H), (H, N_OUT)]
    params = []
    for (fan_in, fan_out) in dims:
        key, kw, kb = jax.random.split(key, 3)
        bound = 1.0 / jnp.sqrt(float(fan_in))
        w = jax.random.uniform(kw, (fan_in, fan_out), jnp.float32, -bound, bound)
        b = jax.random.uniform(kb, (1, fan_out), jnp.float32, -bound, bound)
        params += [w, b]
    return tuple(params)


def ref_forward(x_nchw, params):
    """Pure-JAX reference mirroring the kernel's bf16 weight/activation casts."""
    w1, b1, w2, b2, w3, b3, w4, b4 = params
    B = x_nchw.shape[0]
    x = x_nchw.reshape(B, K_RAW).astype(jnp.bfloat16)
    h = jnp.dot(x, w1.astype(jnp.bfloat16), preferred_element_type=jnp.float32)
    h = jnp.maximum(h + b1, 0.0).astype(jnp.bfloat16)
    h = jnp.dot(h, w2.astype(jnp.bfloat16), preferred_element_type=jnp.float32)
    h = jnp.maximum(h + b2, 0.0).astype(jnp.bfloat16)
    h = jnp.dot(h, w3.astype(jnp.bfloat16), preferred_element_type=jnp.float32)
    h = jnp.maximum(h + b3, 0.0).astype(jnp.bfloat16)
    h = jnp.dot(h, w4.astype(jnp.bfloat16), preferred_element_type=jnp.float32)
    return h + b4


if __name__ == "__main__":
    key = jax.random.PRNGKey(0)
    kx, kp = jax.random.split(key)

    B = 8
    x = jax.random.normal(kx, (B, 1, 28, 28), jnp.float32)   # NCHW like FashionMNIST
    params = init_params(kp)

    logits = net_forward(x, params)
    jax.block_until_ready(logits)

    ref = ref_forward(x, params)
    assert logits.shape == (B, N_OUT)
    assert jnp.allclose(logits, ref, atol=1e-2, rtol=1e-2), (
        float(jnp.max(jnp.abs(logits - ref))))

    print("KERNEL_OK")
</pallas_src>

<mosaic_0001>
module attributes {stable_mosaic.version = 11 : i64} {
  func.func @mlp_kernel(%arg0: i32, %arg1: memref<16x784xf32, #tpu.memory_space<vmem>>, %arg2: memref<784x512xbf16, #tpu.memory_space<vmem>>, %arg3: memref<1x512xf32, #tpu.memory_space<vmem>>, %arg4: memref<512x512xbf16, #tpu.memory_space<vmem>>, %arg5: memref<1x512xf32, #tpu.memory_space<vmem>>, %arg6: memref<512x512xbf16, #tpu.memory_space<vmem>>, %arg7: memref<1x512xf32, #tpu.memory_space<vmem>>, %arg8: memref<512x128xbf16, #tpu.memory_space<vmem>>, %arg9: memref<1x128xf32, #tpu.memory_space<vmem>>, %arg10: memref<16x128xf32, #tpu.memory_space<vmem>>) attributes {dimension_semantics = [#tpu.dimension_semantics<parallel>], iteration_bounds = array<i64: 1>, scalar_prefetch = 0 : i64, scratch_operands = 0 : i64, tpu.core_type = #tpu.core_type<tc>, window_params = [{transform_indices = @transform_0, window_bounds = array<i64: 16, 784>}, {pipeline_mode = #tpu.pipeline_mode<synchronous>, transform_indices = @transform_1, window_bounds = array<i64: 784, 512>}, {pipeline_mode = #tpu.pipeline_mode<synchronous>, transform_indices = @transform_2, window_bounds = array<i64: 1, 512>}, {pipeline_mode = #tpu.pipeline_mode<synchronous>, transform_indices = @transform_3, window_bounds = array<i64: 512, 512>}, {pipeline_mode = #tpu.pipeline_mode<synchronous>, transform_indices = @transform_4, window_bounds = array<i64: 1, 512>}, {pipeline_mode = #tpu.pipeline_mode<synchronous>, transform_indices = @transform_5, window_bounds = array<i64: 512, 512>}, {pipeline_mode = #tpu.pipeline_mode<synchronous>, transform_indices = @transform_6, window_bounds = array<i64: 1, 512>}, {pipeline_mode = #tpu.pipeline_mode<synchronous>, transform_indices = @transform_7, window_bounds = array<i64: 512, 128>}, {pipeline_mode = #tpu.pipeline_mode<synchronous>, transform_indices = @transform_8, window_bounds = array<i64: 1, 128>}, {transform_indices = @transform_9, window_bounds = array<i64: 16, 128>}]} {
    %c0 = arith.constant 0 : index
    %c0_0 = arith.constant 0 : index
    %0 = vector.load %arg1[%c0, %c0_0] : memref<16x784xf32, #tpu.memory_space<vmem>>, vector<16x784xf32>
    %1 = arith.truncf %0 : vector<16x784xf32> to vector<16x784xbf16>
    %c0_1 = arith.constant 0 : index
    %c0_2 = arith.constant 0 : index
    %2 = vector.load %arg2[%c0_1, %c0_2] : memref<784x512xbf16, #tpu.memory_space<vmem>>, vector<784x512xbf16>
    %cst = arith.constant dense<0.000000e+00> : vector<16x512xf32>
    %3 = tpu.matmul %1, %2, %cst {dimension_numbers = #tpu.dot_dimension_numbers<[1], [0], [0], [1], [0, 0, 1, 1], [], []>} : vector<16x784xbf16>, vector<784x512xbf16>, vector<16x512xf32> -> vector<16x512xf32>
    %c0_3 = arith.constant 0 : index
    %c0_4 = arith.constant 0 : index
    %4 = vector.load %arg3[%c0_3, %c0_4] : memref<1x512xf32, #tpu.memory_space<vmem>>, vector<1x512xf32>
    %5 = vector.broadcast %4 : vector<1x512xf32> to vector<16x512xf32>
    %6 = arith.addf %3, %5 : vector<16x512xf32>
    %cst_5 = arith.constant 0.000000e+00 : f32
    %7 = vector.broadcast %cst_5 : f32 to vector<16x512xf32>
    %8 = arith.maximumf %6, %7 : vector<16x512xf32>
    %9 = arith.truncf %8 : vector<16x512xf32> to vector<16x512xbf16>
    %c0_6 = arith.constant 0 : index
    %c0_7 = arith.constant 0 : index
    %10 = vector.load %arg4[%c0_6, %c0_7] : memref<512x512xbf16, #tpu.memory_space<vmem>>, vector<512x512xbf16>
    %cst_8 = arith.constant dense<0.000000e+00> : vector<16x512xf32>
    %11 = tpu.matmul %9, %10, %cst_8 {dimension_numbers = #tpu.dot_dimension_numbers<[1], [0], [0], [1], [0, 0, 1, 1], [], []>} : vector<16x512xbf16>, vector<512x512xbf16>, vector<16x512xf32> -> vector<16x512xf32>
    %c0_9 = arith.constant 0 : index
    %c0_10 = arith.constant 0 : index
    %12 = vector.load %arg5[%c0_9, %c0_10] : memref<1x512xf32, #tpu.memory_space<vmem>>, vector<1x512xf32>
    %13 = vector.broadcast %12 : vector<1x512xf32> to vector<16x512xf32>
    %14 = arith.addf %11, %13 : vector<16x512xf32>
    %cst_11 = arith.constant 0.000000e+00 : f32
    %15 = vector.broadcast %cst_11 : f32 to vector<16x512xf32>
    %16 = arith.maximumf %14, %15 : vector<16x512xf32>
    %17 = arith.truncf %16 : vector<16x512xf32> to vector<16x512xbf16>
    %c0_12 = arith.constant 0 : index
    %c0_13 = arith.constant 0 : index
    %18 = vector.load %arg6[%c0_12, %c0_13] : memref<512x512xbf16, #tpu.memory_space<vmem>>, vector<512x512xbf16>
    %cst_14 = arith.constant dense<0.000000e+00> : vector<16x512xf32>
    %19 = tpu.matmul %17, %18, %cst_14 {dimension_numbers = #tpu.dot_dimension_numbers<[1], [0], [0], [1], [0, 0, 1, 1], [], []>} : vector<16x512xbf16>, vector<512x512xbf16>, vector<16x512xf32> -> vector<16x512xf32>
    %c0_15 = arith.constant 0 : index
    %c0_16 = arith.constant 0 : index
    %20 = vector.load %arg7[%c0_15, %c0_16] : memref<1x512xf32, #tpu.memory_space<vmem>>, vector<1x512xf32>
    %21 = vector.broadcast %20 : vector<1x512xf32> to vector<16x512xf32>
    %22 = arith.addf %19, %21 : vector<16x512xf32>
    %cst_17 = arith.constant 0.000000e+00 : f32
    %23 = vector.broadcast %cst_17 : f32 to vector<16x512xf32>
    %24 = arith.maximumf %22, %23 : vector<16x512xf32>
    %25 = arith.truncf %24 : vector<16x512xf32> to vector<16x512xbf16>
    %c0_18 = arith.constant 0 : index
    %c0_19 = arith.constant 0 : index
    %26 = vector.load %arg8[%c0_18, %c0_19] : memref<512x128xbf16, #tpu.memory_space<vmem>>, vector<512x128xbf16>
    %cst_20 = arith.constant dense<0.000000e+00> : vector<16x128xf32>
    %27 = tpu.matmul %25, %26, %cst_20 {dimension_numbers = #tpu.dot_dimension_numbers<[1], [0], [0], [1], [0, 0, 1, 1], [], []>} : vector<16x512xbf16>, vector<512x128xbf16>, vector<16x128xf32> -> vector<16x128xf32>
    %c0_21 = arith.constant 0 : index
    %c0_22 = arith.constant 0 : index
    %28 = vector.load %arg9[%c0_21, %c0_22] : memref<1x128xf32, #tpu.memory_space<vmem>>, vector<1x128xf32>
    %29 = vector.broadcast %28 : vector<1x128xf32> to vector<16x128xf32>
    %30 = arith.addf %27, %29 : vector<16x128xf32>
    %c0_23 = arith.constant 0 : index
    %c0_24 = arith.constant 0 : index
    %31 = vector.load %arg10[%c0_23, %c0_24] : memref<16x128xf32, #tpu.memory_space<vmem>>, vector<16x128xf32>
    tpu.vector_store %arg10[%c0_23, %c0_24], %30 {strides = array<i32>} : memref<16x128xf32, #tpu.memory_space<vmem>>, vector<16x128xf32>,
    return
  }
  func.func @transform_0(%arg0: i32) -> (i32, i32) {
    %c0_i32 = arith.constant 0 : i32
    %c0_i32_0 = arith.constant 0 : i32
    return %arg0, %c0_i32 : i32, i32
  }
  func.func @transform_1(%arg0: i32) -> (i32, i32) {
    %c0_i32 = arith.constant 0 : i32
    %c0_i32_0 = arith.constant 0 : i32
    %c0_i32_1 = arith.constant 0 : i32
    return %c0_i32, %c0_i32_0 : i32, i32
  }
  func.func @transform_2(%arg0: i32) -> (i32, i32) {
    %c0_i32 = arith.constant 0 : i32
    %c0_i32_0 = arith.constant 0 : i32
    %c0_i32_1 = arith.constant 0 : i32
    return %c0_i32, %c0_i32_0 : i32, i32
  }
  func.func @transform_3(%arg0: i32) -> (i32, i32) {
    %c0_i32 = arith.constant 0 : i32
    %c0_i32_0 = arith.constant 0 : i32
    %c0_i32_1 = arith.constant 0 : i32
    return %c0_i32, %c0_i32_0 : i32, i32
  }
  func.func @transform_4(%arg0: i32) -> (i32, i32) {
    %c0_i32 = arith.constant 0 : i32
    %c0_i32_0 = arith.constant 0 : i32
    %c0_i32_1 = arith.constant 0 : i32
    return %c0_i32, %c0_i32_0 : i32, i32
  }
  func.func @transform_5(%arg0: i32) -> (i32, i32) {
    %c0_i32 = arith.constant 0 : i32
    %c0_i32_0 = arith.constant 0 : i32
    %c0_i32_1 = arith.constant 0 : i32
    return %c0_i32, %c0_i32_0 : i32, i32
  }
  func.func @transform_6(%arg0: i32) -> (i32, i32) {
    %c0_i32 = arith.constant 0 : i32
    %c0_i32_0 = arith.constant 0 : i32
    %c0_i32_1 = arith.constant 0 : i32
    return %c0_i32, %c0_i32_0 : i32, i32
  }
  func.func @transform_7(%arg0: i32) -> (i32, i32) {
    %c0_i32 = arith.constant 0 : i32
    %c0_i32_0 = arith.constant 0 : i32
    %c0_i32_1 = arith.constant 0 : i32
    return %c0_i32, %c0_i32_0 : i32, i32
  }
  func.func @transform_8(%arg0: i32) -> (i32, i32) {
    %c0_i32 = arith.constant 0 : i32
    %c0_i32_0 = arith.constant 0 : i32
    %c0_i32_1 = arith.constant 0 : i32
    return %c0_i32, %c0_i32_0 : i32, i32
  }
  func.func @transform_9(%arg0: i32) -> (i32, i32) {
    %c0_i32 = arith.constant 0 : i32
    %c0_i32_0 = arith.constant 0 : i32
    return %arg0, %c0_i32 : i32, i32
  }
}

</mosaic_0001>

<bundles_post_ra>
// kernel: tpu_custom_call.1
= control target key start
LH: loop header
LB: loop body
LE: loop exit
PB: predicated region body
PF: predicated region fallthrough
CT: control target
= control target key end

     0   :  { %14 = vsyncpa [#allocation3], 0  ;;  %s7000_s0 = inlined_call_operand.hbm [shape: f32[16,784], index: 0, kind: input, shape index: {}]   ;;  %s7001_s1 = inlined_call_operand.hbm [shape: bf16[784,512], index: 1, kind: input, shape index: {}]   ;;  %s7002_s2 = inlined_call_operand.hbm [shape: f32[1,512], index: 2, kind: input, shape index: {}]   ;;  %s7003_s3 = inlined_call_operand.hbm [shape: bf16[512,512], index: 3, kind: input, shape index: {}]   ;;  %s7004_s4 = inlined_call_operand.hbm [shape: f32[1,512], index: 4, kind: input, shape index: {}]   ;;  %s7005_s5 = inlined_call_operand.hbm [shape: bf16[512,512], index: 5, kind: input, shape index: {}]   ;;  %s7006_s6 = inlined_call_operand.vmem [shape: f32[1,512], index: 6, kind: input, shape index: {}]   ;;  %s7007_s7 = inlined_call_operand.hbm [shape: bf16[512,128], index: 7, kind: input, shape index: {}]   ;;  %s7008_s8 = inlined_call_operand.vmem [shape: f32[1,128], index: 8, kind: input, shape index: {}]   ;;  %s7009_s9 = inlined_call_operand.hbm [shape: f32[16,128], index: 9, kind: output, shape index: {}]  }
   0x1   :  { %15 = vsyncpa [#allocation6], 0 }
   0x2   :  { %16 = vsyncpa [#allocation9], 0 }
   0x3   :  { %17 = vsyncpa [#allocation12], 0  ;;  %s36_s11 = sshll.u32 %s7001_s1, 4  ;;  %s37_s11 = int_to_ptr.hbm [resolvable:$true] %s36_s11 }
   0x4   :  { %18 = vsyncpa [#allocation4], 0  ;;  %s6765_s12 = smov [#allocation5]   ;;  %s60_s16 = sshll.u32 %s7003_s3, 4  ;;  %s61_s16 = int_to_ptr.hbm [resolvable:$true] %s60_s16 }
   0x5   :  { %s38_s13 = sshll.u32 %s6765_s12, 4  ;;  %s6766_s17 = smov 256   ;;  %s39_s13 = int_to_ptr.vmem [resolvable:$true] %s38_s13 }
   0x6   :  { %s6767_s18 = smov 16   ;;  %s6768_s19 = smov [#allocation8]  }
   0x7   :  { %44 = dma.hbm_to_vmem [thread:$0]  %s37_s11, 25088, %s39_s13, [#allocation6], %s6766_s17, %s6766_s17, %s6767_s18  }
   0x8   :  { %s62_s20 = sshll.u32 %s6768_s19, 4  ;;  %s84_s23 = sshll.u32 %s7005_s5, 4  ;;  %s63_s20 = int_to_ptr.vmem [resolvable:$true] %s62_s20  ;;  %s85_s23 = int_to_ptr.hbm [resolvable:$true] %s84_s23 }
   0x9   :  { %68 = dma.hbm_to_vmem [thread:$0]  %s61_s16, 16384, %s63_s20, [#allocation9], %s6766_s17, %s6766_s17, %s6767_s18  }
   0xa   :  { %s23_s25 = sshll.u32 %s7000_s0, 4  ;;  %s6769_s26 = smov [#allocation11]   ;;  %s24_s25 = int_to_ptr.hbm [resolvable:$true] %s23_s25 }
   0xb   :  { %s86_s27 = sshll.u32 %s6769_s26, 4  ;;  %s6770_s3 = smov [#allocation2]   ;;  %s87_s27 = int_to_ptr.vmem [resolvable:$true] %s86_s27 }
   0xc   :  { %92 = dma.hbm_to_vmem [thread:$0]  %s85_s23, 16384, %s87_s27, [#allocation12], %s6766_s17, %s6766_s17, %s6767_s18  }
   0xd   :  { %s25_s28 = sshll.u32 %s6770_s3, 4  ;;  %s6771_s29 = smov 896   ;;  %s26_s28 = int_to_ptr.vmem [resolvable:$true] %s25_s28 }
   0xe   :  { %s6772_s30 = smov 56   ;;  %s50_s11 = sshll.u32 %s7002_s2, 4  ;;  %s51_s11 = int_to_ptr.hbm [resolvable:$true] %s50_s11 }
   0xf   :  { %31 = dma.hbm_to_vmem [thread:$0]  %s24_s25, 1792, %s26_s28, [#allocation3], %s6771_s29, %s6771_s29, %s6772_s30  }
  0x10   :  { %s6773_s12 = smov [#allocation7]   ;;  %s74_s15 = sshll.u32 %s7004_s4, 4  ;;  %s75_s15 = int_to_ptr.hbm [resolvable:$true] %s74_s15 }
  0x11   :  { %s52_s13 = sshll.u32 %s6773_s12, 4  ;;  %s6774_s16 = smov [#allocation10]   ;;  %s53_s13 = int_to_ptr.vmem [resolvable:$true] %s52_s13 }
  0x12   :  { %55 = dma.hbm_to_vmem [thread:$0]  %s51_s11, 64, %s53_s13, [#allocation6]  }
  0x13   :  { %s76_s17 = sshll.u32 %s6774_s16, 4  ;;  %s99_s20 = sshll.u32 %s7007_s7, 4  ;;  %s77_s17 = int_to_ptr.vmem [resolvable:$true] %s76_s17  ;;  %s100_s20 = int_to_ptr.hbm [resolvable:$true] %s99_s20 }
  0x14   :  { %79 = dma.hbm_to_vmem [thread:$0]  %s75_s15, 64, %s77_s17, [#allocation9]  }
  0x15   :  { %s6775_s2 = smov [#allocation13]   ;;  %s6776_s22 = smov 64  }
  0x16   :  { %s101_s21 = sshll.u32 %s6775_s2, 4  ;;  %s6777_s23 = smov 4   ;;  %s102_s21 = int_to_ptr.vmem [resolvable:$true] %s101_s21 }
  0x17   :  { %107 = dma.hbm_to_vmem [thread:$0]  %s100_s20, 4096, %s102_s21, [#allocation12], %s6776_s22, %s6776_s22, %s6777_s23  }
  0x18   :  { %6755 = dma.done.wait [#allocation3], 1792  }
  0x19   :  { %6756 = vsyncadd [#allocation3], 4294965504 }
  0x1a   :  { %6757 = dma.done.wait [#allocation6], 25152  }
  0x1b   :  { %6758 = vsyncadd [#allocation6], 4294942144 }
  0x1c   :  { %6759 = dma.done.wait [#allocation9], 16448  }
  0x1d   :  { %6760 = vsyncadd [#allocation9], 4294950848 }
  0x1e   :  { %6761 = dma.done.wait [#allocation12], 20480  }
  0x1f   :  { %6762 = vsyncadd [#allocation12], 4294946816  ;;  %v4236_v0 = vld [vmem:[#allocation5 + $0xe0] sm:$0xf]  ;;  %v6092_v1 = vld [vmem:[#allocation5 + $0xec] sm:$0xf0] }
  0x20   :  { %v4364_v2 = vld [vmem:[#allocation5 + $0x1e0] sm:$0xf]  ;;  %v4237_v3 = vor.u32 %v6092_v1, %v4236_v0  ;;  %v6124_v4 = vld [vmem:[#allocation5 + $0x1ec] sm:$0xf0]  ;;  %vm1346_vm0 = vcmask 130048   ;;  %s6778_s24 = smov [#allocation14]  }
  0x21   :  { %v4492_v5 = vld [vmem:[#allocation5 + $0x2e0] sm:$0xf]  ;;  %v6156_v6 = vld [vmem:[#allocation5 + $0x2ec] sm:$0xf0]  ;;  %v4365_v7 = vor.u32 %v6124_v4, %v4364_v2  ;;  %s4104_s25 = sshll.u32 %s6778_s24, 4  ;;  %s4106_s3 = sshll.u32 %s7009_s9, 4  ;;  %s4105_s25 = int_to_ptr.vmem [resolvable:$true] %s4104_s25  ;;  %s4107_s3 = int_to_ptr.hbm [resolvable:$true] %s4106_s3 }
  0x22   :  { %v4493_v8 = vor.u32 %v6156_v6, %v4492_v5  ;;  %v4620_v9 = vld [vmem:[#allocation5 + $0x3e0] sm:$0xf]  ;;  %v6188_v10 = vld [vmem:[#allocation5 + $0x3ec] sm:$0xf0]  ;;  %1350 = vmatpush.bf16.msra.mxu0 %v4237_v3  ;;  %s6780_s28 = smov 8  }
  0x23   :  { %v4220_v11 = vld [vmem:[#allocation5 + $0xc0] sm:$0xf]  ;;  %v4621_v12 = vor.u32 %v6188_v10, %v4620_v9  ;;  %v6088_v13 = vld [vmem:[#allocation5 + $0xcc] sm:$0xf0]  ;;  %1364 = vmatpush.bf16.msra.mxu1 %v4365_v7 }
  0x24   :  { %v4348_v14 = vld [vmem:[#allocation5 + $0x1c0] sm:$0xf]  ;;  %v6120_v15 = vld [vmem:[#allocation5 + $0x1cc] sm:$0xf0]  ;;  %1378 = vmatpush.bf16.msra.mxu2 %v4493_v8  ;;  %v4221_v16 = vor.u32 %v6088_v13, %v4220_v11 }
  0x25   :  { %v4349_v17 = vor.u32 %v6120_v15, %v4348_v14  ;;  %v4476_v18 = vld [vmem:[#allocation5 + $0x2c0] sm:$0xf]  ;;  %v6152_v19 = vld [vmem:[#allocation5 + $0x2cc] sm:$0xf0]  ;;  %1392 = vmatpush.bf16.msra.mxu3 %v4621_v12 }
  0x26   :  { %v4604_v20 = vld [vmem:[#allocation5 + $0x3c0] sm:$0xf]  ;;  %v4477_v21 = vor.u32 %v6152_v19, %v4476_v18  ;;  %v6184_v22 = vld [vmem:[#allocation5 + $0x3cc] sm:$0xf0]  ;;  %1351 = vmatpush.bf16.msra.mxu0 %v4221_v16 }
  0x27   :  { %v4204_v23 = vld [vmem:[#allocation5 + $0xa0] sm:$0xf]  ;;  %v6084_v24 = vld [vmem:[#allocation5 + $0xac] sm:$0xf0]  ;;  %v4605_v25 = vor.u32 %v6184_v22, %v4604_v20  ;;  %1365 = vmatpush.bf16.msra.mxu1 %v4349_v17 }
  0x28   :  { %v4332_v26 = vld [vmem:[#allocation5 + $0x1a0] sm:$0xf]  ;;  %v6116_v27 = vld [vmem:[#allocation5 + $0x1ac] sm:$0xf0]  ;;  %v4205_v29 = vor.u32 %v6084_v24, %v4204_v23  ;;  %1379 = vmatpush.bf16.msra.mxu2 %v4477_v21 }
  0x29   :  { %v4460_v28 = vld [vmem:[#allocation5 + $0x2a0] sm:$0xf]  ;;  %v6148_v30 = vld [vmem:[#allocation5 + $0x2ac] sm:$0xf0]  ;;  %v4333_v33 = vor.u32 %v6116_v27, %v4332_v26  ;;  %1393 = vmatpush.bf16.msra.mxu3 %v4605_v25 }
  0x2a   :  { %v4588_v31 = vld [vmem:[#allocation5 + $0x3a0] sm:$0xf]  ;;  %v6180_v32 = vld [vmem:[#allocation5 + $0x3ac] sm:$0xf0]  ;;  %v4461_v34 = vor.u32 %v6148_v30, %v4460_v28  ;;  %1352 = vmatpush.bf16.msra.mxu0 %v4205_v29 }
  0x2b   :  { %v4188_v35 = vld [vmem:[#allocation5 + $0x80] sm:$0xf]  ;;  %v6080_v36 = vld [vmem:[#allocation5 + $0x8c] sm:$0xf0]  ;;  %v4589_v38 = vor.u32 %v6180_v32, %v4588_v31  ;;  %1366 = vmatpush.bf16.msra.mxu1 %v4333_v33  ;;  %v6090_v32 = vld [vmem:[#allocation5 + $0xe4] sm:$0xf] }
  0x2c   :  { %v4316_v37 = vld [vmem:[#allocation5 + $0x180] sm:$0xf]  ;;  %v6112_v39 = vld [vmem:[#allocation5 + $0x18c] sm:$0xf0]  ;;  %v4189_v44 = vor.u32 %v6080_v36, %v4188_v35  ;;  %1380 = vmatpush.bf16.msra.mxu2 %v4461_v34  ;;  %v4238_v33 = vld [vmem:[#allocation5 + $0xf0] sm:$0xf0] }
  0x2d   :  { %v4444_v40 = vld [vmem:[#allocation5 + $0x280] sm:$0xf]  ;;  %v6144_v41 = vld [vmem:[#allocation5 + $0x28c] sm:$0xf0]  ;;  %v4317_v45 = vor.u32 %v6112_v39, %v4316_v37  ;;  %1394 = vmatpush.bf16.msra.mxu3 %v4589_v38  ;;  %v148_v36 = vld [vmem:[#allocation2 + $0x48] sm:$0xff] }
  0x2e   :  { %v4572_v42 = vld [vmem:[#allocation5 + $0x380] sm:$0xf]  ;;  %v6176_v43 = vld [vmem:[#allocation5 + $0x38c] sm:$0xf0]  ;;  %v4445_v46 = vor.u32 %v6144_v41, %v4444_v40  ;;  %1353 = vmatpush.bf16.msra.mxu0 %v4189_v44  ;;  %v6122_v41 = vld [vmem:[#allocation5 + $0x1e4] sm:$0xf] }
  0x2f   :  { %v4172_v47 = vld [vmem:[#allocation5 + $0x60] sm:$0xf]  ;;  %v6076_v48 = vld [vmem:[#allocation5 + $0x6c] sm:$0xf0]  ;;  %v4573_v50 = vor.u32 %v6176_v43, %v4572_v42  ;;  %1367 = vmatpush.bf16.msra.mxu1 %v4317_v45  ;;  %v146_v43 = vld [vmem:[#allocation2 + $0x38] sm:$0xff] }
  0x30   :  { %v4300_v49 = vld [vmem:[#allocation5 + $0x160] sm:$0xf]  ;;  %v6108_v51 = vld [vmem:[#allocation5 + $0x16c] sm:$0xf0]  ;;  %v4173_v56 = vor.u32 %v6076_v48, %v4172_v47  ;;  %1381 = vmatpush.bf16.msra.mxu2 %v4445_v46  ;;  %v4366_v46 = vld [vmem:[#allocation5 + $0x1f0] sm:$0xf0] }
  0x31   :  { %v4428_v52 = vld [vmem:[#allocation5 + $0x260] sm:$0xf]  ;;  %v6140_v53 = vld [vmem:[#allocation5 + $0x26c] sm:$0xf0]  ;;  %v4301_v57 = vor.u32 %v6108_v51, %v4300_v49  ;;  %1395 = vmatpush.bf16.msra.mxu3 %v4573_v50  ;;  %v142_v47 = vld [vmem:[#allocation2 + $0x18] sm:$0xff]  ;;  %v4241_v50 = vor.u32 %v6090_v32, %v4238_v33 }
  0x32   :  { %v4556_v54 = vld [vmem:[#allocation5 + $0x360] sm:$0xf]  ;;  %v6172_v55 = vld [vmem:[#allocation5 + $0x36c] sm:$0xf0]  ;;  %v4429_v58 = vor.u32 %v6140_v53, %v4428_v52  ;;  %1354 = vmatpush.bf16.msra.mxu0 %v4173_v56 }
  0x33   :  { %v4156_v59 = vld [vmem:[#allocation5 + $0x40] sm:$0xf]  ;;  %v6072_v60 = vld [vmem:[#allocation5 + $0x4c] sm:$0xf0]  ;;  %v4557_v62 = vor.u32 %v6172_v55, %v4556_v54  ;;  %1368 = vmatpush.bf16.msra.mxu1 %v4301_v57  ;;  %v6086_v57 = vld [vmem:[#allocation5 + $0xc4] sm:$0xf] }
  0x34   :  { %v4284_v61 = vld [vmem:[#allocation5 + $0x140] sm:$0xf]  ;;  %v6104_v63 = vld [vmem:[#allocation5 + $0x14c] sm:$0xf0]  ;;  %v4157_v4 = vor.u32 %v6072_v60, %v4156_v59  ;;  %1382 = vmatpush.bf16.msra.mxu2 %v4429_v58  ;;  %v4222_v58 = vld [vmem:[#allocation5 + $0xd0] sm:$0xf0] }
  0x35   :  { %v4412_v0 = vld [vmem:[#allocation5 + $0x240] sm:$0xf]  ;;  %v6136_v1 = vld [vmem:[#allocation5 + $0x24c] sm:$0xf0]  ;;  %v4285_v6 = vor.u32 %v6104_v63, %v4284_v61  ;;  %1396 = vmatpush.bf16.msra.mxu3 %v4557_v62  ;;  %v140_v61 = vld [vmem:[#allocation2 + $0x8] sm:$0xff]  ;;  %v4369_v63 = vor.u32 %v6122_v41, %v4366_v46 }
  0x36   :  { %v4540_v2 = vld [vmem:[#allocation5 + $0x340] sm:$0xf]  ;;  %v6168_v3 = vld [vmem:[#allocation5 + $0x34c] sm:$0xf0]  ;;  %v4413_v7 = vor.u32 %v6136_v1, %v4412_v0  ;;  %1355 = vmatpush.bf16.msra.mxu0 %v4157_v4  ;;  %v6118_v1 = vld [vmem:[#allocation5 + $0x1c4] sm:$0xf]  ;;  %v4225_v4 = vor.u32 %v6086_v57, %v4222_v58 }
  0x37   :  { %v4140_v5 = vld [vmem:[#allocation5 + $0x20] sm:$0xf]  ;;  %v6068_v8 = vld [vmem:[#allocation5 + $0x2c] sm:$0xf0]  ;;  %v4541_v11 = vor.u32 %v6168_v3, %v4540_v2  ;;  %1369 = vmatpush.bf16.msra.mxu1 %v4285_v6  ;;  %v4350_v2 = vld [vmem:[#allocation5 + $0x1d0] sm:$0xf0] }
  0x38   :  { %v4268_v9 = vld [vmem:[#allocation5 + $0x120] sm:$0xf]  ;;  %v6100_v10 = vld [vmem:[#allocation5 + $0x12c] sm:$0xf0]  ;;  %v4141_v18 = vor.u32 %v6068_v8, %v4140_v5  ;;  %1383 = vmatpush.bf16.msra.mxu2 %v4413_v7  ;;  %v4302_v41 = vld [vmem:[#allocation5 + $0x170] sm:$0xf0] }
  0x39   :  { %v4396_v12 = vld [vmem:[#allocation5 + $0x220] sm:$0xf]  ;;  %v6132_v13 = vld [vmem:[#allocation5 + $0x22c] sm:$0xf0]  ;;  %v4269_v23 = vor.u32 %v6100_v10, %v4268_v9  ;;  %1397 = vmatpush.bf16.msra.mxu3 %v4541_v11  ;;  %v6082_v10 = vld [vmem:[#allocation5 + $0xa4] sm:$0xf] }
  0x3a   :  { %v4524_v14 = vld [vmem:[#allocation5 + $0x320] sm:$0xf]  ;;  %v6164_v15 = vld [vmem:[#allocation5 + $0x32c] sm:$0xf0]  ;;  %v4397_v24 = vor.u32 %v6132_v13, %v4396_v12  ;;  %1356 = vmatpush.bf16.msra.mxu0 %v4141_v18  ;;  %v4206_v11 = vld [vmem:[#allocation5 + $0xb0] sm:$0xf0]  ;;  %v4353_v12 = vor.u32 %v6118_v1, %v4350_v2 }
  0x3b   :  { %v4124_v16 = vld [vmem:[#allocation5] sm:$0xf]  ;;  %v6064_v17 = vld [vmem:[#allocation5 + $0xc] sm:$0xf0]  ;;  %v4525_v28 = vor.u32 %v6164_v15, %v4524_v14  ;;  %1370 = vmatpush.bf16.msra.mxu1 %v4269_v23  ;;  %v6114_v14 = vld [vmem:[#allocation5 + $0x1a4] sm:$0xf] }
  0x3c   :  { %v4252_v19 = vld [vmem:[#allocation5 + $0x100] sm:$0xf]  ;;  %v6096_v20 = vld [vmem:[#allocation5 + $0x10c] sm:$0xf0]  ;;  %v4125_v35 = vor.u32 %v6064_v17, %v4124_v16  ;;  %1384 = vmatpush.bf16.msra.mxu2 %v4397_v24  ;;  %v4334_v15 = vld [vmem:[#allocation5 + $0x1b0] sm:$0xf0]  ;;  %v4209_v17 = vor.u32 %v6082_v10, %v4206_v11 }
  0x3d   :  { %v4380_v21 = vld [vmem:[#allocation5 + $0x200] sm:$0xf]  ;;  %v6128_v22 = vld [vmem:[#allocation5 + $0x20c] sm:$0xf0]  ;;  %v4253_v39 = vor.u32 %v6096_v20, %v4252_v19  ;;  %1398 = vmatpush.bf16.msra.mxu3 %v4525_v28  ;;  %v4190_v23 = vld [vmem:[#allocation5 + $0x90] sm:$0xf0]  ;;  %v4337_v24 = vor.u32 %v6114_v14, %v4334_v15 }
  0x3e   :  { %v4508_v25 = vld [vmem:[#allocation5 + $0x300] sm:$0xf]  ;;  %v6160_v26 = vld [vmem:[#allocation5 + $0x30c] sm:$0xf0]  ;;  %v4381_v40 = vor.u32 %v6128_v22, %v4380_v21  ;;  %1357 = vmatpush.bf16.msra.mxu0 %v4125_v35  ;;  %v6078_v22 = vld [vmem:[#allocation5 + $0x84] sm:$0xf] }
  0x3f   :  { %v4748_v27 = vld [vmem:[#allocation5 + $0x4e0] sm:$0xf]  ;;  %v6220_v29 = vld [vmem:[#allocation5 + $0x4ec] sm:$0xf0]  ;;  %v4509_v44 = vor.u32 %v6160_v26, %v4508_v25  ;;  %1371 = vmatpush.bf16.msra.mxu1 %v4253_v39  ;;  %v6110_v26 = vld [vmem:[#allocation5 + $0x184] sm:$0xf] }
  0x40   :  { %v4876_v30 = vld [vmem:[#allocation5 + $0x5e0] sm:$0xf]  ;;  %v6252_v31 = vld [vmem:[#allocation5 + $0x5ec] sm:$0xf0]  ;;  %v4749_v45 = vor.u32 %v6220_v29, %v4748_v27  ;;  %1385 = vmatpush.bf16.msra.mxu2 %v4381_v40  ;;  %v4318_v27 = vld [vmem:[#allocation5 + $0x190] sm:$0xf0]  ;;  %v4193_v29 = vor.u32 %v6078_v22, %v4190_v23 }
  0x41   :  { %v141_v34 = vld [vmem:[#allocation2 + $0x10] sm:$0xff]  ;;  %v6256_v38 = vld [vmem:[#allocation5 + $0x60c] sm:$0xf0]  ;;  %v4877_v49 = vor.u32 %v6252_v31, %v4876_v30  ;;  %1399 = vmatpush.bf16.msra.mxu3 %v4509_v44  ;;  %v4174_v35 = vld [vmem:[#allocation5 + $0x70] sm:$0xf0] }
  0x42   :  { %v4892_v37 = vld [vmem:[#allocation5 + $0x600] sm:$0xf]  ;;  %v139_v42 = vld [vmem:[#allocation2] sm:$0xff]  ;;  %v6852_v54 = vpack.c.bf16 %v148_v36, %v141_v34  ;;  %1406 = vmatpush.bf16.msrb.mxu0 %v4749_v45  ;;  %v6074_v34 = vld [vmem:[#allocation5 + $0x64] sm:$0xf] }
  0x43   :  { %v149_v48 = vld [vmem:[#allocation2 + $0x50] sm:$0xff]  ;;  %v6216_v52 = vld [vmem:[#allocation5 + $0x4cc] sm:$0xf0]  ;;  %v6854_v55 = vpack.c.bf16 %v146_v43, %v139_v42  ;;  %v4893_v59 = vor.u32 %v6256_v38, %v4892_v37  ;;  %1420 = vmatpush.bf16.msrb.mxu1 %v4877_v49  ;;  %v152_v37 = vld [vmem:[#allocation2 + $0x68] sm:$0xff]  ;;  %v4321_v38 = vor.u32 %v6110_v26, %v4318_v27  ;;  %v4177_v43 = vor.u32 %v6074_v34, %v4174_v35 }
  0x44   :  { %v4732_v51 = vld [vmem:[#allocation5 + $0x4c0] sm:$0xf]  ;;  %v6248_v56 = vld [vmem:[#allocation5 + $0x5cc] sm:$0xf0]  ;;  %v6856_v60 = vpack.c.bf16 %v149_v48, %v142_v47  ;;  %1386 = vmatmul.bf16.vlgmr.msra.gmra.mxu2 %v6852_v54  ;;  %v6106_v40 = vld [vmem:[#allocation5 + $0x164] sm:$0xf] }
  0x45   :  { %v4860_v53 = vld [vmem:[#allocation5 + $0x5c0] sm:$0xf]  ;;  %v147_v62 = vld [vmem:[#allocation2 + $0x40] sm:$0xff]  ;;  %v4733_v0 = vor.u32 %v6216_v52, %v4732_v51  ;;  %1448 = vmatpush.bf16.msrb.mxu3 %v4241_v50  ;;  %1358 = vmatmul.bf16.vlgmr.msra.gmra.mxu0 %v6854_v55  ;;  %v6070_v48 = vld [vmem:[#allocation5 + $0x44] sm:$0xf]  ;;  %v4305_v51 = vor.u32 %v6106_v40, %v4302_v41 }
  0x46   :  { %v4861_v3 = vor.u32 %v6248_v56, %v4860_v53  ;;  %v4716_v5 = vld [vmem:[#allocation5 + $0x4a0] sm:$0xf]  ;;  %v6212_v6 = vld [vmem:[#allocation5 + $0x4ac] sm:$0xf0]  ;;  %v6860_v8 = vpack.c.bf16 %v147_v62, %v140_v61  ;;  %1441 = vmatpush.bf16.msrb.mxu2 %v4893_v59  ;;  %1400 = vmatmul.bf16.vlgmr.msra.gmra.mxu3 %v6856_v60  ;;  %v4158_v49 = vld [vmem:[#allocation5 + $0x50] sm:$0xf0] }
  0x47   :  { %v4844_v7 = vld [vmem:[#allocation5 + $0x5a0] sm:$0xf]  ;;  %v6244_v9 = vld [vmem:[#allocation5 + $0x5ac] sm:$0xf0]  ;;  %1407 = vmatpush.bf16.msrb.mxu0 %v4733_v0  ;;  %v4717_v13 = vor.u32 %v6212_v6, %v4716_v5  ;;  %v6102_v53 = vld [vmem:[#allocation5 + $0x144] sm:$0xf]  ;;  %v4161_v58 = vor.u32 %v6070_v48, %v4158_v49 }
  0x48   :  { %1421 = vmatpush.bf16.msrb.mxu1 %v4861_v3  ;;  %v4845_v16 = vor.u32 %v6244_v9, %v4844_v7  ;;  %v4700_v18 = vld [vmem:[#allocation5 + $0x480] sm:$0xf]  ;;  %v6208_v19 = vld [vmem:[#allocation5 + $0x48c] sm:$0xf0]  ;;  %v4286_v56 = vld [vmem:[#allocation5 + $0x150] sm:$0xf0] }
  0x49   :  { %1449 = vmatpush.bf16.msrb.mxu3 %v4225_v4  ;;  %v4828_v20 = vld [vmem:[#allocation5 + $0x580] sm:$0xf]  ;;  %1372 = vmatmul.bf16.vlgmr.msra.gmra.mxu1 %v6860_v8  ;;  %v6240_v21 = vld [vmem:[#allocation5 + $0x58c] sm:$0xf0]  ;;  %v4701_v25 = vor.u32 %v6208_v19, %v4700_v18  ;;  %v6066_v0 = vld [vmem:[#allocation5 + $0x24] sm:$0xf]  ;;  %v4289_v4 = vor.u32 %v6102_v53, %v4286_v56 }
  0x4a   :  { %1462 = vmatpush.bf16.msra.mxu2 %v4369_v63  ;;  %v4829_v28 = vor.u32 %v6240_v21, %v4828_v20  ;;  %v4684_v30 = vld [vmem:[#allocation5 + $0x460] sm:$0xf]  ;;  %v6204_v31 = vld [vmem:[#allocation5 + $0x46c] sm:$0xf0]  ;;  %v4142_v1 = vld [vmem:[#allocation5 + $0x30] sm:$0xf0] }
  0x4b   :  { %1408 = vmatpush.bf16.msrb.mxu0 %v4717_v13  ;;  %v4812_v32 = vld [vmem:[#allocation5 + $0x560] sm:$0xf]  ;;  %v6236_v33 = vld [vmem:[#allocation5 + $0x56c] sm:$0xf0]  ;;  %v4685_v39 = vor.u32 %v6204_v31, %v4684_v30  ;;  %v6098_v2 = vld [vmem:[#allocation5 + $0x124] sm:$0xf]  ;;  %v4145_v11 = vor.u32 %v6066_v0, %v4142_v1 }
  0x4c   :  { %1422 = vmatpush.bf16.msrb.mxu1 %v4845_v16  ;;  %v145_v36 = vld [vmem:[#allocation2 + $0x30] sm:$0xff]  ;;  %v4813_v42 = vor.u32 %v6236_v33, %v4812_v32  ;;  %v6200_v45 = vld [vmem:[#allocation5 + $0x44c] sm:$0xf0]  ;;  %v4270_v3 = vld [vmem:[#allocation5 + $0x130] sm:$0xf0] }
  0x4d   :  { %1450 = vmatpush.bf16.msrb.mxu3 %v4209_v17  ;;  %v4668_v44 = vld [vmem:[#allocation5 + $0x440] sm:$0xf]  ;;  %v6232_v47 = vld [vmem:[#allocation5 + $0x54c] sm:$0xf0]  ;;  %v6864_v50 = vpack.c.bf16 %v152_v37, %v145_v36  ;;  %v6062_v13 = vld [vmem:[#allocation5 + $0x4] sm:$0xf]  ;;  %v4273_v21 = vor.u32 %v6098_v2, %v4270_v3 }
  0x4e   :  { %1463 = vmatpush.bf16.msra.mxu2 %v4353_v12  ;;  %v4796_v46 = vld [vmem:[#allocation5 + $0x540] sm:$0xf]  ;;  %v4669_v52 = vor.u32 %v6200_v45, %v4668_v44  ;;  %v6196_v61 = vld [vmem:[#allocation5 + $0x42c] sm:$0xf0]  ;;  %v4126_v14 = vld [vmem:[#allocation5 + $0x10] sm:$0xf0] }
  0x4f   :  { %1409 = vmatpush.bf16.msrb.mxu0 %v4701_v25  ;;  %v4797_v57 = vor.u32 %v6232_v47, %v4796_v46  ;;  %v4652_v59 = vld [vmem:[#allocation5 + $0x420] sm:$0xf]  ;;  %v6228_v63 = vld [vmem:[#allocation5 + $0x52c] sm:$0xf0]  ;;  %v6154_v15 = vld [vmem:[#allocation5 + $0x2e4] sm:$0xf]  ;;  %v4129_v27 = vor.u32 %v6062_v13, %v4126_v14 }
  0x50   :  { %1423 = vmatpush.bf16.msrb.mxu1 %v4829_v28  ;;  %v4780_v62 = vld [vmem:[#allocation5 + $0x520] sm:$0xf]  ;;  %v4653_v5 = vor.u32 %v6196_v61, %v4652_v59  ;;  %v6192_v7 = vld [vmem:[#allocation5 + $0x40c] sm:$0xf0]  ;;  %v4494_v16 = vld [vmem:[#allocation5 + $0x2f0] sm:$0xf0] }
  0x51   :  { %1451 = vmatpush.bf16.msrb.mxu3 %v4193_v29  ;;  %v4636_v6 = vld [vmem:[#allocation5 + $0x400] sm:$0xf]  ;;  %v4781_v10 = vor.u32 %v6228_v63, %v4780_v62  ;;  %v6224_v12 = vld [vmem:[#allocation5 + $0x50c] sm:$0xf0]  ;;  %v6186_v17 = vld [vmem:[#allocation5 + $0x3e4] sm:$0xf]  ;;  %v4497_v31 = vor.u32 %v6154_v15, %v4494_v16 }
  0x52   :  { %1464 = vmatpush.bf16.msra.mxu2 %v4337_v24  ;;  %v4764_v9 = vld [vmem:[#allocation5 + $0x500] sm:$0xf]  ;;  %v4622_v18 = vld [vmem:[#allocation5 + $0x3f0] sm:$0xf0]  ;;  %v6218_v19 = vld [vmem:[#allocation5 + $0x4e4] sm:$0xf]  ;;  %v4637_v22 = vor.u32 %v6192_v7, %v4636_v6 }
  0x53   :  { %1410 = vmatpush.bf16.msrb.mxu0 %v4685_v39  ;;  %v4750_v20 = vld [vmem:[#allocation5 + $0x4f0] sm:$0xf0]  ;;  %v150_v24 = vld [vmem:[#allocation2 + $0x58] sm:$0xff]  ;;  %v6094_v25 = vld [vmem:[#allocation5 + $0x104] sm:$0xf]  ;;  %v4765_v26 = vor.u32 %v6224_v12, %v4764_v9  ;;  %v4625_v32 = vor.u32 %v6186_v17, %v4622_v18 }
  0x54   :  { %1424 = vmatpush.bf16.msrb.mxu1 %v4813_v42  ;;  %4906 = vmatmul.msk.bf16.vlgmr.msrb.gmra.mxu2 %vm1346_vm0, %v6864_v50  ;;  %v143_v23 = vld [vmem:[#allocation2 + $0x20] sm:$0xff]  ;;  %v144_v29 = vld [vmem:[#allocation2 + $0x28] sm:$0xff]  ;;  %v6250_v33 = vld [vmem:[#allocation5 + $0x5e4] sm:$0xf]  ;;  %v4753_v36 = vor.u32 %v6218_v19, %v4750_v20 }
  0x55   :  { %1452 = vmatpush.bf16.msrb.mxu3 %v4177_v43  ;;  %v4254_v28 = vld [vmem:[#allocation5 + $0x110] sm:$0xf0]  ;;  %v6150_v35 = vld [vmem:[#allocation5 + $0x2c4] sm:$0xf]  ;;  %v6868_v37 = vpack.c.bf16 %v150_v24, %v143_v23 }
  0x56   :  { %1465 = vmatpush.bf16.msra.mxu2 %v4321_v38  ;;  %v151_v30 = vld [vmem:[#allocation2 + $0x60] sm:$0xff]  ;;  %v6182_v39 = vld [vmem:[#allocation5 + $0x3c4] sm:$0xf]  ;;  %v4257_v41 = vor.u32 %v6094_v25, %v4254_v28 }
  0x57   :  { %1411 = vmatpush.bf16.msrb.mxu0 %v4669_v52  ;;  %v4878_v34 = vld [vmem:[#allocation5 + $0x5f0] sm:$0xf0]  ;;  %v6870_v42 = vpack.c.bf16 %v151_v30, %v144_v29  ;;  %v6214_v43 = vld [vmem:[#allocation5 + $0x4c4] sm:$0xf] }
  0x58   :  { %1425 = vmatpush.bf16.msrb.mxu1 %v4797_v57  ;;  %v4478_v38 = vld [vmem:[#allocation5 + $0x2d0] sm:$0xf0]  ;;  %v4881_v45 = vor.u32 %v6250_v33, %v4878_v34  ;;  %v6246_v48 = vld [vmem:[#allocation5 + $0x5c4] sm:$0xf] }
  0x59   :  { %1453 = vmatpush.bf16.msrb.mxu3 %v4161_v58  ;;  %v4606_v40 = vld [vmem:[#allocation5 + $0x3d0] sm:$0xf0]  ;;  %v4481_v46 = vor.u32 %v6150_v35, %v4478_v38  ;;  %v6178_v56 = vld [vmem:[#allocation5 + $0x3a4] sm:$0xf] }
  0x5a   :  { %1466 = vmatpush.bf16.msra.mxu2 %v4305_v51  ;;  %v4734_v44 = vld [vmem:[#allocation5 + $0x4d0] sm:$0xf0]  ;;  %v4609_v47 = vor.u32 %v6182_v39, %v4606_v40  ;;  %v6146_v51 = vld [vmem:[#allocation5 + $0x2a4] sm:$0xf] }
  0x5b   :  { %1412 = vmatpush.bf16.msrb.mxu0 %v4653_v5  ;;  %v4862_v49 = vld [vmem:[#allocation5 + $0x5d0] sm:$0xf0]  ;;  %v4737_v52 = vor.u32 %v6214_v43, %v4734_v44  ;;  %v6210_v58 = vld [vmem:[#allocation5 + $0x4a4] sm:$0xf] }
  0x5c   :  { %1426 = vmatpush.bf16.msrb.mxu1 %v4781_v10  ;;  %v4462_v53 = vld [vmem:[#allocation5 + $0x2b0] sm:$0xf0]  ;;  %v4865_v61 = vor.u32 %v6246_v48, %v4862_v49  ;;  %v6242_v0 = vld [vmem:[#allocation5 + $0x5a4] sm:$0xf] }
  0x5d   :  { %1454 = vmatpush.bf16.msrb.mxu3 %v4145_v11  ;;  %v4590_v57 = vld [vmem:[#allocation5 + $0x3b0] sm:$0xf0]  ;;  %v4465_v62 = vor.u32 %v6146_v51, %v4462_v53  ;;  %v6142_v2 = vld [vmem:[#allocation5 + $0x284] sm:$0xf] }
  0x5e   :  { %1467 = vmatpush.bf16.msra.mxu2 %v4289_v4  ;;  %v4718_v59 = vld [vmem:[#allocation5 + $0x4b0] sm:$0xf0]  ;;  %v4593_v63 = vor.u32 %v6178_v56, %v4590_v57  ;;  %v6174_v5 = vld [vmem:[#allocation5 + $0x384] sm:$0xf] }
  0x5f   :  { %1413 = vmatpush.bf16.msrb.mxu0 %v4637_v22  ;;  %v4846_v1 = vld [vmem:[#allocation5 + $0x5b0] sm:$0xf0]  ;;  %v4721_v3 = vor.u32 %v6210_v58, %v4718_v59  ;;  %v6206_v7 = vld [vmem:[#allocation5 + $0x484] sm:$0xf] }
  0x60   :  { %1427 = vmatpush.bf16.msrb.mxu1 %v4765_v26  ;;  %v4446_v4 = vld [vmem:[#allocation5 + $0x290] sm:$0xf0]  ;;  %v4849_v10 = vor.u32 %v6242_v0, %v4846_v1  ;;  %v6238_v13 = vld [vmem:[#allocation5 + $0x584] sm:$0xf]  ;;  %v4244_v0 = vld [vmem:[#allocation5 + $0xe8] sm:$0xf] }
  0x61   :  { %1455 = vmatpush.bf16.msrb.mxu3 %v4129_v27  ;;  %v4574_v6 = vld [vmem:[#allocation5 + $0x390] sm:$0xf0]  ;;  %v4449_v11 = vor.u32 %v6142_v2, %v4446_v4  ;;  %v6138_v15 = vld [vmem:[#allocation5 + $0x264] sm:$0xf]  ;;  %v6093_v1 = vld [vmem:[#allocation5 + $0xf4] sm:$0xf0] }
  0x62   :  { %1468 = vmatpush.bf16.msra.mxu2 %v4273_v21  ;;  %1414 = vmatmul.bf16.vlgmr.msrb.gmra.mxu0 %v6868_v37  ;;  %v4702_v9 = vld [vmem:[#allocation5 + $0x490] sm:$0xf0]  ;;  %v4577_v12 = vor.u32 %v6174_v5, %v4574_v6  ;;  %v6170_v18 = vld [vmem:[#allocation5 + $0x364] sm:$0xf]  ;;  %v4500_v5 = vld [vmem:[#allocation5 + $0x2e8] sm:$0xf] }
  0x63   :  { %1476 = vmatpush.bf16.msra.mxu0 %v4497_v31  ;;  %1428 = vmatmul.bf16.vlgmr.msrb.gmra.mxu1 %v6870_v42  ;;  %v4830_v14 = vld [vmem:[#allocation5 + $0x590] sm:$0xf0]  ;;  %v4705_v16 = vor.u32 %v6206_v7, %v4702_v9  ;;  %v6202_v20 = vld [vmem:[#allocation5 + $0x464] sm:$0xf]  ;;  %v6157_v6 = vld [vmem:[#allocation5 + $0x2f4] sm:$0xf0] }
  0x64   :  { %1490 = vmatpush.bf16.msra.mxu1 %v4625_v32  ;;  %1456 = vmatmul.bf16.vlgmr.msrb.gmra.mxu3 %v6854_v55  ;;  %v4430_v17 = vld [vmem:[#allocation5 + $0x270] sm:$0xf0]  ;;  %v4833_v22 = vor.u32 %v6238_v13, %v4830_v14  ;;  %v6234_v25 = vld [vmem:[#allocation5 + $0x564] sm:$0xf]  ;;  %v4245_v13 = vor.u32 %v6093_v1, %v4244_v0  ;;  %v4628_v14 = vld [vmem:[#allocation5 + $0x3e8] sm:$0xf] }
  0x65   :  { %1504 = vmatpush.bf16.msra.mxu3 %v4753_v36  ;;  %v4558_v19 = vld [vmem:[#allocation5 + $0x370] sm:$0xf0]  ;;  %v4433_v23 = vor.u32 %v6138_v15, %v4430_v17  ;;  %v6134_v27 = vld [vmem:[#allocation5 + $0x244] sm:$0xf]  ;;  %v6189_v15 = vld [vmem:[#allocation5 + $0x3f4] sm:$0xf0] }
  0x66   :  { %1469 = vmatpush.bf16.msra.mxu2 %v4257_v41  ;;  %v4686_v21 = vld [vmem:[#allocation5 + $0x470] sm:$0xf0]  ;;  %v4561_v24 = vor.u32 %v6170_v18, %v4558_v19  ;;  %v6166_v30 = vld [vmem:[#allocation5 + $0x344] sm:$0xf]  ;;  %v4372_v17 = vld [vmem:[#allocation5 + $0x1e8] sm:$0xf]  ;;  %v4501_v19 = vor.u32 %v6157_v6, %v4500_v5 }
  0x67   :  { %1477 = vmatpush.bf16.msra.mxu0 %v4481_v46  ;;  %v4814_v26 = vld [vmem:[#allocation5 + $0x570] sm:$0xf0]  ;;  %v4689_v28 = vor.u32 %v6202_v20, %v4686_v21  ;;  %v6198_v32 = vld [vmem:[#allocation5 + $0x444] sm:$0xf]  ;;  %v6125_v18 = vld [vmem:[#allocation5 + $0x1f4] sm:$0xf0] }
  0x68   :  { %1491 = vmatpush.bf16.msra.mxu1 %v4609_v47  ;;  %v4414_v29 = vld [vmem:[#allocation5 + $0x250] sm:$0xf0]  ;;  %v4817_v34 = vor.u32 %v6234_v25, %v4814_v26  ;;  %v6230_v38 = vld [vmem:[#allocation5 + $0x544] sm:$0xf]  ;;  %v4228_v21 = vld [vmem:[#allocation5 + $0xc8] sm:$0xf]  ;;  %v4373_v26 = vor.u32 %v6125_v18, %v4372_v17 }
  0x69   :  { %1505 = vmatpush.bf16.msra.mxu3 %v4737_v52  ;;  %1470 = vmatmul.bf16.vlgmr.msra.gmra.mxu2 %v6860_v8  ;;  %v4542_v31 = vld [vmem:[#allocation5 + $0x350] sm:$0xf0]  ;;  %v4417_v35 = vor.u32 %v6134_v27, %v4414_v29  ;;  %v6130_v40 = vld [vmem:[#allocation5 + $0x224] sm:$0xf]  ;;  %v6153_v25 = vld [vmem:[#allocation5 + $0x2d4] sm:$0xf0] }
  0x6a   :  { %1518 = vmatpush.bf16.msrb.mxu2 %v4881_v45  ;;  %v4670_v33 = vld [vmem:[#allocation5 + $0x450] sm:$0xf0]  ;;  %v4545_v36 = vor.u32 %v6166_v30, %v4542_v31  ;;  %v6162_v44 = vld [vmem:[#allocation5 + $0x324] sm:$0xf]  ;;  %v4612_v27 = vld [vmem:[#allocation5 + $0x3c8] sm:$0xf] }
  0x6b   :  { %1478 = vmatpush.bf16.msra.mxu0 %v4465_v62  ;;  %v4798_v39 = vld [vmem:[#allocation5 + $0x550] sm:$0xf0]  ;;  %v4673_v41 = vor.u32 %v6198_v32, %v4670_v33  ;;  %v6194_v46 = vld [vmem:[#allocation5 + $0x424] sm:$0xf]  ;;  %v4356_v30 = vld [vmem:[#allocation5 + $0x1c8] sm:$0xf] }
  0x6c   :  { %1492 = vmatpush.bf16.msra.mxu1 %v4593_v63  ;;  %v4398_v43 = vld [vmem:[#allocation5 + $0x230] sm:$0xf0]  ;;  %v4801_v48 = vor.u32 %v6230_v38, %v4798_v39  ;;  %v6226_v49 = vld [vmem:[#allocation5 + $0x524] sm:$0xf]  ;;  %v6121_v31 = vld [vmem:[#allocation5 + $0x1d4] sm:$0xf0] }
  0x6d   :  { %1506 = vmatpush.bf16.msra.mxu3 %v4721_v3  ;;  %v4526_v45 = vld [vmem:[#allocation5 + $0x330] sm:$0xf0]  ;;  %v4401_v52 = vor.u32 %v6130_v40, %v4398_v43  ;;  %v6126_v56 = vld [vmem:[#allocation5 + $0x204] sm:$0xf]  ;;  %v4212_v33 = vld [vmem:[#allocation5 + $0xa8] sm:$0xf]  ;;  %v4357_v39 = vor.u32 %v6121_v31, %v4356_v30 }
  0x6e   :  { %1519 = vmatpush.bf16.msrb.mxu2 %v4865_v61  ;;  %v4654_v47 = vld [vmem:[#allocation5 + $0x430] sm:$0xf0]  ;;  %v4529_v53 = vor.u32 %v6162_v44, %v4526_v45  ;;  %v6158_v58 = vld [vmem:[#allocation5 + $0x304] sm:$0xf]  ;;  %v6149_v38 = vld [vmem:[#allocation5 + $0x2b4] sm:$0xf0] }
  0x6f   :  { %1479 = vmatpush.bf16.msra.mxu0 %v4449_v11  ;;  %v4782_v51 = vld [vmem:[#allocation5 + $0x530] sm:$0xf0]  ;;  %v4657_v59 = vor.u32 %v6194_v46, %v4654_v47  ;;  %v6190_v62 = vld [vmem:[#allocation5 + $0x404] sm:$0xf]  ;;  %v4596_v40 = vld [vmem:[#allocation5 + $0x3a8] sm:$0xf] }
  0x70   :  { %1493 = vmatpush.bf16.msra.mxu1 %v4577_v12  ;;  %v4382_v57 = vld [vmem:[#allocation5 + $0x210] sm:$0xf0]  ;;  %v6254_v2 = vld [vmem:[#allocation5 + $0x604] sm:$0xf]  ;;  %v4785_v3 = vor.u32 %v6226_v49, %v4782_v51  ;;  %v4340_v44 = vld [vmem:[#allocation5 + $0x1a8] sm:$0xf] }
  0x71   :  { %1507 = vmatpush.bf16.msra.mxu3 %v4705_v16  ;;  %v4510_v61 = vld [vmem:[#allocation5 + $0x310] sm:$0xf0]  ;;  %v4385_v7 = vor.u32 %v6126_v56, %v4382_v57  ;;  %v6117_v45 = vld [vmem:[#allocation5 + $0x1b4] sm:$0xf0]  ;;  %v4196_v47 = vld [vmem:[#allocation5 + $0x88] sm:$0xf] }
  0x72   :  { %1520 = vmatpush.bf16.msrb.mxu2 %v4849_v10  ;;  %v4638_v63 = vld [vmem:[#allocation5 + $0x410] sm:$0xf0]  ;;  %v4513_v9 = vor.u32 %v6158_v58, %v4510_v61  ;;  %v6222_v10 = vld [vmem:[#allocation5 + $0x504] sm:$0xf]  ;;  %v4452_v51 = vld [vmem:[#allocation5 + $0x288] sm:$0xf] }
  0x73   :  { %1480 = vmatpush.bf16.msra.mxu0 %v4433_v23  ;;  %v4894_v4 = vld [vmem:[#allocation5 + $0x610] sm:$0xf0]  ;;  %v4641_v12 = vor.u32 %v6190_v62, %v4638_v63  ;;  %v4629_v23 = vor.u32 %v6189_v15, %v4628_v14  ;;  %v4580_v56 = vld [vmem:[#allocation5 + $0x388] sm:$0xf]  ;;  %v6177_v57 = vld [vmem:[#allocation5 + $0x394] sm:$0xf0] }
  0x74   :  { %1494 = vmatpush.bf16.msra.mxu1 %v4561_v24  ;;  %v4766_v11 = vld [vmem:[#allocation5 + $0x510] sm:$0xf0]  ;;  %v4897_v16 = vor.u32 %v6254_v2, %v4894_v4  ;;  %v4484_v24 = vld [vmem:[#allocation5 + $0x2c8] sm:$0xf]  ;;  %v6113_v61 = vld [vmem:[#allocation5 + $0x194] sm:$0xf0]  ;;  %v4581_v1 = vor.u32 %v6177_v57, %v4580_v56 }
  0x75   :  { %1508 = vmatpush.bf16.msra.mxu3 %v4689_v28  ;;  %v4769_v20 = vor.u32 %v6222_v10, %v4766_v11  ;;  %v6185_v28 = vld [vmem:[#allocation5 + $0x3d4] sm:$0xf0]  ;;  %v4485_v32 = vor.u32 %v6153_v25, %v4484_v24  ;;  %v4180_v63 = vld [vmem:[#allocation5 + $0x68] sm:$0xf]  ;;  %v6091_v56 = vld [vmem:[#allocation5 + $0xec] sm:$0xf] }
  0x76   :  { %1521 = vmatpush.bf16.msrb.mxu2 %v4833_v22  ;;  %v6089_v22 = vld [vmem:[#allocation5 + $0xd4] sm:$0xf0]  ;;  %v4436_v2 = vld [vmem:[#allocation5 + $0x268] sm:$0xf]  ;;  %v4246_v57 = vld [vmem:[#allocation5 + $0xf8] sm:$0xf0] }
  0x77   :  { %1481 = vmatpush.bf16.msra.mxu0 %v4417_v35  ;;  %v4229_v29 = vor.u32 %v6089_v22, %v4228_v21  ;;  %v4613_v35 = vor.u32 %v6185_v28, %v4612_v27  ;;  %v6077_v0 = vld [vmem:[#allocation5 + $0x74] sm:$0xf0]  ;;  %v4564_v5 = vld [vmem:[#allocation5 + $0x368] sm:$0xf] }
  0x78   :  { %1495 = vmatpush.bf16.msra.mxu1 %v4545_v36  ;;  %v4468_v36 = vld [vmem:[#allocation5 + $0x2a8] sm:$0xf]  ;;  %v6173_v6 = vld [vmem:[#allocation5 + $0x374] sm:$0xf0] }
  0x79   :  { %1509 = vmatpush.bf16.msra.mxu3 %v4673_v41  ;;  %v6181_v41 = vld [vmem:[#allocation5 + $0x3b4] sm:$0xf0]  ;;  %v4469_v46 = vor.u32 %v6149_v38, %v4468_v36  ;;  %v4565_v14 = vor.u32 %v6173_v6, %v4564_v5  ;;  %v4420_v15 = vld [vmem:[#allocation5 + $0x248] sm:$0xf]  ;;  %v4249_v6 = vor.u32 %v6091_v56, %v4246_v57 }
  0x7a   :  { %1522 = vmatpush.bf16.msrb.mxu2 %v4817_v34  ;;  %v6085_v34 = vld [vmem:[#allocation5 + $0xb4] sm:$0xf0]  ;;  %v4597_v49 = vor.u32 %v6181_v41, %v4596_v40  ;;  %v4548_v18 = vld [vmem:[#allocation5 + $0x348] sm:$0xf] }
  0x7b   :  { %1482 = vmatpush.bf16.msra.mxu0 %v4401_v52  ;;  %v4213_v43 = vor.u32 %v6085_v34, %v4212_v33  ;;  %v6145_v52 = vld [vmem:[#allocation5 + $0x294] sm:$0xf0]  ;;  %v4292_v21 = vld [vmem:[#allocation5 + $0x148] sm:$0xf] }
  0x7c   :  { %1496 = vmatpush.bf16.msra.mxu1 %v4529_v53  ;;  %v4341_v53 = vor.u32 %v6117_v45, %v4340_v44  ;;  %v4453_v62 = vor.u32 %v6145_v52, %v4452_v51  ;;  %v6109_v10 = vld [vmem:[#allocation5 + $0x174] sm:$0xf0]  ;;  %v4148_v24 = vld [vmem:[#allocation5 + $0x28] sm:$0xf] }
  0x7d   :  { %1510 = vmatpush.bf16.msra.mxu3 %v4657_v59  ;;  %v4324_v59 = vld [vmem:[#allocation5 + $0x188] sm:$0xf]  ;;  %v6105_v22 = vld [vmem:[#allocation5 + $0x154] sm:$0xf0] }
  0x7e   :  { %1523 = vmatpush.bf16.msrb.mxu2 %v4801_v48  ;;  %v6081_v48 = vld [vmem:[#allocation5 + $0x94] sm:$0xf0]  ;;  %v4325_v4 = vor.u32 %v6113_v61, %v4324_v59  ;;  %v4404_v27 = vld [vmem:[#allocation5 + $0x228] sm:$0xf] }
  0x7f   :  { %1483 = vmatpush.bf16.msra.mxu0 %v4385_v7  ;;  %v4197_v58 = vor.u32 %v6081_v48, %v4196_v47  ;;  %v4181_v7 = vor.u32 %v6077_v0, %v4180_v63  ;;  %v6069_v25 = vld [vmem:[#allocation5 + $0x34] sm:$0xf0]  ;;  %v4532_v30 = vld [vmem:[#allocation5 + $0x328] sm:$0xf] }
  0x80   :  { %1497 = vmatpush.bf16.msra.mxu1 %v4513_v9  ;;  %v4308_v9 = vld [vmem:[#allocation5 + $0x168] sm:$0xf]  ;;  %v6133_v28 = vld [vmem:[#allocation5 + $0x234] sm:$0xf0] }
  0x81   :  { %1511 = vmatpush.bf16.msra.mxu3 %v4641_v12  ;;  %v4164_v12 = vld [vmem:[#allocation5 + $0x48] sm:$0xf]  ;;  %v4309_v17 = vor.u32 %v6109_v10, %v4308_v9  ;;  %v6165_v31 = vld [vmem:[#allocation5 + $0x334] sm:$0xf0]  ;;  %v4405_v36 = vor.u32 %v6133_v28, %v4404_v27  ;;  %v6087_v9 = vld [vmem:[#allocation5 + $0xcc] sm:$0xf] }
  0x82   :  { %1524 = vmatpush.bf16.msrb.mxu2 %v4785_v3  ;;  %1484 = vmatmul.bf16.vlgmr.msra.gmra.mxu0 %v6852_v54  ;;  %v6141_v3 = vld [vmem:[#allocation5 + $0x274] sm:$0xf0]  ;;  %v4276_v33 = vld [vmem:[#allocation5 + $0x128] sm:$0xf]  ;;  %v4533_v41 = vor.u32 %v6165_v31, %v4532_v30  ;;  %v4230_v10 = vld [vmem:[#allocation5 + $0xd8] sm:$0xf0] }
  0x83   :  { %1574 = vmatpush.bf16.msrb.mxu0 %v4501_v19  ;;  %1498 = vmatmul.bf16.vlgmr.msra.gmra.mxu1 %v6856_v60  ;;  %v4437_v11 = vor.u32 %v6141_v3, %v4436_v2  ;;  %v6169_v19 = vld [vmem:[#allocation5 + $0x354] sm:$0xf0]  ;;  %v4388_v44 = vld [vmem:[#allocation5 + $0x208] sm:$0xf]  ;;  %v6123_v3 = vld [vmem:[#allocation5 + $0x1ec] sm:$0xf] }
  0x84   :  { %1546 = vmatpush.bf16.msrb.mxu1 %v4245_v13  ;;  %1512 = vmatmul.bf16.vlgmr.msra.gmra.mxu3 %v6868_v37  ;;  %v6073_v13 = vld [vmem:[#allocation5 + $0x54] sm:$0xf0]  ;;  %v4884_v61 = vld [vmem:[#allocation5 + $0x5e8] sm:$0xf]  ;;  %v4342_v30 = vld [vmem:[#allocation5 + $0x1b8] sm:$0xf0] }
  0x85   :  { %1539 = vmatpush.bf16.msrb.mxu3 %v4897_v16  ;;  %v6137_v16 = vld [vmem:[#allocation5 + $0x254] sm:$0xf0]  ;;  %v4740_v63 = vld [vmem:[#allocation5 + $0x4c8] sm:$0xf] }
  0x86   :  { %1525 = vmatpush.bf16.msrb.mxu2 %v4769_v20  ;;  %v4165_v20 = vor.u32 %v6073_v13, %v4164_v12  ;;  %v6101_v34 = vld [vmem:[#allocation5 + $0x134] sm:$0xf0]  ;;  %v4868_v13 = vld [vmem:[#allocation5 + $0x5c8] sm:$0xf] }
  0x87   :  { %1575 = vmatpush.bf16.msrb.mxu0 %v4485_v32  ;;  %v4149_v32 = vor.u32 %v6069_v25, %v4148_v24  ;;  %v6065_v38 = vld [vmem:[#allocation5 + $0x14] sm:$0xf0]  ;;  %v4277_v47 = vor.u32 %v6101_v34, %v4276_v33  ;;  %v4852_v25 = vld [vmem:[#allocation5 + $0x5a8] sm:$0xf]  ;;  %v6079_v33 = vld [vmem:[#allocation5 + $0x8c] sm:$0xf] }
  0x88   :  { %1547 = vmatpush.bf16.msrb.mxu1 %v4229_v29  ;;  %v4293_v29 = vor.u32 %v6105_v22, %v4292_v21  ;;  %v6221_v40 = vld [vmem:[#allocation5 + $0x4f4] sm:$0xf0]  ;;  %v6083_v21 = vld [vmem:[#allocation5 + $0xac] sm:$0xf]  ;;  %v4214_v22 = vld [vmem:[#allocation5 + $0xb8] sm:$0xf0] }
  0x89   :  { %1560 = vmatpush.bf16.msra.mxu3 %v4373_v26  ;;  %1526 = vmatmul.bf16.vlgmr.msrb.gmra.mxu2 %v6870_v42  ;;  %v4549_v26 = vor.u32 %v6169_v19, %v4548_v18  ;;  %v6129_v45 = vld [vmem:[#allocation5 + $0x214] sm:$0xf0]  ;;  %v4358_v18 = vld [vmem:[#allocation5 + $0x1d8] sm:$0xf0]  ;;  %v4233_v19 = vor.u32 %v6087_v9, %v4230_v10  ;;  %v4708_v27 = vld [vmem:[#allocation5 + $0x488] sm:$0xf]  ;;  %v4217_v31 = vor.u32 %v6083_v21, %v4214_v22 }
  0x8a   :  { %1588 = vmatpush.bf16.msra.mxu2 %v4629_v23  ;;  %v4421_v23 = vor.u32 %v6137_v16, %v4420_v15  ;;  %v6161_v48 = vld [vmem:[#allocation5 + $0x314] sm:$0xf0]  ;;  %v4389_v59 = vor.u32 %v6129_v45, %v4388_v44  ;;  %v4724_v15 = vld [vmem:[#allocation5 + $0x4a8] sm:$0xf]  ;;  %v4198_v34 = vld [vmem:[#allocation5 + $0x98] sm:$0xf0] }
  0x8b   :  { %1576 = vmatpush.bf16.msrb.mxu0 %v4469_v46  ;;  %v4516_v46 = vld [vmem:[#allocation5 + $0x308] sm:$0xf]  ;;  %v6257_v51 = vld [vmem:[#allocation5 + $0x614] sm:$0xf0]  ;;  %v4326_v44 = vld [vmem:[#allocation5 + $0x198] sm:$0xf0]  ;;  %v4201_v45 = vor.u32 %v6079_v33, %v4198_v34 }
  0x8c   :  { %1548 = vmatpush.bf16.msrb.mxu1 %v4213_v43  ;;  %v4260_v43 = vld [vmem:[#allocation5 + $0x108] sm:$0xf]  ;;  %v4517_v0 = vor.u32 %v6161_v48, %v4516_v46  ;;  %v6213_v16 = vld [vmem:[#allocation5 + $0x4b4] sm:$0xf0]  ;;  %v4182_v48 = vld [vmem:[#allocation5 + $0x78] sm:$0xf0] }
  0x8d   :  { %1561 = vmatpush.bf16.msra.mxu3 %v4357_v39  ;;  %v4756_v39 = vld [vmem:[#allocation5 + $0x4e8] sm:$0xf]  ;;  %v6209_v28 = vld [vmem:[#allocation5 + $0x494] sm:$0xf0]  ;;  %v4294_v9 = vld [vmem:[#allocation5 + $0x158] sm:$0xf0] }
  0x8e   :  { %1589 = vmatpush.bf16.msra.mxu2 %v4613_v35  ;;  %v4132_v35 = vld [vmem:[#allocation5 + $0x8] sm:$0xf]  ;;  %v6201_v57 = vld [vmem:[#allocation5 + $0x454] sm:$0xf0]  ;;  %v4278_v21 = vld [vmem:[#allocation5 + $0x138] sm:$0xf0] }
  0x8f   :  { %1577 = vmatpush.bf16.msrb.mxu0 %v4453_v62  ;;  %v4133_v52 = vor.u32 %v6065_v38, %v4132_v35  ;;  %v6253_v62 = vld [vmem:[#allocation5 + $0x5f4] sm:$0xf0]  ;;  %v4709_v35 = vor.u32 %v6209_v28, %v4708_v27  ;;  %v4836_v38 = vld [vmem:[#allocation5 + $0x588] sm:$0xf]  ;;  %v6063_v27 = vld [vmem:[#allocation5 + $0xc] sm:$0xf] }
  0x90   :  { %1549 = vmatpush.bf16.msrb.mxu1 %v4197_v58  ;;  %v4757_v58 = vor.u32 %v6221_v40, %v4756_v39  ;;  %v6241_v39 = vld [vmem:[#allocation5 + $0x594] sm:$0xf0]  ;;  %v4692_v40 = vld [vmem:[#allocation5 + $0x468] sm:$0xf]  ;;  %v4134_v28 = vld [vmem:[#allocation5 + $0x18] sm:$0xf0] }
  0x91   :  { %1562 = vmatpush.bf16.msra.mxu3 %v4341_v53  ;;  %v6097_v53 = vld [vmem:[#allocation5 + $0x114] sm:$0xf0]  ;;  %v4837_v46 = vor.u32 %v6241_v39, %v4836_v38  ;;  %v4676_v56 = vld [vmem:[#allocation5 + $0x448] sm:$0xf]  ;;  %v4630_v33 = vld [vmem:[#allocation5 + $0x3f8] sm:$0xf0]  ;;  %v4137_v39 = vor.u32 %v6063_v27, %v4134_v28 }
  0x92   :  { %1590 = vmatpush.bf16.msra.mxu2 %v4597_v49  ;;  %v4900_v49 = vld [vmem:[#allocation5 + $0x608] sm:$0xf]  ;;  %v4261_v5 = vor.u32 %v6097_v53, %v4260_v43  ;;  %v6111_v43 = vld [vmem:[#allocation5 + $0x18c] sm:$0xf]  ;;  %v6237_v53 = vld [vmem:[#allocation5 + $0x574] sm:$0xf0] }
  0x93   :  { %1578 = vmatpush.bf16.msrb.mxu0 %v4437_v11  ;;  %v4901_v2 = vor.u32 %v6257_v51, %v4900_v49  ;;  %v4329_v51 = vor.u32 %v6111_v43, %v4326_v44  ;;  %v6151_v38 = vld [vmem:[#allocation5 + $0x2cc] sm:$0xf]  ;;  %v4262_v43 = vld [vmem:[#allocation5 + $0x118] sm:$0xf0] }
  0x94   :  { %1550 = vmatpush.bf16.msrb.mxu1 %v4181_v7  ;;  %4907 = vmatmul.msk.bf16.vlgmr.msrb.gmra.mxu3 %vm1346_vm0, %v6864_v50  ;;  %v4885_v7 = vor.u32 %v6253_v62, %v4884_v61  ;;  %v4566_v28 = vld [vmem:[#allocation5 + $0x378] sm:$0xf0] }
  0x95   :  { %1563 = vmatpush.bf16.msra.mxu3 %v4325_v4  ;;  %v4374_v4 = vld [vmem:[#allocation5 + $0x1f8] sm:$0xf0] }
  0x96   :  { %1591 = vmatpush.bf16.msra.mxu2 %v4581_v1  ;;  %v6217_v1 = vld [vmem:[#allocation5 + $0x4d4] sm:$0xf0]  ;;  %v4377_v12 = vor.u32 %v6123_v3, %v4374_v4  ;;  %v4804_v3 = vld [vmem:[#allocation5 + $0x548] sm:$0xf] }
  0x97   :  { %1579 = vmatpush.bf16.msrb.mxu0 %v4421_v23  ;;  %v4741_v11 = vor.u32 %v6217_v1, %v4740_v63  ;;  %v4725_v23 = vor.u32 %v6213_v16, %v4724_v15  ;;  %v6071_v63 = vld [vmem:[#allocation5 + $0x4c] sm:$0xf]  ;;  %v4677_v1 = vor.u32 %v6201_v57, %v4676_v56  ;;  %v6233_v4 = vld [vmem:[#allocation5 + $0x554] sm:$0xf0]  ;;  %v4788_v16 = vld [vmem:[#allocation5 + $0x528] sm:$0xf] }
  0x98   :  { %1551 = vmatpush.bf16.msrb.mxu1 %v4165_v20  ;;  %v6215_v56 = vld [vmem:[#allocation5 + $0x4cc] sm:$0xf]  ;;  %v4742_v57 = vld [vmem:[#allocation5 + $0x4d8] sm:$0xf0] }
  0x99   :  { %1564 = vmatpush.bf16.msra.mxu3 %v4309_v17  ;;  %v6119_v17 = vld [vmem:[#allocation5 + $0x1cc] sm:$0xf] }
  0x9a   :  { %1592 = vmatpush.bf16.msra.mxu2 %v4565_v14  ;;  %v6249_v14 = vld [vmem:[#allocation5 + $0x5d4] sm:$0xf0]  ;;  %v4361_v24 = vor.u32 %v6119_v17, %v4358_v18  ;;  %v4644_v18 = vld [vmem:[#allocation5 + $0x408] sm:$0xf] }
  0x9b   :  { %1580 = vmatpush.bf16.msrb.mxu0 %v4405_v36  ;;  %v4869_v20 = vor.u32 %v6249_v14, %v4868_v13  ;;  %v4150_v13 = vld [vmem:[#allocation5 + $0x38] sm:$0xf0]  ;;  %v6229_v17 = vld [vmem:[#allocation5 + $0x534] sm:$0xf0] }
  0x9c   :  { %1552 = vmatpush.bf16.msrb.mxu1 %v4149_v32 }
  0x9d   :  { %1565 = vmatpush.bf16.msra.mxu3 %v4293_v29  ;;  %v6115_v29 = vld [vmem:[#allocation5 + $0x1ac] sm:$0xf] }
  0x9e   :  { %1593 = vmatpush.bf16.msra.mxu2 %v4549_v26  ;;  %v6245_v26 = vld [vmem:[#allocation5 + $0x5b4] sm:$0xf0]  ;;  %v4345_v36 = vor.u32 %v6115_v29, %v4342_v30 }
  0x9f   :  { %1581 = vmatpush.bf16.msrb.mxu0 %v4389_v59  ;;  %v4853_v32 = vor.u32 %v6245_v26, %v4852_v25  ;;  %v4310_v59 = vld [vmem:[#allocation5 + $0x178] sm:$0xf0]  ;;  %v4789_v25 = vor.u32 %v6229_v17, %v4788_v16  ;;  %v4772_v26 = vld [vmem:[#allocation5 + $0x508] sm:$0xf] }
  0xa0   :  { %1553 = vmatpush.bf16.msrb.mxu1 %v4133_v52  ;;  %v4820_v52 = vld [vmem:[#allocation5 + $0x568] sm:$0xf]  ;;  %v4582_v17 = vld [vmem:[#allocation5 + $0x398] sm:$0xf0] }
  0xa1   :  { %1566 = vmatpush.bf16.msra.mxu3 %v4277_v47  ;;  %v6075_v47 = vld [vmem:[#allocation5 + $0x6c] sm:$0xf]  ;;  %v4821_v62 = vor.u32 %v6237_v53, %v4820_v52  ;;  %v4614_v53 = vld [vmem:[#allocation5 + $0x3d8] sm:$0xf0] }
  0xa2   :  { %1594 = vmatpush.bf16.msra.mxu2 %v4533_v41  ;;  %1582 = vmatmul.bf16.vlgmr.msrb.gmra.mxu0 %v6852_v54  ;;  %v6205_v41 = vld [vmem:[#allocation5 + $0x474] sm:$0xf0]  ;;  %v4185_v61 = vor.u32 %v6075_v47, %v4182_v48 }
  0xa3   :  { %1637 = vmatpush.bf16.msra.mxu0 %v4901_v2  ;;  %1554 = vmatmul.bf16.vlgmr.msrb.gmra.mxu1 %v6854_v55  ;;  %v4693_v49 = vor.u32 %v6205_v41, %v4692_v40  ;;  %v4486_v40 = vld [vmem:[#allocation5 + $0x2d8] sm:$0xf0]  ;;  %v6095_v41 = vld [vmem:[#allocation5 + $0x10c] sm:$0xf] }
  0xa4   :  { %1602 = vmatpush.bf16.msra.mxu1 %v4757_v58  ;;  %v6107_v58 = vld [vmem:[#allocation5 + $0x16c] sm:$0xf]  ;;  %v4265_v52 = vor.u32 %v6095_v41, %v4262_v43  ;;  %v4678_v43 = vld [vmem:[#allocation5 + $0x458] sm:$0xf0] }
  0xa5   :  { %1567 = vmatpush.bf16.msra.mxu3 %v4261_v5  ;;  %v4313_v2 = vor.u32 %v6107_v58, %v4310_v59  ;;  %v4660_v5 = vld [vmem:[#allocation5 + $0x428] sm:$0xf]  ;;  %v6147_v59 = vld [vmem:[#allocation5 + $0x2ac] sm:$0xf] }
  0xa6   :  { %1595 = vmatpush.bf16.msra.mxu2 %v4517_v0  ;;  %v4166_v0 = vld [vmem:[#allocation5 + $0x58] sm:$0xf0]  ;;  %v6199_v41 = vld [vmem:[#allocation5 + $0x44c] sm:$0xf] }
  0xa7   :  { %1658 = vmatpush.bf16.msrb.mxu0 %v4377_v12  ;;  %v4169_v10 = vor.u32 %v6071_v63, %v4166_v0  ;;  %v6067_v12 = vld [vmem:[#allocation5 + $0x2c] sm:$0xf]  ;;  %v4870_v63 = vld [vmem:[#allocation5 + $0x5d8] sm:$0xf0] }
  0xa8   :  { %1603 = vmatpush.bf16.msra.mxu1 %v4741_v11  ;;  %1568 = vmatmul.bf16.vlgmr.msra.gmra.mxu3 %v6860_v8  ;;  %v4805_v11 = vor.u32 %v6233_v4, %v4804_v3  ;;  %v4153_v22 = vor.u32 %v6067_v12, %v4150_v13  ;;  %v4598_v4 = vld [vmem:[#allocation5 + $0x3b8] sm:$0xf0] }
  0xa9   :  { %1616 = vmatpush.bf16.msrb.mxu3 %v4885_v7  ;;  %1596 = vmatmul.bf16.vlgmr.msra.gmra.mxu2 %v6856_v60  ;;  %v6103_v7 = vld [vmem:[#allocation5 + $0x14c] sm:$0xf]  ;;  %v4854_v12 = vld [vmem:[#allocation5 + $0x5b8] sm:$0xf0] }
  0xaa   :  { %1644 = vmatpush.bf16.msrb.mxu2 %v4249_v6  ;;  %v6197_v6 = vld [vmem:[#allocation5 + $0x434] sm:$0xf0]  ;;  %v4297_v15 = vor.u32 %v6103_v7, %v4294_v9  ;;  %v6143_v9 = vld [vmem:[#allocation5 + $0x28c] sm:$0xf] }
  0xab   :  { %1659 = vmatpush.bf16.msrb.mxu0 %v4361_v24  ;;  %v4661_v14 = vor.u32 %v6197_v6, %v4660_v5  ;;  %v4502_v24 = vld [vmem:[#allocation5 + $0x2f8] sm:$0xf0]  ;;  %v6211_v5 = vld [vmem:[#allocation5 + $0x4ac] sm:$0xf] }
  0xac   :  { %1604 = vmatpush.bf16.msra.mxu1 %v4725_v23  ;;  %v6155_v23 = vld [vmem:[#allocation5 + $0x2ec] sm:$0xf]  ;;  %v4726_v6 = vld [vmem:[#allocation5 + $0x4b8] sm:$0xf0] }
  0xad   :  { %1617 = vmatpush.bf16.msrb.mxu3 %v4869_v20  ;;  %v6099_v20 = vld [vmem:[#allocation5 + $0x12c] sm:$0xf]  ;;  %v4505_v34 = vor.u32 %v6155_v23, %v4502_v24 }
  0xae   :  { %1645 = vmatpush.bf16.msrb.mxu2 %v4233_v19  ;;  %v6193_v19 = vld [vmem:[#allocation5 + $0x414] sm:$0xf0]  ;;  %v4281_v30 = vor.u32 %v6099_v20, %v4278_v21  ;;  %v6139_v21 = vld [vmem:[#allocation5 + $0x26c] sm:$0xf] }
  0xaf   :  { %1660 = vmatpush.bf16.msrb.mxu0 %v4345_v36  ;;  %v4645_v29 = vor.u32 %v6193_v19, %v4644_v18  ;;  %v4758_v36 = vld [vmem:[#allocation5 + $0x4f8] sm:$0xf0]  ;;  %v6207_v18 = vld [vmem:[#allocation5 + $0x48c] sm:$0xf] }
  0xb0   :  { %1605 = vmatpush.bf16.msra.mxu1 %v4709_v35  ;;  %v6219_v35 = vld [vmem:[#allocation5 + $0x4ec] sm:$0xf]  ;;  %v4710_v19 = vld [vmem:[#allocation5 + $0x498] sm:$0xf0] }
  0xb1   :  { %1618 = vmatpush.bf16.msrb.mxu3 %v4853_v32  ;;  %v6187_v32 = vld [vmem:[#allocation5 + $0x3ec] sm:$0xf]  ;;  %v4761_v48 = vor.u32 %v6219_v35, %v4758_v36 }
  0xb2   :  { %1646 = vmatpush.bf16.msrb.mxu2 %v4217_v31  ;;  %4908 = vmatmul.msk.bf16.vlgmr.msra.gmra.mxu0 %vm1346_vm0, %v6864_v50  ;;  %v6225_v31 = vld [vmem:[#allocation5 + $0x514] sm:$0xf0]  ;;  %v4633_v47 = vor.u32 %v6187_v32, %v4630_v33  ;;  %v6239_v23 = vld [vmem:[#allocation5 + $0x58c] sm:$0xf] }
  0xb3   :  { %1661 = vmatpush.bf16.msrb.mxu0 %v4329_v51  ;;  %v4773_v44 = vor.u32 %v6225_v31, %v4772_v26  ;;  %v4489_v51 = vor.u32 %v6151_v38, %v4486_v40  ;;  %v6171_v26 = vld [vmem:[#allocation5 + $0x36c] sm:$0xf]  ;;  %v4550_v40 = vld [vmem:[#allocation5 + $0x358] sm:$0xf0] }
  0xb4   :  { %1606 = vmatpush.bf16.msra.mxu1 %v4693_v49  ;;  %v6183_v49 = vld [vmem:[#allocation5 + $0x3cc] sm:$0xf]  ;;  %v4569_v35 = vor.u32 %v6171_v26, %v4566_v28  ;;  %v6284_v28 = vld [vmem:[#allocation8 + $0xcc] sm:$0xf0] }
  0xb5   :  { %1619 = vmatpush.bf16.msrb.mxu3 %v4837_v46  ;;  %v4886_v46 = vld [vmem:[#allocation5 + $0x5f8] sm:$0xf0]  ;;  %v4617_v0 = vor.u32 %v6183_v49, %v4614_v53  ;;  %v6135_v32 = vld [vmem:[#allocation5 + $0x24c] sm:$0xf] }
  0xb6   :  { %1647 = vmatpush.bf16.msrb.mxu2 %v4201_v45  ;;  %v6251_v45 = vld [vmem:[#allocation5 + $0x5ec] sm:$0xf] }
  0xb7   :  { %1662 = vmatpush.bf16.msrb.mxu0 %v4313_v2  ;;  %v4889_v58 = vor.u32 %v6251_v45, %v4886_v46  ;;  %v6179_v2 = vld [vmem:[#allocation5 + $0x3ac] sm:$0xf]  ;;  %v4406_v46 = vld [vmem:[#allocation5 + $0x238] sm:$0xf0] }
  0xb8   :  { %1607 = vmatpush.bf16.msra.mxu1 %v4677_v1  ;;  %v4745_v1 = vor.u32 %v6215_v56, %v4742_v57  ;;  %v4601_v13 = vor.u32 %v6179_v2, %v4598_v4  ;;  %v6235_v33 = vld [vmem:[#allocation5 + $0x56c] sm:$0xf]  ;;  %v4534_v57 = vld [vmem:[#allocation5 + $0x338] sm:$0xf0] }
  0xb9   :  { %1620 = vmatpush.bf16.msrb.mxu3 %v4821_v62  ;;  %v6247_v62 = vld [vmem:[#allocation5 + $0x5cc] sm:$0xf]  ;;  %v4790_v2 = vld [vmem:[#allocation5 + $0x538] sm:$0xf0] }
  0xba   :  { %1648 = vmatpush.bf16.msrb.mxu2 %v4185_v61  ;;  %v4470_v61 = vld [vmem:[#allocation5 + $0x2b8] sm:$0xf0]  ;;  %v4873_v7 = vor.u32 %v6247_v62, %v4870_v63  ;;  %v6167_v38 = vld [vmem:[#allocation5 + $0x34c] sm:$0xf] }
  0xbb   :  { %1663 = vmatpush.bf16.msrb.mxu0 %v4297_v15  ;;  %v4473_v3 = vor.u32 %v6147_v59, %v4470_v61  ;;  %v6175_v15 = vld [vmem:[#allocation5 + $0x38c] sm:$0xf]  ;;  %v4553_v49 = vor.u32 %v6167_v38, %v4550_v40  ;;  %v4662_v59 = vld [vmem:[#allocation5 + $0x438] sm:$0xf0]  ;;  %v4992_v38 = vld [vmem:[#allocation8 + $0xa0] sm:$0xf] }
  0xbc   :  { %1608 = vmatpush.bf16.msra.mxu1 %v4661_v14  ;;  %v4729_v14 = vor.u32 %v6211_v5, %v4726_v6  ;;  %v4585_v24 = vor.u32 %v6175_v15, %v4582_v17  ;;  %v6131_v45 = vld [vmem:[#allocation5 + $0x22c] sm:$0xf]  ;;  %v4902_v4 = vld [vmem:[#allocation5 + $0x618] sm:$0xf0]  ;;  %v6288_v17 = vld [vmem:[#allocation8 + $0xec] sm:$0xf0] }
  0xbd   :  { %1621 = vmatpush.bf16.msrb.mxu3 %v4805_v11  ;;  %v6243_v11 = vld [vmem:[#allocation5 + $0x5ac] sm:$0xf]  ;;  %v4409_v56 = vor.u32 %v6131_v45, %v4406_v46 }
  0xbe   :  { %1649 = vmatpush.bf16.msrb.mxu2 %v4169_v10  ;;  %v4454_v10 = vld [vmem:[#allocation5 + $0x298] sm:$0xf0]  ;;  %v4857_v20 = vor.u32 %v6243_v11, %v4854_v12  ;;  %v6127_v63 = vld [vmem:[#allocation5 + $0x20c] sm:$0xf] }
  0xbf   :  { %1664 = vmatpush.bf16.msrb.mxu0 %v4281_v30  ;;  %v4457_v16 = vor.u32 %v6143_v9, %v4454_v10  ;;  %v4694_v30 = vld [vmem:[#allocation5 + $0x478] sm:$0xf0]  ;;  %v6894_v9 = vld [vmem:[#allocation7] sm:$0xf] }
  0xc0   :  { %1609 = vmatpush.bf16.msra.mxu1 %v4645_v29  ;;  %v6203_v29 = vld [vmem:[#allocation5 + $0x46c] sm:$0xf]  ;;  %v4518_v12 = vld [vmem:[#allocation5 + $0x318] sm:$0xf0] }
  0xc1   :  { %1622 = vmatpush.bf16.msrb.mxu3 %v4789_v25  ;;  %v4713_v25 = vor.u32 %v6207_v18, %v4710_v19  ;;  %v4697_v36 = vor.u32 %v6203_v29, %v4694_v30  ;;  %v6223_v18 = vld [vmem:[#allocation5 + $0x50c] sm:$0xf] }
  0xc2   :  { %1650 = vmatpush.bf16.msrb.mxu2 %v4153_v22  ;;  %v4438_v22 = vld [vmem:[#allocation5 + $0x278] sm:$0xf0]  ;;  %v1359_v53 = vpop.f32.mrf.mxu0 }
  0xc3   :  { %1610 = vmatmul.bf16.vlgmr.msra.gmra.mxu1 %v6868_v37  ;;  %1665 = vmatpush.bf16.msrb.mxu0 %v4265_v52  ;;  %v4441_v27 = vor.u32 %v6139_v21, %v4438_v22  ;;  %v6163_v52 = vld [vmem:[#allocation5 + $0x32c] sm:$0xf]  ;;  %v5152_v21 = vld [vmem:[#allocation8 + $0x1e0] sm:$0xf]  ;;  %v6320_v22 = vld [vmem:[#allocation8 + $0x1ec] sm:$0xf0] }
  0xc4   :  { %1672 = vmatpush.bf16.msrb.mxu1 %v4505_v34  ;;  %v4822_v34 = vld [vmem:[#allocation5 + $0x578] sm:$0xf0]  ;;  %v4537_v5 = vor.u32 %v6163_v52, %v4534_v57  ;;  %v5153_v29 = vor.u32 %v6320_v22, %v5152_v21  ;;  %v5104_v52 = vld [vmem:[#allocation8 + $0x180] sm:$0xf]  ;;  %v6296_v21 = vld [vmem:[#allocation8 + $0x12c] sm:$0xf0] }
  0xc5   :  { %1623 = vmatpush.bf16.msrb.mxu3 %v4773_v44  ;;  %v4825_v44 = vor.u32 %v6235_v33, %v4822_v34 }
  0xc6   :  { %1651 = vmatpush.bf16.msrb.mxu2 %v4137_v39  ;;  %1666 = vmatmul.bf16.vlgmr.msrb.gmra.mxu0 %v6860_v8  ;;  %v4422_v8 = vld [vmem:[#allocation5 + $0x258] sm:$0xf0]  ;;  %v6892_v61 = vpop.f32.mrf.mxu1 }
  0xc7   :  { %1714 = vmatpush.bf16.msra.mxu0 %v4889_v58  ;;  %v4425_v39 = vor.u32 %v6135_v32, %v4422_v8  ;;  %v6195_v58 = vld [vmem:[#allocation5 + $0x42c] sm:$0xf]  ;;  %v6896_v10 = vpop.f32.mrf.mxu2  ;;  %v6316_v32 = vld [vmem:[#allocation8 + $0x1cc] sm:$0xf0] }
  0xc8   :  { %1673 = vmatpush.bf16.msrb.mxu1 %v4489_v51  ;;  %1624 = vmatmul.bf16.vlgmr.msrb.gmra.mxu3 %v6870_v42  ;;  %v4681_v51 = vor.u32 %v6199_v41, %v4678_v43  ;;  %v4665_v6 = vor.u32 %v6195_v58, %v4662_v59  ;;  %v5120_v43 = vld [vmem:[#allocation8 + $0x1a0] sm:$0xf]  ;;  %v6272_v59 = vld [vmem:[#allocation8 + $0x6c] sm:$0xf0] }
  0xc9   :  { %1686 = vmatpush.bf16.msra.mxu3 %v4633_v47  ;;  %1652 = vmatmul.bf16.vlgmr.msrb.gmra.mxu2 %v6854_v55  ;;  %v4838_v55 = vld [vmem:[#allocation5 + $0x598] sm:$0xf0]  ;;  %v6231_v47 = vld [vmem:[#allocation5 + $0x54c] sm:$0xf]  ;;  %v1401_v33 = vpop.f32.mrf.mxu3  ;;  %v4960_v58 = vld [vmem:[#allocation8 + $0x60] sm:$0xf] }
  0xca   :  { %1700 = vmatpush.bf16.msra.mxu2 %v4761_v48  ;;  %v4841_v31 = vor.u32 %v6239_v23, %v4838_v55  ;;  %v4806_v48 = vld [vmem:[#allocation5 + $0x558] sm:$0xf0]  ;;  %v1361_v30 = vpop.f32.mrf.mxu0 }
  0xcb   :  { %1715 = vmatpush.bf16.msra.mxu0 %v4873_v7  ;;  %v4809_v62 = vor.u32 %v6231_v47, %v4806_v48  ;;  %v6159_v7 = vld [vmem:[#allocation5 + $0x30c] sm:$0xf]  ;;  %v4976_v47 = vld [vmem:[#allocation8 + $0x80] sm:$0xf]  ;;  %v6276_v48 = vld [vmem:[#allocation8 + $0x8c] sm:$0xf0] }
  0xcc   :  { %1674 = vmatpush.bf16.msrb.mxu1 %v4473_v3  ;;  %v6255_v3 = vld [vmem:[#allocation5 + $0x60c] sm:$0xf]  ;;  %v4521_v23 = vor.u32 %v6159_v7, %v4518_v12 }
  0xcd   :  { %1687 = vmatpush.bf16.msra.mxu3 %v4617_v0  ;;  %v4390_v0 = vld [vmem:[#allocation5 + $0x218] sm:$0xf0]  ;;  %v4905_v19 = vor.u32 %v6255_v3, %v4902_v4  ;;  %v4944_v4 = vld [vmem:[#allocation8 + $0x40] sm:$0xf] }
  0xce   :  { %1701 = vmatpush.bf16.msra.mxu2 %v4745_v1  ;;  %v6227_v1 = vld [vmem:[#allocation5 + $0x52c] sm:$0xf]  ;;  %v4393_v11 = vor.u32 %v6127_v63, %v4390_v0  ;;  %v1375_v8 = vpop.f32.mrf.mxu1  ;;  %v5088_v63 = vld [vmem:[#allocation8 + $0x160] sm:$0xf]  ;;  %v6304_v0 = vld [vmem:[#allocation8 + $0x16c] sm:$0xf0] }
  0xcf   :  { %1716 = vmatpush.bf16.msra.mxu0 %v4857_v20  ;;  %v4793_v15 = vor.u32 %v6227_v1, %v4790_v2  ;;  %v4774_v20 = vld [vmem:[#allocation5 + $0x518] sm:$0xf0]  ;;  %v1389_v41 = vpop.f32.mrf.mxu2  ;;  %v4961_v1 = vor.u32 %v6272_v59, %v4960_v58  ;;  %v6348_v58 = vld [vmem:[#allocation8 + $0x2cc] sm:$0xf0]  ;;  %v6274_v59 = vld [vmem:[#allocation8 + $0x84] sm:$0xf] }
  0xd0   :  { %1675 = vmatpush.bf16.msrb.mxu1 %v4457_v16  ;;  %v5024_v16 = vld [vmem:[#allocation8 + $0xe0] sm:$0xf]  ;;  %v4777_v26 = vor.u32 %v6223_v18, %v4774_v20  ;;  %v6264_v18 = vld [vmem:[#allocation8 + $0x2c] sm:$0xf0] }
  0xd1   :  { %1688 = vmatpush.bf16.msra.mxu3 %v4601_v13  ;;  %v6191_v13 = vld [vmem:[#allocation5 + $0x40c] sm:$0xf]  ;;  %v5056_v20 = vld [vmem:[#allocation8 + $0x120] sm:$0xf] }
  0xd2   :  { %1702 = vmatpush.bf16.msra.mxu2 %v4729_v14  ;;  %v4646_v14 = vld [vmem:[#allocation5 + $0x418] sm:$0xf0] }
  0xd3   :  { %1717 = vmatpush.bf16.msra.mxu0 %v4841_v31  ;;  %v4649_v55 = vor.u32 %v6191_v13, %v4646_v14  ;;  %v5136_v31 = vld [vmem:[#allocation8 + $0x1c0] sm:$0xf] }
  0xd4   :  { %1676 = vmatpush.bf16.msrb.mxu1 %v4441_v27  ;;  %v5008_v27 = vld [vmem:[#allocation8 + $0xc0] sm:$0xf]  ;;  %v5137_v40 = vor.u32 %v6316_v32, %v5136_v31  ;;  %v6318_v32 = vld [vmem:[#allocation8 + $0x1e4] sm:$0xf] }
  0xd5   :  { %1689 = vmatpush.bf16.msra.mxu3 %v4585_v24  ;;  %v5025_v24 = vor.u32 %v6288_v17, %v5024_v16  ;;  %v5009_v34 = vor.u32 %v6284_v28, %v5008_v27  ;;  %v4928_v17 = vld [vmem:[#allocation8 + $0x20] sm:$0xf]  ;;  %v6286_v27 = vld [vmem:[#allocation8 + $0xe4] sm:$0xf]  ;;  %v5026_v28 = vld [vmem:[#allocation8 + $0xf0] sm:$0xf0] }
  0xd6   :  { %1703 = vmatpush.bf16.msra.mxu2 %v4713_v25  ;;  %v358_v25 = vperm.slane %v6894_v9, 0 }
  0xd7   :  { %1718 = vmatpush.bf16.msra.mxu0 %v4825_v44  ;;  %v6312_v44 = vld [vmem:[#allocation8 + $0x1ac] sm:$0xf0] }
  0xd8   :  { %1677 = vmatpush.bf16.msrb.mxu1 %v4425_v39  ;;  %v6280_v39 = vld [vmem:[#allocation8 + $0xac] sm:$0xf0] }
  0xd9   :  { %1690 = vmatpush.bf16.msra.mxu3 %v4569_v35  ;;  %v1360_v35 = vadd.f32 %v1359_v53, %v358_v25  ;;  %v6308_v53 = vld [vmem:[#allocation8 + $0x18c] sm:$0xf0] }
  0xda   :  { %1704 = vmatpush.bf16.msra.mxu2 %v4697_v36  ;;  %v1362_v36 = vadd.f32 %v1361_v30, %v358_v25  ;;  %v4912_v25 = vld [vmem:[#allocation8] sm:$0xf]  ;;  %v6292_v30 = vld [vmem:[#allocation8 + $0x10c] sm:$0xf0] }
  0xdb   :  { %1719 = vmatpush.bf16.msra.mxu0 %v4809_v62  ;;  %v1374_v45 = vadd.f32 %v6892_v61, %v1360_v35  ;;  %v1403_v62 = vpop.f32.mrf.mxu3  ;;  %v1443_v61 = vpop.f32.mrf.mxu2 }
  0xdc   :  { %1678 = vmatpush.bf16.msrb.mxu1 %v4409_v56  ;;  %v1376_v46 = vadd.f32 %v1375_v8, %v1362_v36  ;;  %v5154_v8 = vld [vmem:[#allocation8 + $0x1f0] sm:$0xf0]  ;;  %v5029_v36 = vor.u32 %v6286_v27, %v5026_v28  ;;  %v5216_v27 = vld [vmem:[#allocation8 + $0x260] sm:$0xf]  ;;  %v6262_v28 = vld [vmem:[#allocation8 + $0x24] sm:$0xf] }
  0xdd   :  { %1691 = vmatpush.bf16.msra.mxu3 %v4553_v49  ;;  %v5121_v49 = vor.u32 %v6312_v44, %v5120_v43  ;;  %v1388_v57 = vadd.f32 %v6896_v10, %v1374_v45  ;;  %v6300_v10 = vld [vmem:[#allocation8 + $0x14c] sm:$0xf0]  ;;  %v6314_v44 = vld [vmem:[#allocation8 + $0x1c4] sm:$0xf] }
  0xde   :  { %1705 = vmatpush.bf16.msra.mxu2 %v4681_v51 }
  0xdf   :  { %1720 = vmatpush.bf16.msra.mxu0 %v4793_v15  ;;  %v1415_v51 = vpop.f32.mrf.mxu0  ;;  %v1402_v2 = vadd.f32 %v1401_v33, %v1388_v57 }
  0xe0   :  { %1679 = vmatpush.bf16.msrb.mxu1 %v4393_v11  ;;  %v1429_v56 = vpop.f32.mrf.mxu1  ;;  %v5072_v11 = vld [vmem:[#allocation8 + $0x140] sm:$0xf] }
  0xe1   :  { %1692 = vmatpush.bf16.msra.mxu3 %v4537_v5  ;;  %v6268_v5 = vld [vmem:[#allocation8 + $0x4c] sm:$0xf0]  ;;  %v1416_v12 = vadd.f32 %v1415_v51, %v1402_v2  ;;  %v4994_v51 = vld [vmem:[#allocation8 + $0xb0] sm:$0xf0] }
  0xe2   :  { %1706 = vmatpush.bf16.msra.mxu2 %v4665_v6  ;;  %v5089_v6 = vor.u32 %v6304_v0, %v5088_v63  ;;  %v4945_v15 = vor.u32 %v6268_v5, %v4944_v4  ;;  %v5106_v2 = vld [vmem:[#allocation8 + $0x190] sm:$0xf0]  ;;  %v5248_v4 = vld [vmem:[#allocation8 + $0x2a0] sm:$0xf]  ;;  %v6344_v5 = vld [vmem:[#allocation8 + $0x2ac] sm:$0xf0] }
  0xe3   :  { %1680 = vmatmul.bf16.vlgmr.msrb.gmra.mxu1 %v6852_v54  ;;  %1721 = vmatpush.bf16.msra.mxu0 %v4777_v26  ;;  %v4993_v54 = vor.u32 %v6280_v39, %v4992_v38  ;;  %v1430_v22 = vadd.f32 %v1429_v56, %v1416_v12  ;;  %v6260_v26 = vld [vmem:[#allocation8 + $0xc] sm:$0xf0]  ;;  %v6282_v39 = vld [vmem:[#allocation8 + $0xc4] sm:$0xf] }
  0xe4   :  { %1735 = vmatpush.bf16.msra.mxu1 %v4905_v19  ;;  %v5073_v19 = vor.u32 %v6300_v10, %v5072_v11  ;;  %v4913_v33 = vor.u32 %v6260_v26, %v4912_v25  ;;  %v6310_v56 = vld [vmem:[#allocation8 + $0x1a4] sm:$0xf]  ;;  %v5249_v10 = vor.u32 %v6344_v5, %v5248_v4 }
  0xe5   :  { %1693 = vmatpush.bf16.msra.mxu3 %v4521_v23  ;;  %v1445_v23 = vpop.f32.mrf.mxu2  ;;  %v1444_v31 = vadd.f32 %v1443_v61, %v1430_v22  ;;  %v6302_v12 = vld [vmem:[#allocation8 + $0x164] sm:$0xf] }
  0xe6   :  { %1707 = vmatpush.bf16.msra.mxu2 %v4649_v55  ;;  %1722 = vmatmul.bf16.vlgmr.msra.gmra.mxu0 %v6870_v42  ;;  %v5105_v42 = vor.u32 %v6308_v53, %v5104_v52  ;;  %v4929_v55 = vor.u32 %v6264_v18, %v4928_v17  ;;  %v4946_v17 = vld [vmem:[#allocation8 + $0x50] sm:$0xf0]  ;;  %v6298_v22 = vld [vmem:[#allocation8 + $0x144] sm:$0xf] }
  0xe7   :  { %v1417_v7 = vpop.f32.mrf.mxu0  ;;  %v6907_v35 = vpop.f32.mrf.mxu3  ;;  %v1742_v43 = vmax.f32 %v1444_v31, 0.0 }
  0xe8   :  { %2546 = vmatpush.bf16.msrb.mxu1 %v5153_v29  ;;  %1694 = vmatmul.bf16.vlgmr.msra.gmra.mxu3 %v6856_v60  ;;  %v4977_v60 = vor.u32 %v6276_v48, %v4976_v47  ;;  %v1431_v14 = vpop.f32.mrf.mxu1  ;;  %v5040_v29 = vld [vmem:[#allocation8 + $0x100] sm:$0xf]  ;;  %v6352_v48 = vld [vmem:[#allocation8 + $0x2ec] sm:$0xf0] }
  0xe9   :  { %2532 = vmatpush.bf16.msrb.mxu3 %v5025_v24  ;;  %1708 = vmatmul.bf16.vlgmr.msra.gmra.mxu2 %v6868_v37  ;;  %v1390_v37 = vadd.f32 %v1389_v41, %v1376_v46  ;;  %v5041_v38 = vor.u32 %v6292_v30, %v5040_v29  ;;  %v5157_v41 = vor.u32 %v6318_v32, %v5154_v8  ;;  %v5280_v47 = vld [vmem:[#allocation8 + $0x2e0] sm:$0xf]  ;;  %v4930_v29 = vld [vmem:[#allocation8 + $0x30] sm:$0xf0]  ;;  %v6294_v8 = vld [vmem:[#allocation8 + $0x124] sm:$0xf] }
  0xea   :  { %v5281_v53 = vor.u32 %v6352_v48, %v5280_v47  ;;  %v6289_v48 = vld [vmem:[#allocation8 + $0xf4] sm:$0xf0] }
  0xeb   :  { %v1404_v3 = vadd.f32 %v1403_v62, %v1390_v37  ;;  %v5264_v37 = vld [vmem:[#allocation8 + $0x2c0] sm:$0xf] }
  0xec   :  { %2547 = vmatpush.bf16.msrb.mxu1 %v5137_v40  ;;  %v5010_v40 = vld [vmem:[#allocation8 + $0xd0] sm:$0xf0]  ;;  %2560 = vmatpush.bf16.msrb.mxu2 %v5281_v53  ;;  %v5265_v61 = vor.u32 %v6348_v58, %v5264_v37  ;;  %v6328_v37 = vld [vmem:[#allocation8 + $0x22c] sm:$0xf0] }
  0xed   :  { %2533 = vmatpush.bf16.msrb.mxu3 %v5009_v34  ;;  %v1418_v13 = vadd.f32 %v1417_v7, %v1404_v3  ;;  %v5013_v46 = vor.u32 %v6282_v39, %v5010_v40  ;;  %v1471_v63 = vpop.f32.mrf.mxu2  ;;  %v4962_v7 = vld [vmem:[#allocation8 + $0x70] sm:$0xf0]  ;;  %v5200_v39 = vld [vmem:[#allocation8 + $0x240] sm:$0xf]  ;;  %v6332_v40 = vld [vmem:[#allocation8 + $0x24c] sm:$0xf0] }
  0xef   :  { %v1432_v16 = vadd.f32 %v1431_v14, %v1418_v13  ;;  %v1459_v0 = vpop.f32.mrf.mxu3  ;;  %v5090_v13 = vld [vmem:[#allocation8 + $0x170] sm:$0xf0] }
  0xf0   :  { %2548 = vmatpush.bf16.msrb.mxu1 %v5121_v49  ;;  %v6278_v49 = vld [vmem:[#allocation8 + $0xa4] sm:$0xf]  ;;  %2561 = vmatpush.bf16.msrb.mxu2 %v5265_v61  ;;  %v5093_v18 = vor.u32 %v6302_v12, %v5090_v13  ;;  %v5016_v61 = vld [vmem:[#allocation8 + $0xc8] sm:$0xf]  ;;  %v6281_v13 = vld [vmem:[#allocation8 + $0xb4] sm:$0xf0] }
  0xf1   :  { %2534 = vmatpush.bf16.msrb.mxu3 %v4993_v54  ;;  %v1446_v24 = vadd.f32 %v1445_v23, %v1432_v16  ;;  %v5138_v54 = vld [vmem:[#allocation8 + $0x1d0] sm:$0xf0]  ;;  %v4997_v57 = vor.u32 %v6278_v49, %v4994_v51  ;;  %v6266_v16 = vld [vmem:[#allocation8 + $0x44] sm:$0xf]  ;;  %v5000_v12 = vld [vmem:[#allocation8 + $0xa8] sm:$0xf] }
  0xf2   :  { %v5141_v52 = vor.u32 %v6314_v44, %v5138_v54  ;;  %v5074_v23 = vld [vmem:[#allocation8 + $0x150] sm:$0xf0]  ;;  %v4949_v26 = vor.u32 %v6266_v16, %v4946_v17  ;;  %v5032_v44 = vld [vmem:[#allocation8 + $0xe8] sm:$0xf]  ;;  %v6290_v49 = vld [vmem:[#allocation8 + $0x104] sm:$0xf] }
  0xf3   :  { %4909 = vmatmul.msk.bf16.vlgmr.msra.gmra.mxu1 %vm1346_vm0, %v6864_v50  ;;  %v5057_v50 = vor.u32 %v6296_v21, %v5056_v20  ;;  %v1746_v34 = vmax.f32 %v1446_v24, 0.0  ;;  %v359_v24 = vperm.slane %v6894_v9, 1  ;;  %v5077_v30 = vor.u32 %v6298_v22, %v5074_v23  ;;  %v5042_v51 = vld [vmem:[#allocation8 + $0x110] sm:$0xf0] }
  0xf4   :  { %2549 = vmatpush.bf16.msrb.mxu1 %v5105_v42  ;;  %v4978_v42 = vld [vmem:[#allocation8 + $0x90] sm:$0xf0]  ;;  %2562 = vmatpush.bf16.msrb.mxu2 %v5249_v10 }
  0xf5   :  { %2535 = vmatpush.bf16.msrb.mxu3 %v4977_v60  ;;  %v6909_v45 = vpack.c.bf16 %v1746_v34, %v1742_v43  ;;  %v5122_v60 = vld [vmem:[#allocation8 + $0x1b0] sm:$0xf0]  ;;  %v4981_v3 = vor.u32 %v6274_v59, %v4978_v42  ;;  %v1473_v25 = vpop.f32.mrf.mxu2  ;;  %v1458_v34 = vadd.f32 %v6907_v35, %v359_v24  ;;  %v5033_v59 = vor.u32 %v6289_v48, %v5032_v44  ;;  %v4952_v44 = vld [vmem:[#allocation8 + $0x48] sm:$0xf]  ;;  %v6269_v48 = vld [vmem:[#allocation8 + $0x54] sm:$0xf0] }
  0xf6   :  { %v5125_v62 = vor.u32 %v6310_v56, %v5122_v60  ;;  %v4914_v43 = vld [vmem:[#allocation8 + $0x10] sm:$0xf0]  ;;  %v5045_v42 = vor.u32 %v6290_v49, %v5042_v51  ;;  %v6338_v49 = vld [vmem:[#allocation8 + $0x284] sm:$0xf] }
  0xf7   :  { %v5266_v22 = vld [vmem:[#allocation8 + $0x2d0] sm:$0xf0] }
  0xf8   :  { %2550 = vmatpush.bf16.msrb.mxu1 %v5089_v6  ;;  %v6270_v6 = vld [vmem:[#allocation8 + $0x64] sm:$0xf] }
  0xf9   :  { %2536 = vmatpush.bf16.msrb.mxu3 %v4961_v1  ;;  %v6306_v1 = vld [vmem:[#allocation8 + $0x184] sm:$0xf]  ;;  %v4965_v14 = vor.u32 %v6270_v6, %v4962_v7 }
  0xfa   :  { %v5109_v11 = vor.u32 %v6306_v1, %v5106_v2  ;;  %v6350_v7 = vld [vmem:[#allocation8 + $0x2e4] sm:$0xf] }
  0xfc   :  { %2551 = vmatpush.bf16.msrb.mxu1 %v5073_v19  ;;  %v6340_v19 = vld [vmem:[#allocation8 + $0x28c] sm:$0xf0] }
  0xfd   :  { %2537 = vmatpush.bf16.msrb.mxu3 %v4945_v15  ;;  %v5232_v15 = vld [vmem:[#allocation8 + $0x280] sm:$0xf] }
  0xff   :  { %v1485_v20 = vpop.f32.mrf.mxu0 }
 0x100   :  { %2552 = vmatpush.bf16.msrb.mxu1 %v5057_v50  ;;  %v6336_v50 = vld [vmem:[#allocation8 + $0x26c] sm:$0xf0]  ;;  %v1499_v32 = vpop.f32.mrf.mxu1 }
 0x101   :  { %2538 = vmatpush.bf16.msrb.mxu3 %v4929_v55  ;;  %v5233_v55 = vor.u32 %v6340_v19, %v5232_v15  ;;  %v5217_v31 = vor.u32 %v6336_v50, %v5216_v27  ;;  %v4984_v19 = vld [vmem:[#allocation8 + $0x88] sm:$0xf] }
 0x103   :  { %2563 = vmatpush.bf16.msrb.mxu2 %v5233_v55  ;;  %v6277_v55 = vld [vmem:[#allocation8 + $0x94] sm:$0xf0] }
 0x104   :  { %2553 = vmatpush.bf16.msrb.mxu1 %v5041_v38  ;;  %v4933_v38 = vor.u32 %v6262_v28, %v4930_v29  ;;  %v4985_v29 = vor.u32 %v6277_v55, %v4984_v19  ;;  %v6368_v19 = vld [vmem:[#allocation8 + $0x36c] sm:$0xf0]  ;;  %v5034_v55 = vld [vmem:[#allocation8 + $0xf8] sm:$0xf0] }
 0x105   :  { %2539 = vmatpush.bf16.msrb.mxu3 %v4913_v33  ;;  %v5058_v33 = vld [vmem:[#allocation8 + $0x130] sm:$0xf0] }
 0x106   :  { %v5061_v54 = vor.u32 %v6294_v8, %v5058_v33  ;;  %v6273_v33 = vld [vmem:[#allocation8 + $0x74] sm:$0xf0] }
 0x107   :  { %v6912_v21 = vpop.f32.mrf.mxu3  ;;  %2564 = vmatpush.bf16.msrb.mxu2 %v5217_v31  ;;  %v1487_v56 = vpop.f32.mrf.mxu0  ;;  %v6342_v31 = vld [vmem:[#allocation8 + $0x2a4] sm:$0xf] }
 0x108   :  { %2602 = vmatpush.bf16.msra.mxu1 %v5157_v41  ;;  %2540 = vmatmul.bf16.vlgmr.msrb.gmra.mxu3 %v6909_v45  ;;  %v6258_v41 = vld [vmem:[#allocation8 + $0x4] sm:$0xf]  ;;  %v1501_v2 = vpop.f32.mrf.mxu1 }
 0x109   :  { %2588 = vmatpush.bf16.msra.mxu3 %v5029_v36  ;;  %v1460_v36 = vadd.f32 %v1459_v0, %v359_v24  ;;  %v4917_v60 = vor.u32 %v6258_v41, %v4914_v43  ;;  %v6285_v0 = vld [vmem:[#allocation8 + $0xd4] sm:$0xf0] }
 0x10a   :  { %v5017_v5 = vor.u32 %v6285_v0, %v5016_v61  ;;  %v6321_v41 = vld [vmem:[#allocation8 + $0x1f4] sm:$0xf0]  ;;  %v5218_v61 = vld [vmem:[#allocation8 + $0x270] sm:$0xf0] }
 0x10b   :  { %v1474_v53 = vadd.f32 %v1473_v25, %v1460_v36  ;;  %v5408_v25 = vld [vmem:[#allocation8 + $0x3e0] sm:$0xf] }
 0x10c   :  { %2603 = vmatpush.bf16.msra.mxu1 %v5141_v52  ;;  %v1472_v52 = vadd.f32 %v1471_v63, %v1458_v34  ;;  %v1527_v35 = vpop.f32.mrf.mxu2  ;;  %v5168_v63 = vld [vmem:[#allocation8 + $0x200] sm:$0xf] }
 0x10d   :  { %2589 = vmatpush.bf16.msra.mxu3 %v5013_v46  ;;  %v5201_v46 = vor.u32 %v6332_v40, %v5200_v39  ;;  %v1488_v1 = vadd.f32 %v1487_v56, %v1474_v53  ;;  %v5392_v36 = vld [vmem:[#allocation8 + $0x3c0] sm:$0xf]  ;;  %v5160_v40 = vld [vmem:[#allocation8 + $0x1e8] sm:$0xf]  ;;  %v6376_v56 = vld [vmem:[#allocation8 + $0x3ac] sm:$0xf0] }
 0x10e   :  { %v1486_v58 = vadd.f32 %v1485_v20, %v1472_v52  ;;  %v6346_v20 = vld [vmem:[#allocation8 + $0x2c4] sm:$0xf]  ;;  %v5161_v51 = vor.u32 %v6321_v41, %v5160_v40  ;;  %v5234_v52 = vld [vmem:[#allocation8 + $0x290] sm:$0xf0]  ;;  %v5376_v53 = vld [vmem:[#allocation8 + $0x3a0] sm:$0xf] }
 0x10f   :  { %v1515_v47 = vpop.f32.mrf.mxu3  ;;  %2565 = vmatpush.bf16.msrb.mxu2 %v5201_v46  ;;  %v1502_v16 = vadd.f32 %v1501_v2, %v1488_v1  ;;  %v5269_v24 = vor.u32 %v6346_v20, %v5266_v22  ;;  %v6265_v1 = vld [vmem:[#allocation8 + $0x34] sm:$0xf0] }
 0x110   :  { %2604 = vmatpush.bf16.msra.mxu1 %v5125_v62  ;;  %v1500_v4 = vadd.f32 %v1499_v32, %v1486_v58  ;;  %v5250_v32 = vld [vmem:[#allocation8 + $0x2b0] sm:$0xf0]  ;;  %v5377_v58 = vor.u32 %v6376_v56, %v5376_v53  ;;  %v6309_v22 = vld [vmem:[#allocation8 + $0x194] sm:$0xf0]  ;;  %v360_v53 = vperm.slane %v6894_v9, 2 }
 0x111   :  { %2590 = vmatpush.bf16.msra.mxu3 %v4997_v57  ;;  %v5184_v57 = vld [vmem:[#allocation8 + $0x220] sm:$0xf]  ;;  %v1516_v17 = vadd.f32 %v1515_v47, %v1502_v16  ;;  %v5253_v34 = vor.u32 %v6342_v31, %v5250_v32  ;;  %v5112_v16 = vld [vmem:[#allocation8 + $0x188] sm:$0xf]  ;;  %v6305_v31 = vld [vmem:[#allocation8 + $0x174] sm:$0xf0] }
 0x112   :  { %v5185_v62 = vor.u32 %v6328_v37, %v5184_v57  ;;  %v1514_v15 = vadd.f32 %v6912_v21, %v1500_v4  ;;  %v6317_v57 = vld [vmem:[#allocation8 + $0x1d4] sm:$0xf0]  ;;  %v5237_v37 = vor.u32 %v6338_v49, %v5234_v52  ;;  %v5128_v4 = vld [vmem:[#allocation8 + $0x1a8] sm:$0xf]  ;;  %v6283_v32 = vld [vmem:[#allocation8 + $0xcc] sm:$0xf] }
 0x113   :  { %v5002_v49 = vld [vmem:[#allocation8 + $0xb8] sm:$0xf0] }
 0x114   :  { %2605 = vmatpush.bf16.msra.mxu1 %v5109_v11  ;;  %2566 = vmatpush.bf16.msrb.mxu2 %v5185_v62  ;;  %v5282_v11 = vld [vmem:[#allocation8 + $0x2f0] sm:$0xf0]  ;;  %v1529_v23 = vpop.f32.mrf.mxu2  ;;  %v1528_v27 = vadd.f32 %v1527_v35, %v1514_v15  ;;  %v6334_v62 = vld [vmem:[#allocation8 + $0x264] sm:$0xf] }
 0x115   :  { %2591 = vmatpush.bf16.msra.mxu3 %v4981_v3  ;;  %v6324_v3 = vld [vmem:[#allocation8 + $0x20c] sm:$0xf0]  ;;  %v1530_v28 = vadd.f32 %v1529_v23, %v1516_v17  ;;  %v5221_v2 = vor.u32 %v6334_v62, %v5218_v61  ;;  %v6287_v23 = vld [vmem:[#allocation8 + $0xec] sm:$0xf]  ;;  %v4986_v61 = vld [vmem:[#allocation8 + $0x98] sm:$0xf0] }
 0x116   :  { %v5169_v6 = vor.u32 %v6324_v3, %v5168_v63  ;;  %v5360_v63 = vld [vmem:[#allocation8 + $0x380] sm:$0xf]  ;;  %v6372_v3 = vld [vmem:[#allocation8 + $0x38c] sm:$0xf0] }
 0x117   :  { %v1541_v10 = vpop.f32.mrf.mxu3  ;;  %v6356_v62 = vld [vmem:[#allocation8 + $0x30c] sm:$0xf0] }
 0x118   :  { %2606 = vmatpush.bf16.msra.mxu1 %v5093_v18  ;;  %2567 = vmatpush.bf16.msrb.mxu2 %v5169_v6  ;;  %v5001_v18 = vor.u32 %v6281_v13, %v5000_v12  ;;  %v1542_v21 = vadd.f32 %v1541_v10, %v1528_v27  ;;  %v5361_v6 = vor.u32 %v6372_v3, %v5360_v63  ;;  %v6261_v12 = vld [vmem:[#allocation8 + $0x14] sm:$0xf0]  ;;  %v6330_v13 = vld [vmem:[#allocation8 + $0x244] sm:$0xf]  ;;  %v5186_v27 = vld [vmem:[#allocation8 + $0x230] sm:$0xf0] }
 0x119   :  { %2592 = vmatpush.bf16.msra.mxu3 %v4965_v14  ;;  %v5285_v14 = vor.u32 %v6350_v7, %v5282_v11  ;;  %v4920_v11 = vld [vmem:[#allocation8 + $0x8] sm:$0xf] }
 0x11c   :  { %2607 = vmatpush.bf16.msra.mxu1 %v5077_v30  ;;  %2616 = vmatpush.bf16.msra.mxu2 %v5285_v14  ;;  %v4968_v30 = vld [vmem:[#allocation8 + $0x68] sm:$0xf]  ;;  %v5202_v14 = vld [vmem:[#allocation8 + $0x250] sm:$0xf0] }
 0x11d   :  { %2593 = vmatpush.bf16.msra.mxu3 %v4949_v26  ;;  %v6384_v26 = vld [vmem:[#allocation8 + $0x3ec] sm:$0xf0]  ;;  %v4969_v47 = vor.u32 %v6273_v33, %v4968_v30  ;;  %v5205_v17 = vor.u32 %v6330_v13, %v5202_v14 }
 0x11e   :  { %v5409_v50 = vor.u32 %v6384_v26, %v5408_v25  ;;  %v4921_v25 = vor.u32 %v6261_v12, %v4920_v11  ;;  %v6326_v26 = vld [vmem:[#allocation8 + $0x224] sm:$0xf]  ;;  %v6364_v30 = vld [vmem:[#allocation8 + $0x34c] sm:$0xf0]  ;;  %v5048_v11 = vld [vmem:[#allocation8 + $0x108] sm:$0xf] }
 0x11f   :  { %v1543_v8 = vpop.f32.mrf.mxu3  ;;  %v6921_v7 = vpop.f32.mrf.mxu0  ;;  %v5189_v33 = vor.u32 %v6326_v26, %v5186_v27  ;;  %v6271_v12 = vld [vmem:[#allocation8 + $0x6c] sm:$0xf] }
 0x120   :  { %2608 = vmatpush.bf16.msra.mxu1 %v5061_v54  ;;  %2617 = vmatpush.bf16.msra.mxu2 %v5269_v24  ;;  %v1544_v39 = vadd.f32 %v1543_v8, %v1530_v28  ;;  %v1743_v54 = vmax.f32 %v1542_v21, 0.0  ;;  %v1555_v20 = vpop.f32.mrf.mxu1  ;;  %v5037_v28 = vor.u32 %v6287_v23, %v5034_v55  ;;  %v5096_v21 = vld [vmem:[#allocation8 + $0x168] sm:$0xf]  ;;  %v5018_v8 = vld [vmem:[#allocation8 + $0xd8] sm:$0xf0] }
 0x121   :  { %2594 = vmatpush.bf16.msra.mxu3 %v4933_v38  ;;  %2574 = vmatpush.bf16.msrb.mxu0 %v5409_v50  ;;  %v6380_v38 = vld [vmem:[#allocation8 + $0x3cc] sm:$0xf0]  ;;  %v5113_v50 = vor.u32 %v6309_v22, %v5112_v16  ;;  %v5097_v41 = vor.u32 %v6305_v31, %v5096_v21  ;;  %v1556_v63 = vadd.f32 %v1555_v20, %v360_v53  ;;  %v6378_v16 = vld [vmem:[#allocation8 + $0x3c4] sm:$0xf]  ;;  %v6319_v22 = vld [vmem:[#allocation8 + $0x1ec] sm:$0xf] }
 0x122   :  { %v5393_v43 = vor.u32 %v6380_v38, %v5392_v36  ;;  %v1747_v46 = vmax.f32 %v1544_v39, 0.0  ;;  %v6322_v38 = vld [vmem:[#allocation8 + $0x204] sm:$0xf]  ;;  %v5170_v39 = vld [vmem:[#allocation8 + $0x210] sm:$0xf0] }
 0x123   :  { %v5162_v20 = vld [vmem:[#allocation8 + $0x1f8] sm:$0xf0]  ;;  %v6267_v26 = vld [vmem:[#allocation8 + $0x4c] sm:$0xf]  ;;  %v5378_v21 = vld [vmem:[#allocation8 + $0x3b0] sm:$0xf0] }
 0x124   :  { %2609 = vmatpush.bf16.msra.mxu1 %v5045_v42  ;;  %2618 = vmatpush.bf16.msra.mxu2 %v5253_v34  ;;  %v6918_v35 = vpack.c.bf16 %v1747_v46, %v1743_v54  ;;  %v4936_v42 = vld [vmem:[#allocation8 + $0x28] sm:$0xf]  ;;  %v5312_v54 = vld [vmem:[#allocation8 + $0x320] sm:$0xf]  ;;  %v6360_v46 = vld [vmem:[#allocation8 + $0x32c] sm:$0xf0]  ;;  %v5165_v27 = vor.u32 %v6319_v22, %v5162_v20 }
 0x125   :  { %2595 = vmatpush.bf16.msra.mxu3 %v4917_v60  ;;  %2575 = vmatpush.bf16.msrb.mxu0 %v5393_v43  ;;  %v5144_v60 = vld [vmem:[#allocation8 + $0x1c8] sm:$0xf]  ;;  %v4937_v10 = vor.u32 %v6265_v1, %v4936_v42  ;;  %v5021_v43 = vor.u32 %v6283_v32, %v5018_v8  ;;  %v5313_v52 = vor.u32 %v6360_v46, %v5312_v54  ;;  %v5296_v42 = vld [vmem:[#allocation8 + $0x300] sm:$0xf]  ;;  %v6382_v1 = vld [vmem:[#allocation8 + $0x3e4] sm:$0xf] }
 0x126   :  { %2554 = vmatmul.bf16.vlgmr.msrb.gmra.mxu1 %v6918_v35  ;;  %v5145_v0 = vor.u32 %v6317_v57, %v5144_v60  ;;  %v5064_v60 = vld [vmem:[#allocation8 + $0x128] sm:$0xf]  ;;  %v6297_v57 = vld [vmem:[#allocation8 + $0x134] sm:$0xf0]  ;;  %v6315_v31 = vld [vmem:[#allocation8 + $0x1cc] sm:$0xf] }
 0x127   :  { %v6923_v40 = vpop.f32.mrf.mxu0  ;;  %v5146_v32 = vld [vmem:[#allocation8 + $0x1d8] sm:$0xf0]  ;;  %v6358_v22 = vld [vmem:[#allocation8 + $0x324] sm:$0xf]  ;;  %v5314_v20 = vld [vmem:[#allocation8 + $0x330] sm:$0xf0] }
 0x128   :  { %2596 = vmatmul.bf16.vlgmr.msra.gmra.mxu3 %v6909_v45  ;;  %2658 = vmatpush.bf16.msrb.mxu1 %v5161_v51  ;;  %v5173_v51 = vor.u32 %v6322_v38, %v5170_v39  ;;  %v1557_v56 = vpop.f32.mrf.mxu1  ;;  %v5149_v38 = vor.u32 %v6315_v31, %v5146_v32  ;;  %v4938_v39 = vld [vmem:[#allocation8 + $0x38] sm:$0xf0]  ;;  %v361_v31 = vperm.slane %v6894_v9, 3  ;;  %v6295_v32 = vld [vmem:[#allocation8 + $0x12c] sm:$0xf] }
 0x129   :  { %2644 = vmatpush.bf16.msrb.mxu3 %v5033_v59  ;;  %v4953_v59 = vor.u32 %v6269_v48, %v4952_v44  ;;  %2619 = vmatpush.bf16.msra.mxu2 %v5237_v37  ;;  %v5080_v44 = vld [vmem:[#allocation8 + $0x148] sm:$0xf]  ;;  %v6279_v48 = vld [vmem:[#allocation8 + $0xac] sm:$0xf] }
 0x12a   :  { %2576 = vmatpush.bf16.msrb.mxu0 %v5377_v58  ;;  %v5005_v58 = vor.u32 %v6279_v48, %v5002_v49 }
 0x12b   :  { %v1569_v36 = vpop.f32.mrf.mxu3 }
 0x12c   :  { %2659 = vmatpush.bf16.msrb.mxu1 %v5145_v0  ;;  %v5297_v0 = vor.u32 %v6356_v62, %v5296_v42  ;;  %v1597_v13 = vpop.f32.mrf.mxu2  ;;  %v6307_v42 = vld [vmem:[#allocation8 + $0x18c] sm:$0xf]  ;;  %v5114_v62 = vld [vmem:[#allocation8 + $0x198] sm:$0xf0] }
 0x12d   :  { %2645 = vmatpush.bf16.msrb.mxu3 %v5017_v5  ;;  %v6313_v5 = vld [vmem:[#allocation8 + $0x1b4] sm:$0xf0]  ;;  %2620 = vmatpush.bf16.msra.mxu2 %v5221_v2  ;;  %v5410_v2 = vld [vmem:[#allocation8 + $0x3f0] sm:$0xf0] }
 0x12e   :  { %v5129_v15 = vor.u32 %v6313_v5, %v5128_v4  ;;  %2577 = vmatpush.bf16.msrb.mxu0 %v5361_v6  ;;  %v5413_v3 = vor.u32 %v6382_v1, %v5410_v2  ;;  %v5065_v5 = vor.u32 %v6297_v57, %v5064_v60  ;;  %v4922_v57 = vld [vmem:[#allocation8 + $0x18] sm:$0xf0] }
 0x12f   :  { %v6928_v4 = vpop.f32.mrf.mxu0 }
 0x130   :  { %2660 = vmatpush.bf16.msrb.mxu1 %v5129_v15  ;;  %v4970_v15 = vld [vmem:[#allocation8 + $0x78] sm:$0xf0] }
 0x131   :  { %2646 = vmatpush.bf16.msrb.mxu3 %v5001_v18  ;;  %v5344_v18 = vld [vmem:[#allocation8 + $0x360] sm:$0xf]  ;;  %2621 = vmatpush.bf16.msra.mxu2 %v5205_v17  ;;  %v5394_v17 = vld [vmem:[#allocation8 + $0x3d0] sm:$0xf0] }
 0x132   :  { %v5345_v24 = vor.u32 %v6368_v19, %v5344_v18  ;;  %v1570_v18 = vadd.f32 %v1569_v36, %v1556_v63  ;;  %v1558_v19 = vadd.f32 %v1557_v56, %v360_v53  ;;  %v5397_v23 = vor.u32 %v6378_v16, %v5394_v17  ;;  %v6259_v53 = vld [vmem:[#allocation8 + $0xc] sm:$0xf]  ;;  %v5288_v16 = vld [vmem:[#allocation8 + $0x2e8] sm:$0xf]  ;;  %v6353_v17 = vld [vmem:[#allocation8 + $0x2f4] sm:$0xf0] }
 0x133   :  { %v1571_v14 = vpop.f32.mrf.mxu3  ;;  %v4925_v1 = vor.u32 %v6259_v53, %v4922_v57  ;;  %v5117_v63 = vor.u32 %v6307_v42, %v5114_v62  ;;  %v6337_v53 = vld [vmem:[#allocation8 + $0x274] sm:$0xf0]  ;;  %v5208_v62 = vld [vmem:[#allocation8 + $0x248] sm:$0xf] }
 0x134   :  { %2578 = vmatpush.bf16.msrb.mxu0 %v5345_v24  ;;  %2661 = vmatpush.bf16.msrb.mxu1 %v5113_v50  ;;  %v4954_v50 = vld [vmem:[#allocation8 + $0x58] sm:$0xf0]  ;;  %v1599_v49 = vpop.f32.mrf.mxu2 }
 0x135   :  { %2647 = vmatpush.bf16.msrb.mxu3 %v4985_v29  ;;  %v5328_v29 = vld [vmem:[#allocation8 + $0x340] sm:$0xf]  ;;  %2622 = vmatpush.bf16.msra.mxu2 %v5189_v33  ;;  %v4957_v33 = vor.u32 %v6267_v26, %v4954_v50  ;;  %v5289_v26 = vor.u32 %v6353_v17, %v5288_v16  ;;  %v5272_v50 = vld [vmem:[#allocation8 + $0x2c8] sm:$0xf]  ;;  %v6351_v17 = vld [vmem:[#allocation8 + $0x2ec] sm:$0xf] }
 0x136   :  { %v5329_v34 = vor.u32 %v6364_v30, %v5328_v29  ;;  %2610 = vmatmul.bf16.vlgmr.msra.gmra.mxu1 %v6918_v35  ;;  %v1584_v29 = vadd.f32 %v6921_v7, %v1570_v18  ;;  %v1572_v30 = vadd.f32 %v1571_v14, %v1558_v19  ;;  %v6311_v7 = vld [vmem:[#allocation8 + $0x1ac] sm:$0xf] }
 0x137   :  { %v1641_v46 = vpop.f32.mrf.mxu0 }
 0x138   :  { %2579 = vmatpush.bf16.msrb.mxu0 %v5329_v34  ;;  %2662 = vmatpush.bf16.msrb.mxu1 %v5097_v41  ;;  %v6263_v34 = vld [vmem:[#allocation8 + $0x2c] sm:$0xf]  ;;  %v6370_v41 = vld [vmem:[#allocation8 + $0x384] sm:$0xf]  ;;  %v1586_v54 = vadd.f32 %v6923_v40, %v1572_v30  ;;  %v5298_v30 = vld [vmem:[#allocation8 + $0x310] sm:$0xf0] }
 0x139   :  { %2648 = vmatpush.bf16.msrb.mxu3 %v4969_v47  ;;  %v6301_v47 = vld [vmem:[#allocation8 + $0x154] sm:$0xf0]  ;;  %2623 = vmatpush.bf16.msra.mxu2 %v5173_v51 }
 0x13a   :  { %v5081_v37 = vor.u32 %v6301_v47, %v5080_v44  ;;  %v1598_v44 = vadd.f32 %v1597_v13, %v1584_v29  ;;  %v5130_v47 = vld [vmem:[#allocation8 + $0x1b8] sm:$0xf0]  ;;  %v6354_v29 = vld [vmem:[#allocation8 + $0x304] sm:$0xf] }
 0x13b   :  { %v5133_v60 = vor.u32 %v6311_v7, %v5130_v47  ;;  %v5240_v7 = vld [vmem:[#allocation8 + $0x288] sm:$0xf]  ;;  %v6341_v47 = vld [vmem:[#allocation8 + $0x294] sm:$0xf0] }
 0x13c   :  { %2580 = vmatpush.bf16.msrb.mxu0 %v5313_v52  ;;  %2663 = vmatpush.bf16.msrb.mxu1 %v5081_v37  ;;  %v4941_v52 = vor.u32 %v6263_v34, %v4938_v39  ;;  %v6366_v37 = vld [vmem:[#allocation8 + $0x364] sm:$0xf] }
 0x13d   :  { %2649 = vmatpush.bf16.msrb.mxu3 %v4953_v59  ;;  %v6275_v59 = vld [vmem:[#allocation8 + $0x8c] sm:$0xf] }
 0x13e   :  { %v4989_v6 = vor.u32 %v6275_v59, %v4986_v61  ;;  %v1600_v59 = vadd.f32 %v1599_v49, %v1586_v54  ;;  %v5050_v54 = vld [vmem:[#allocation8 + $0x118] sm:$0xf0] }
 0x140   :  { %2581 = vmatpush.bf16.msrb.mxu0 %v5297_v0  ;;  %v1611_v55 = vpop.f32.mrf.mxu1  ;;  %2664 = vmatpush.bf16.msrb.mxu1 %v5065_v5  ;;  %v5330_v5 = vld [vmem:[#allocation8 + $0x350] sm:$0xf0] }
 0x141   :  { %2650 = vmatpush.bf16.msrb.mxu3 %v4937_v10  ;;  %v6293_v10 = vld [vmem:[#allocation8 + $0x114] sm:$0xf0]  ;;  %v1612_v51 = vadd.f32 %v1611_v55, %v1598_v44  ;;  %v6291_v44 = vld [vmem:[#allocation8 + $0x10c] sm:$0xf] }
 0x142   :  { %v5049_v24 = vor.u32 %v6293_v10, %v5048_v11  ;;  %v6303_v10 = vld [vmem:[#allocation8 + $0x16c] sm:$0xf] }
 0x144   :  { %2630 = vmatpush.bf16.msra.mxu0 %v5413_v3  ;;  %2665 = vmatpush.bf16.msrb.mxu1 %v5049_v24  ;;  %v6362_v3 = vld [vmem:[#allocation8 + $0x344] sm:$0xf]  ;;  %v6299_v24 = vld [vmem:[#allocation8 + $0x14c] sm:$0xf] }
 0x145   :  { %2651 = vmatpush.bf16.msrb.mxu3 %v4921_v25  ;;  %v4973_v25 = vor.u32 %v6271_v12, %v4970_v15  ;;  %v5098_v12 = vld [vmem:[#allocation8 + $0x178] sm:$0xf0]  ;;  %v5333_v13 = vor.u32 %v6362_v3, %v5330_v5  ;;  %v1667_v15 = vpop.f32.mrf.mxu0  ;;  %v6329_v3 = vld [vmem:[#allocation8 + $0x234] sm:$0xf0] }
 0x146   :  { %v5101_v19 = vor.u32 %v6303_v10, %v5098_v12 }
 0x147   :  { %2666 = vmatmul.bf16.vlgmr.msrb.gmra.mxu1 %v6918_v35 }
 0x148   :  { %2652 = vmatmul.bf16.vlgmr.msrb.gmra.mxu3 %v6909_v45  ;;  %2631 = vmatpush.bf16.msra.mxu0 %v5397_v23  ;;  %v1613_v56 = vpop.f32.mrf.mxu1 }
 0x149   :  { %2700 = vmatpush.bf16.msra.mxu3 %v5037_v28  ;;  %v6374_v28 = vld [vmem:[#allocation8 + $0x3a4] sm:$0xf]  ;;  %2714 = vmatpush.bf16.msra.mxu1 %v5165_v27  ;;  %v1614_v0 = vadd.f32 %v1613_v56, %v1600_v59 }
 0x14a   :  { %v5381_v8 = vor.u32 %v6374_v28, %v5378_v21  ;;  %v6349_v28 = vld [vmem:[#allocation8 + $0x2d4] sm:$0xf0] }
 0x14b   :  { %v1625_v36 = vpop.f32.mrf.mxu3  ;;  %v5273_v34 = vor.u32 %v6349_v28, %v5272_v50  ;;  %v5416_v50 = vld [vmem:[#allocation8 + $0x3e8] sm:$0xf]  ;;  %v6385_v28 = vld [vmem:[#allocation8 + $0x3f4] sm:$0xf0] }
 0x14c   :  { %2632 = vmatpush.bf16.msra.mxu0 %v5381_v8  ;;  %v1626_v40 = vadd.f32 %v1625_v36, %v1612_v51  ;;  %v1653_v18 = vpop.f32.mrf.mxu2  ;;  %v5066_v8 = vld [vmem:[#allocation8 + $0x138] sm:$0xf0]  ;;  %v6345_v36 = vld [vmem:[#allocation8 + $0x2b4] sm:$0xf0]  ;;  %v5241_v51 = vor.u32 %v6341_v47, %v5240_v7  ;;  %v5368_v47 = vld [vmem:[#allocation8 + $0x388] sm:$0xf] }
 0x14d   :  { %2701 = vmatpush.bf16.msra.mxu3 %v5021_v43  ;;  %v5362_v43 = vld [vmem:[#allocation8 + $0x390] sm:$0xf0]  ;;  %2715 = vmatpush.bf16.msra.mxu1 %v5149_v38  ;;  %v5069_v39 = vor.u32 %v6295_v32, %v5066_v8  ;;  %v6343_v32 = vld [vmem:[#allocation8 + $0x2ac] sm:$0xf]  ;;  %v5258_v8 = vld [vmem:[#allocation8 + $0x2b8] sm:$0xf0] }
 0x14e   :  { %v5365_v48 = vor.u32 %v6370_v41, %v5362_v43  ;;  %v1654_v41 = vadd.f32 %v1653_v18, %v361_v31  ;;  %v1669_v43 = vpop.f32.mrf.mxu0  ;;  %v5290_v18 = vld [vmem:[#allocation8 + $0x2f8] sm:$0xf0] }
 0x14f   :  { %v5226_v7 = vld [vmem:[#allocation8 + $0x278] sm:$0xf0] }
 0x150   :  { %2633 = vmatpush.bf16.msra.mxu0 %v5365_v48  ;;  %v5053_v48 = vor.u32 %v6291_v44, %v5050_v54  ;;  %v1668_v49 = vadd.f32 %v1667_v15, %v1654_v41  ;;  %v5176_v15 = vld [vmem:[#allocation8 + $0x208] sm:$0xf]  ;;  %v5242_v41 = vld [vmem:[#allocation8 + $0x298] sm:$0xf0]  ;;  %v6377_v44 = vld [vmem:[#allocation8 + $0x3b4] sm:$0xf0] }
 0x151   :  { %2702 = vmatpush.bf16.msra.mxu3 %v5005_v58  ;;  %v5346_v58 = vld [vmem:[#allocation8 + $0x370] sm:$0xf0]  ;;  %2716 = vmatpush.bf16.msra.mxu1 %v5133_v60 }
 0x152   :  { %v5349_v61 = vor.u32 %v6366_v37, %v5346_v58 }
 0x153   :  { %v1627_v2 = vpop.f32.mrf.mxu3 }
 0x154   :  { %v1628_v11 = vadd.f32 %v1627_v2, %v1614_v0  ;;  %2634 = vmatpush.bf16.msra.mxu0 %v5349_v61  ;;  %v6333_v61 = vld [vmem:[#allocation8 + $0x254] sm:$0xf0] }
 0x155   :  { %2703 = vmatpush.bf16.msra.mxu3 %v4989_v6  ;;  %v1640_v6 = vadd.f32 %v6928_v4, %v1626_v40  ;;  %2717 = vmatpush.bf16.msra.mxu1 %v5117_v63  ;;  %v5317_v4 = vor.u32 %v6358_v22, %v5314_v20  ;;  %v5192_v63 = vld [vmem:[#allocation8 + $0x228] sm:$0xf] }
 0x156   :  { %v1642_v14 = vadd.f32 %v1641_v46, %v1628_v11  ;;  %v1655_v46 = vpop.f32.mrf.mxu2  ;;  %v5193_v12 = vor.u32 %v6329_v3, %v5192_v63  ;;  %v6361_v63 = vld [vmem:[#allocation8 + $0x334] sm:$0xf0] }
 0x157   :  { %v1744_v23 = vmax.f32 %v1640_v6, 0.0  ;;  %v1656_v37 = vadd.f32 %v1655_v46, %v361_v31  ;;  %v5417_v31 = vor.u32 %v6385_v28, %v5416_v50  ;;  %v6416_v50 = vld [vmem:[#allocation11 + $0xec] sm:$0xf0] }
 0x158   :  { %v1748_v55 = vmax.f32 %v1642_v14, 0.0  ;;  %2635 = vmatpush.bf16.msra.mxu0 %v5333_v13 }
 0x159   :  { %2704 = vmatpush.bf16.msra.mxu3 %v4973_v25  ;;  %v5082_v25 = vld [vmem:[#allocation8 + $0x158] sm:$0xf0]  ;;  %2718 = vmatpush.bf16.msra.mxu1 %v5101_v19  ;;  %v1670_v0 = vadd.f32 %v1669_v43, %v1656_v37  ;;  %v5384_v43 = vld [vmem:[#allocation8 + $0x3a8] sm:$0xf] }
 0x15a   :  { %v6935_v27 = vpack.c.bf16 %v1748_v55, %v1744_v23  ;;  %v5085_v21 = vor.u32 %v6299_v24, %v5082_v25  ;;  %v5293_v55 = vor.u32 %v6351_v17, %v5290_v18  ;;  %v6347_v25 = vld [vmem:[#allocation8 + $0x2cc] sm:$0xf]  ;;  %v5385_v46 = vor.u32 %v6377_v44, %v5384_v43  ;;  %v5386_v18 = vld [vmem:[#allocation8 + $0x3b8] sm:$0xf0]  ;;  %v5488_v44 = vld [vmem:[#allocation11 + $0x80] sm:$0xf] }
 0x15b   :  { %v6375_v17 = vld [vmem:[#allocation8 + $0x3ac] sm:$0xf] }
 0x15c   :  { %2568 = vmatmul.bf16.vlgmr.msrb.gmra.mxu2 %v6935_v27  ;;  %2636 = vmatpush.bf16.msra.mxu0 %v5317_v4  ;;  %v5274_v4 = vld [vmem:[#allocation8 + $0x2d8] sm:$0xf0] }
 0x15d   :  { %2705 = vmatpush.bf16.msra.mxu3 %v4957_v33  ;;  %v5301_v33 = vor.u32 %v6354_v29, %v5298_v30  ;;  %2672 = vmatpush.bf16.msrb.mxu2 %v5289_v26  ;;  %v5277_v30 = vor.u32 %v6347_v25, %v5274_v4  ;;  %v5338_v4 = vld [vmem:[#allocation8 + $0x358] sm:$0xf0] }
 0x15e   :  { %2719 = vmatpush.bf16.msra.mxu1 %v5085_v21 }
 0x160   :  { %v1681_v38 = vpop.f32.mrf.mxu1  ;;  %2637 = vmatpush.bf16.msra.mxu0 %v5301_v33 }
 0x161   :  { %2706 = vmatpush.bf16.msra.mxu3 %v4941_v52  ;;  %2673 = vmatpush.bf16.msrb.mxu2 %v5273_v34  ;;  %v5224_v52 = vld [vmem:[#allocation8 + $0x268] sm:$0xf]  ;;  %v1682_v60 = vadd.f32 %v1681_v38, %v1668_v49 }
 0x162   :  { %2720 = vmatpush.bf16.msra.mxu1 %v5069_v39  ;;  %v5225_v59 = vor.u32 %v6337_v53, %v5224_v52  ;;  %v5400_v34 = vld [vmem:[#allocation8 + $0x3c8] sm:$0xf]  ;;  %v6339_v39 = vld [vmem:[#allocation8 + $0x28c] sm:$0xf]  ;;  %v5210_v53 = vld [vmem:[#allocation8 + $0x258] sm:$0xf0] }
 0x163   :  { %v1723_v40 = vpop.f32.mrf.mxu0  ;;  %v5245_v54 = vor.u32 %v6339_v39, %v5242_v41  ;;  %v6331_v52 = vld [vmem:[#allocation8 + $0x24c] sm:$0xf]  ;;  %v6408_v39 = vld [vmem:[#allocation11 + $0xac] sm:$0xf0] }
 0x165   :  { %2707 = vmatpush.bf16.msra.mxu3 %v4925_v1  ;;  %v5209_v1 = vor.u32 %v6333_v61, %v5208_v62 }
 0x166   :  { %2721 = vmatpush.bf16.msra.mxu1 %v5053_v48  ;;  %v6373_v48 = vld [vmem:[#allocation8 + $0x394] sm:$0xf0] }
 0x168   :  { %2708 = vmatmul.bf16.vlgmr.msra.gmra.mxu3 %v6909_v45  ;;  %v5256_v45 = vld [vmem:[#allocation8 + $0x2a8] sm:$0xf]  ;;  %v1683_v56 = vpop.f32.mrf.mxu1 }
 0x169   :  { %v5257_v9 = vor.u32 %v6345_v36, %v5256_v45  ;;  %2722 = vmatmul.bf16.vlgmr.msra.gmra.mxu1 %v6918_v35  ;;  %v1684_v5 = vadd.f32 %v1683_v56, %v1670_v0  ;;  %v6325_v35 = vld [vmem:[#allocation8 + $0x214] sm:$0xf0]  ;;  %v5261_v36 = vor.u32 %v6343_v32, %v5258_v8  ;;  %v5352_v56 = vld [vmem:[#allocation8 + $0x368] sm:$0xf]  ;;  %v6323_v0 = vld [vmem:[#allocation8 + $0x20c] sm:$0xf] }
 0x16a   :  { %v5177_v20 = vor.u32 %v6325_v35, %v5176_v15  ;;  %v6381_v45 = vld [vmem:[#allocation8 + $0x3d4] sm:$0xf0]  ;;  %v6379_v15 = vld [vmem:[#allocation8 + $0x3cc] sm:$0xf]  ;;  %v5402_v35 = vld [vmem:[#allocation8 + $0x3d8] sm:$0xf0] }
 0x16b   :  { %2674 = vmatpush.bf16.msrb.mxu2 %v5257_v9  ;;  %v1695_v57 = vpop.f32.mrf.mxu3  ;;  %v1725_v19 = vpop.f32.mrf.mxu0  ;;  %v5401_v38 = vor.u32 %v6381_v45, %v5400_v34  ;;  %v6335_v9 = vld [vmem:[#allocation8 + $0x26c] sm:$0xf]  ;;  %v5306_v8 = vld [vmem:[#allocation8 + $0x318] sm:$0xf0]  ;;  %v5520_v34 = vld [vmem:[#allocation11 + $0xc0] sm:$0xf] }
 0x16c   :  { %v1709_v58 = vpop.f32.mrf.mxu2  ;;  %v1696_v42 = vadd.f32 %v1695_v57, %v1682_v60  ;;  %2624 = vmatmul.bf16.vlgmr.msra.gmra.mxu2 %v6935_v27  ;;  %v5229_v49 = vor.u32 %v6335_v9, %v5226_v7  ;;  %v6369_v60 = vld [vmem:[#allocation8 + $0x374] sm:$0xf0]  ;;  %v5213_v57 = vor.u32 %v6331_v52, %v5210_v53  ;;  %v6355_v32 = vld [vmem:[#allocation8 + $0x30c] sm:$0xf]  ;;  %v6412_v45 = vld [vmem:[#allocation11 + $0xcc] sm:$0xf0] }
 0x16d   :  { %v5353_v37 = vor.u32 %v6369_v60, %v5352_v56  ;;  %v5309_v41 = vor.u32 %v6355_v32, %v5306_v8  ;;  %v5472_v9 = vld [vmem:[#allocation11 + $0x60] sm:$0xf]  ;;  %v6400_v7 = vld [vmem:[#allocation11 + $0x6c] sm:$0xf0] }
 0x16e   :  { %v1710_v2 = vadd.f32 %v1709_v58, %v1696_v42  ;;  %v6327_v58 = vld [vmem:[#allocation8 + $0x22c] sm:$0xf]  ;;  %v6365_v42 = vld [vmem:[#allocation8 + $0x354] sm:$0xf0]  ;;  %v5456_v52 = vld [vmem:[#allocation11 + $0x40] sm:$0xf] }
 0x16f   :  { %2675 = vmatpush.bf16.msrb.mxu2 %v5241_v51  ;;  %v5369_v51 = vor.u32 %v6373_v48, %v5368_v47  ;;  %v5664_v47 = vld [vmem:[#allocation11 + $0x1e0] sm:$0xf]  ;;  %v5473_v48 = vor.u32 %v6400_v7, %v5472_v9  ;;  %v6396_v53 = vld [vmem:[#allocation11 + $0x4c] sm:$0xf0]  ;;  %v5666_v9 = vld [vmem:[#allocation11 + $0x1f0] sm:$0xf0] }
 0x170   :  { %v1737_v6 = vpop.f32.mrf.mxu1  ;;  %v1724_v13 = vadd.f32 %v1723_v40, %v1710_v2  ;;  %v5336_v40 = vld [vmem:[#allocation8 + $0x348] sm:$0xf]  ;;  %v5648_v56 = vld [vmem:[#allocation11 + $0x1c0] sm:$0xf]  ;;  %v5457_v60 = vor.u32 %v6396_v53, %v5456_v52  ;;  %v5458_v52 = vld [vmem:[#allocation11 + $0x50] sm:$0xf0] }
 0x171   :  { %v5337_v61 = vor.u32 %v6365_v42, %v5336_v40  ;;  %v5320_v2 = vld [vmem:[#allocation8 + $0x328] sm:$0xf]  ;;  %v6440_v42 = vld [vmem:[#allocation11 + $0x1ac] sm:$0xf0] }
 0x172   :  { %v1738_v23 = vadd.f32 %v1737_v6, %v1724_v13  ;;  %v5304_v6 = vld [vmem:[#allocation8 + $0x308] sm:$0xf] }
 0x173   :  { %2676 = vmatpush.bf16.msrb.mxu2 %v5225_v59  ;;  %v1697_v11 = vpop.f32.mrf.mxu3  ;;  %v5194_v59 = vld [vmem:[#allocation8 + $0x238] sm:$0xf0]  ;;  %v6442_v53 = vld [vmem:[#allocation11 + $0x1c4] sm:$0xf] }
 0x174   :  { %v1698_v10 = vadd.f32 %v1697_v11, %v1684_v5  ;;  %v1711_v14 = vpop.f32.mrf.mxu2  ;;  %v1745_v21 = vmax.f32 %v1738_v23, 0.0  ;;  %v5197_v62 = vor.u32 %v6327_v58, %v5194_v59  ;;  %v5321_v5 = vor.u32 %v6361_v63, %v5320_v2  ;;  %v6357_v11 = vld [vmem:[#allocation8 + $0x314] sm:$0xf0]  ;;  %v5440_v58 = vld [vmem:[#allocation11 + $0x20] sm:$0xf] }
 0x175   :  { %v5305_v13 = vor.u32 %v6357_v11, %v5304_v6  ;;  %v5632_v59 = vld [vmem:[#allocation11 + $0x1a0] sm:$0xf]  ;;  %v6436_v63 = vld [vmem:[#allocation11 + $0x18c] sm:$0xf0] }
 0x176   :  { %v1712_v16 = vadd.f32 %v1711_v14, %v1698_v10  ;;  %v6383_v10 = vld [vmem:[#allocation8 + $0x3ec] sm:$0xf] }
 0x177   :  { %2677 = vmatpush.bf16.msrb.mxu2 %v5209_v1  ;;  %v5178_v1 = vld [vmem:[#allocation8 + $0x218] sm:$0xf0] }
 0x178   :  { %v1726_v22 = vadd.f32 %v1725_v19, %v1712_v16  ;;  %v1739_v24 = vpop.f32.mrf.mxu1  ;;  %v5181_v3 = vor.u32 %v6323_v0, %v5178_v1  ;;  %v5405_v16 = vor.u32 %v6379_v15, %v5402_v35  ;;  %v5389_v19 = vor.u32 %v6375_v17, %v5386_v18  ;;  %v6388_v0 = vld [vmem:[#allocation11 + $0xc] sm:$0xf0]  ;;  %v5616_v1 = vld [vmem:[#allocation11 + $0x180] sm:$0xf]  ;;  %v6410_v35 = vld [vmem:[#allocation11 + $0xc4] sm:$0xf] }
 0x179   :  { %v5617_v6 = vor.u32 %v6436_v63, %v5616_v1  ;;  %v6480_v15 = vld [vmem:[#allocation11 + $0x2ec] sm:$0xf0]  ;;  %v5696_v1 = vld [vmem:[#allocation11 + $0x220] sm:$0xf] }
 0x17a   :  { %v1740_v26 = vadd.f32 %v1739_v24, %v1726_v22  ;;  %v6371_v22 = vld [vmem:[#allocation8 + $0x38c] sm:$0xf]  ;;  %v5354_v24 = vld [vmem:[#allocation8 + $0x378] sm:$0xf0] }
 0x17b   :  { %2678 = vmatpush.bf16.msrb.mxu2 %v5193_v12  ;;  %v5418_v12 = vld [vmem:[#allocation8 + $0x3f8] sm:$0xf0] }
 0x17c   :  { %v1749_v29 = vmax.f32 %v1740_v26, 0.0  ;;  %v5421_v14 = vor.u32 %v6383_v10, %v5418_v12  ;;  %v5536_v26 = vld [vmem:[#allocation11 + $0xe0] sm:$0xf]  ;;  %v6432_v12 = vld [vmem:[#allocation11 + $0x16c] sm:$0xf0] }
 0x17d   :  { %v5600_v10 = vld [vmem:[#allocation11 + $0x160] sm:$0xf] }
 0x17e   :  { %v6941_v33 = vpack.c.bf16 %v1749_v29, %v1745_v21  ;;  %v5537_v21 = vor.u32 %v6416_v50, %v5536_v26  ;;  %v6359_v29 = vld [vmem:[#allocation8 + $0x32c] sm:$0xf]  ;;  %v5568_v26 = vld [vmem:[#allocation11 + $0x120] sm:$0xf]  ;;  %v6424_v50 = vld [vmem:[#allocation11 + $0x12c] sm:$0xf0] }
 0x17f   :  { %2679 = vmatpush.bf16.msrb.mxu2 %v5177_v20  ;;  %v5370_v20 = vld [vmem:[#allocation8 + $0x398] sm:$0xf0] }
 0x180   :  { %2582 = vmatmul.bf16.vlgmr.msrb.gmra.mxu0 %v6941_v33  ;;  %v5373_v23 = vor.u32 %v6371_v22, %v5370_v20  ;;  %3546 = vmatpush.bf16.msrb.mxu3 %v5537_v21  ;;  %v6428_v22 = vld [vmem:[#allocation11 + $0x14c] sm:$0xf0]  ;;  %v5776_v20 = vld [vmem:[#allocation11 + $0x2c0] sm:$0xf]  ;;  %v5569_v21 = vor.u32 %v6424_v50, %v5568_v26 }
 0x181   :  { %2686 = vmatpush.bf16.msrb.mxu0 %v5417_v31  ;;  %v6508_v26 = vld [vmem:[#allocation11 + $0x3cc] sm:$0xf0] }
 0x182   :  { %2680 = vmatmul.bf16.vlgmr.msrb.gmra.mxu2 %v6935_v27 }
 0x183   :  { %2728 = vmatpush.bf16.msra.mxu2 %v5293_v55  ;;  %v6367_v55 = vld [vmem:[#allocation8 + $0x36c] sm:$0xf] }
 0x184   :  { %v5357_v25 = vor.u32 %v6367_v55, %v5354_v24  ;;  %v6406_v55 = vld [vmem:[#allocation11 + $0xa4] sm:$0xf]  ;;  %v5506_v24 = vld [vmem:[#allocation11 + $0xb0] sm:$0xf0] }
 0x185   :  { %2687 = vmatpush.bf16.msrb.mxu0 %v5401_v38  ;;  %v5504_v38 = vld [vmem:[#allocation11 + $0xa0] sm:$0xf] }
 0x186   :  { %v5505_v43 = vor.u32 %v6408_v39, %v5504_v38  ;;  %v6468_v39 = vld [vmem:[#allocation11 + $0x28c] sm:$0xf0] }
 0x187   :  { %2729 = vmatpush.bf16.msra.mxu2 %v5277_v30  ;;  %v5322_v30 = vld [vmem:[#allocation8 + $0x338] sm:$0xf0] }
 0x188   :  { %v5325_v31 = vor.u32 %v6359_v29, %v5322_v30  ;;  %v6472_v29 = vld [vmem:[#allocation11 + $0x2ac] sm:$0xf0]  ;;  %v6402_v30 = vld [vmem:[#allocation11 + $0x84] sm:$0xf] }
 0x189   :  { %2688 = vmatpush.bf16.msrb.mxu0 %v5385_v46 }
 0x18b   :  { %2730 = vmatpush.bf16.msra.mxu2 %v5261_v36  ;;  %v5521_v36 = vor.u32 %v6412_v45, %v5520_v34  ;;  %v5552_v34 = vld [vmem:[#allocation11 + $0x100] sm:$0xf]  ;;  %v6420_v45 = vld [vmem:[#allocation11 + $0x10c] sm:$0xf0] }
 0x18c   :  { %v5553_v38 = vor.u32 %v6420_v45, %v5552_v34  ;;  %v6504_v34 = vld [vmem:[#allocation11 + $0x3ac] sm:$0xf0] }
 0x18d   :  { %2689 = vmatpush.bf16.msrb.mxu0 %v5369_v51  ;;  %3547 = vmatpush.bf16.msrb.mxu3 %v5521_v36  ;;  %v5744_v36 = vld [vmem:[#allocation11 + $0x280] sm:$0xf] }
 0x18f   :  { %2731 = vmatpush.bf16.msra.mxu2 %v5245_v54  ;;  %v6404_v54 = vld [vmem:[#allocation11 + $0x8c] sm:$0xf0] }
 0x190   :  { %2638 = vmatmul.bf16.vlgmr.msra.gmra.mxu0 %v6941_v33  ;;  %v5489_v46 = vor.u32 %v6404_v54, %v5488_v44  ;;  %v5745_v44 = vor.u32 %v6468_v39, %v5744_v36  ;;  %v6422_v36 = vld [vmem:[#allocation11 + $0x124] sm:$0xf] }
 0x191   :  { %2690 = vmatpush.bf16.msrb.mxu0 %v5353_v37  ;;  %3548 = vmatpush.bf16.msrb.mxu3 %v5505_v43  ;;  %v5474_v43 = vld [vmem:[#allocation11 + $0x70] sm:$0xf0]  ;;  %v6470_v39 = vld [vmem:[#allocation11 + $0x2a4] sm:$0xf] }
 0x193   :  { %2732 = vmatpush.bf16.msra.mxu2 %v5229_v49  ;;  %v6448_v49 = vld [vmem:[#allocation11 + $0x1ec] sm:$0xf0] }
 0x194   :  { %v5665_v51 = vor.u32 %v6448_v49, %v5664_v47  ;;  %v5728_v47 = vld [vmem:[#allocation11 + $0x260] sm:$0xf] }
 0x195   :  { %2691 = vmatpush.bf16.msrb.mxu0 %v5337_v61  ;;  %3549 = vmatpush.bf16.msrb.mxu3 %v5489_v46  ;;  %v5424_v61 = vld [vmem:[#allocation11] sm:$0xf]  ;;  %v6446_v46 = vld [vmem:[#allocation11 + $0x1e4] sm:$0xf] }
 0x196   :  { %3560 = vmatpush.bf16.msrb.mxu1 %v5665_v51  ;;  %v5425_v2 = vor.u32 %v6388_v0, %v5424_v61  ;;  %v5669_v7 = vor.u32 %v6446_v46, %v5666_v9  ;;  %v6394_v51 = vld [vmem:[#allocation11 + $0x44] sm:$0xf]  ;;  %v5634_v61 = vld [vmem:[#allocation11 + $0x1b0] sm:$0xf0]  ;;  %v5872_v9 = vld [vmem:[#allocation11 + $0x380] sm:$0xf] }
 0x197   :  { %2733 = vmatpush.bf16.msra.mxu2 %v5213_v57  ;;  %v6444_v57 = vld [vmem:[#allocation11 + $0x1cc] sm:$0xf0] }
 0x198   :  { %v5649_v37 = vor.u32 %v6444_v57, %v5648_v56  ;;  %v5461_v56 = vor.u32 %v6394_v51, %v5458_v52  ;;  %v6418_v51 = vld [vmem:[#allocation11 + $0x104] sm:$0xf]  ;;  %v5554_v52 = vld [vmem:[#allocation11 + $0x110] sm:$0xf0] }
 0x199   :  { %2692 = vmatpush.bf16.msrb.mxu0 %v5321_v5  ;;  %3550 = vmatpush.bf16.msrb.mxu3 %v5473_v48  ;;  %v5538_v5 = vld [vmem:[#allocation11 + $0xf0] sm:$0xf0]  ;;  %v6464_v48 = vld [vmem:[#allocation11 + $0x26c] sm:$0xf0] }
 0x19a   :  { %3561 = vmatpush.bf16.msrb.mxu1 %v5649_v37  ;;  %v5729_v49 = vor.u32 %v6464_v48, %v5728_v47  ;;  %v5712_v37 = vld [vmem:[#allocation11 + $0x240] sm:$0xf] }
 0x19b   :  { %2734 = vmatpush.bf16.msra.mxu2 %v5197_v62  ;;  %v5633_v62 = vor.u32 %v6440_v42, %v5632_v59  ;;  %v6390_v59 = vld [vmem:[#allocation11 + $0x24] sm:$0xf] }
 0x19c   :  { %v6438_v42 = vld [vmem:[#allocation11 + $0x1a4] sm:$0xf] }
 0x19d   :  { %2693 = vmatpush.bf16.msrb.mxu0 %v5305_v13  ;;  %3551 = vmatpush.bf16.msrb.mxu3 %v5457_v60  ;;  %v5792_v13 = vld [vmem:[#allocation11 + $0x2e0] sm:$0xf]  ;;  %v5650_v60 = vld [vmem:[#allocation11 + $0x1d0] sm:$0xf0]  ;;  %v5637_v0 = vor.u32 %v6438_v42, %v5634_v61  ;;  %v6462_v42 = vld [vmem:[#allocation11 + $0x264] sm:$0xf] }
 0x19e   :  { %3562 = vmatpush.bf16.msrb.mxu1 %v5633_v62  ;;  %v5793_v17 = vor.u32 %v6480_v15, %v5792_v13  ;;  %v5653_v57 = vor.u32 %v6442_v53, %v5650_v60  ;;  %v5680_v13 = vld [vmem:[#allocation11 + $0x200] sm:$0xf]  ;;  %v6466_v53 = vld [vmem:[#allocation11 + $0x284] sm:$0xf]  ;;  %v5557_v60 = vor.u32 %v6418_v51, %v5554_v52  ;;  %v6409_v51 = vld [vmem:[#allocation11 + $0xb4] sm:$0xf0] }
 0x19f   :  { %2735 = vmatpush.bf16.msra.mxu2 %v5181_v3  ;;  %v6414_v3 = vld [vmem:[#allocation11 + $0xe4] sm:$0xf]  ;;  %v5920_v15 = vld [vmem:[#allocation11 + $0x3e0] sm:$0xf] }
 0x1a0   :  { %2694 = vmatmul.bf16.vlgmr.msrb.gmra.mxu0 %v6941_v33  ;;  %v5541_v11 = vor.u32 %v6414_v3, %v5538_v5  ;;  %v6386_v3 = vld [vmem:[#allocation11 + $0x4] sm:$0xf]  ;;  %v5426_v5 = vld [vmem:[#allocation11 + $0x10] sm:$0xf0] }
 0x1a1   :  { %2742 = vmatpush.bf16.msra.mxu0 %v5421_v14  ;;  %v5601_v14 = vor.u32 %v6432_v12, %v5600_v10  ;;  %v5618_v10 = vld [vmem:[#allocation11 + $0x190] sm:$0xf0]  ;;  %v6506_v52 = vld [vmem:[#allocation11 + $0x3c4] sm:$0xf] }
 0x1a2   :  { %2736 = vmatmul.bf16.vlgmr.msra.gmra.mxu2 %v6935_v27  ;;  %v6363_v27 = vld [vmem:[#allocation8 + $0x34c] sm:$0xf]  ;;  %3563 = vmatpush.bf16.msrb.mxu1 %v5617_v6  ;;  %v6434_v6 = vld [vmem:[#allocation11 + $0x184] sm:$0xf] }
 0x1a3   :  { %v5341_v28 = vor.u32 %v6363_v27, %v5338_v4  ;;  %3574 = vmatpush.bf16.msrb.mxu2 %v5793_v17  ;;  %v5509_v4 = vor.u32 %v6406_v55, %v5506_v24  ;;  %v5621_v12 = vor.u32 %v6434_v6, %v5618_v10  ;;  %v6512_v17 = vld [vmem:[#allocation11 + $0x3ec] sm:$0xf0]  ;;  %v5794_v55 = vld [vmem:[#allocation11 + $0x2f0] sm:$0xf0]  ;;  %v2541_v24 = vpop.f32.mrf.mxu3  ;;  %v6458_v10 = vld [vmem:[#allocation11 + $0x244] sm:$0xf] }
 0x1a5   :  { %2743 = vmatpush.bf16.msra.mxu0 %v5405_v16  ;;  %v5522_v16 = vld [vmem:[#allocation11 + $0xd0] sm:$0xf0] }
 0x1a6   :  { %v5525_v18 = vor.u32 %v6410_v35, %v5522_v16  ;;  %3564 = vmatpush.bf16.msrb.mxu1 %v5601_v14  ;;  %v6452_v14 = vld [vmem:[#allocation11 + $0x20c] sm:$0xf0]  ;;  %v6949_v35 = vpop.f32.mrf.mxu1 }
 0x1a7   :  { %v5681_v16 = vor.u32 %v6452_v14, %v5680_v13 }
 0x1a9   :  { %2744 = vmatpush.bf16.msra.mxu0 %v5389_v19  ;;  %v5584_v19 = vld [vmem:[#allocation11 + $0x140] sm:$0xf] }
 0x1ab   :  { %v2543_v47 = vpop.f32.mrf.mxu3 }
 0x1ad   :  { %2745 = vmatpush.bf16.msra.mxu0 %v5373_v23  ;;  %v6476_v23 = vld [vmem:[#allocation11 + $0x2cc] sm:$0xf0] }
 0x1ae   :  { %v5777_v27 = vor.u32 %v6476_v23, %v5776_v20  ;;  %v6478_v23 = vld [vmem:[#allocation11 + $0x2e4] sm:$0xf] }
 0x1b0   :  { %3575 = vmatpush.bf16.msrb.mxu2 %v5777_v27  ;;  %v5797_v27 = vor.u32 %v6478_v23, %v5794_v55  ;;  %v6454_v23 = vld [vmem:[#allocation11 + $0x224] sm:$0xf]  ;;  %v5698_v55 = vld [vmem:[#allocation11 + $0x230] sm:$0xf0] }
 0x1b1   :  { %2746 = vmatpush.bf16.msra.mxu0 %v5357_v25  ;;  %v5585_v25 = vor.u32 %v6428_v22, %v5584_v19  ;;  %v5602_v19 = vld [vmem:[#allocation11 + $0x170] sm:$0xf0]  ;;  %v5921_v22 = vor.u32 %v6512_v17, %v5920_v15 }
 0x1b3   :  { %3565 = vmatpush.bf16.msrb.mxu1 %v5585_v25 }
 0x1b5   :  { %2747 = vmatpush.bf16.msra.mxu0 %v5341_v28  ;;  %v5760_v28 = vld [vmem:[#allocation11 + $0x2a0] sm:$0xf] }
 0x1b6   :  { %v5761_v32 = vor.u32 %v6472_v29, %v5760_v28  ;;  %v6426_v28 = vld [vmem:[#allocation11 + $0x144] sm:$0xf] }
 0x1b7   :  { %3566 = vmatpush.bf16.msrb.mxu1 %v5569_v21  ;;  %v5586_v21 = vld [vmem:[#allocation11 + $0x150] sm:$0xf0]  ;;  %v6474_v29 = vld [vmem:[#allocation11 + $0x2c4] sm:$0xf] }
 0x1b8   :  { %3576 = vmatpush.bf16.msrb.mxu2 %v5761_v32 }
 0x1b9   :  { %2748 = vmatpush.bf16.msra.mxu0 %v5325_v31  ;;  %v5490_v31 = vld [vmem:[#allocation11 + $0x90] sm:$0xf0] }
 0x1ba   :  { %v5493_v8 = vor.u32 %v6402_v30, %v5490_v31  ;;  %v5589_v30 = vor.u32 %v6426_v28, %v5586_v21  ;;  %v5778_v31 = vld [vmem:[#allocation11 + $0x2d0] sm:$0xf0]  ;;  %v5808_v21 = vld [vmem:[#allocation11 + $0x300] sm:$0xf] }
 0x1bb   :  { %3567 = vmatpush.bf16.msrb.mxu1 %v5553_v38  ;;  %v5781_v32 = vor.u32 %v6474_v29, %v5778_v31  ;;  %v5570_v38 = vld [vmem:[#allocation11 + $0x130] sm:$0xf0]  ;;  %v6484_v29 = vld [vmem:[#allocation11 + $0x30c] sm:$0xf0] }
 0x1bc   :  { %3577 = vmatpush.bf16.msrb.mxu2 %v5745_v44  ;;  %v6953_v44 = vld [vmem:[#allocation10] sm:$0xf]  ;;  %v5809_v31 = vor.u32 %v6484_v29, %v5808_v21 }
 0x1bd   :  { %2749 = vmatpush.bf16.msra.mxu0 %v5309_v41  ;;  %v6398_v41 = vld [vmem:[#allocation11 + $0x64] sm:$0xf] }
 0x1be   :  { %v5477_v54 = vor.u32 %v6398_v41, %v5474_v43  ;;  %v5573_v41 = vor.u32 %v6422_v36, %v5570_v38  ;;  %v5762_v43 = vld [vmem:[#allocation11 + $0x2b0] sm:$0xf0]  ;;  %v5528_v36 = vld [vmem:[#allocation11 + $0xc8] sm:$0xf]  ;;  %v6413_v38 = vld [vmem:[#allocation11 + $0xd4] sm:$0xf0] }
 0x1bf   :  { %3616 = vmatpush.bf16.msra.mxu1 %v5669_v7  ;;  %v5765_v46 = vor.u32 %v6470_v39, %v5762_v43  ;;  %v6500_v7 = vld [vmem:[#allocation11 + $0x38c] sm:$0xf0] }
 0x1c0   :  { %2750 = vmatmul.bf16.vlgmr.msra.gmra.mxu0 %v6941_v33  ;;  %v6392_v33 = vld [vmem:[#allocation11 + $0x2c] sm:$0xf0]  ;;  %3578 = vmatpush.bf16.msrb.mxu2 %v5729_v49  ;;  %v5873_v49 = vor.u32 %v6500_v7, %v5872_v9 }
 0x1c1   :  { %v5441_v40 = vor.u32 %v6392_v33, %v5440_v58  ;;  %v6460_v58 = vld [vmem:[#allocation11 + $0x24c] sm:$0xf0]  ;;  %3588 = vmatpush.bf16.msrb.mxu0 %v5921_v22 }
 0x1c2   :  { %v5713_v33 = vor.u32 %v6460_v58, %v5712_v37  ;;  %v5856_v58 = vld [vmem:[#allocation11 + $0x360] sm:$0xf]  ;;  %v6488_v22 = vld [vmem:[#allocation11 + $0x32c] sm:$0xf0] }
 0x1c3   :  { %3552 = vmatpush.bf16.msrb.mxu3 %v5441_v40  ;;  %3617 = vmatpush.bf16.msra.mxu1 %v5653_v57  ;;  %v5442_v40 = vld [vmem:[#allocation11 + $0x30] sm:$0xf0] }
 0x1c4   :  { %v5445_v62 = vor.u32 %v6390_v59, %v5442_v40  ;;  %3579 = vmatpush.bf16.msrb.mxu2 %v5713_v33  ;;  %v5746_v57 = vld [vmem:[#allocation11 + $0x290] sm:$0xf0]  ;;  %v6496_v33 = vld [vmem:[#allocation11 + $0x36c] sm:$0xf0] }
 0x1c5   :  { %v5749_v37 = vor.u32 %v6466_v53, %v5746_v57  ;;  %v5857_v40 = vor.u32 %v6496_v33, %v5856_v58  ;;  %v5906_v53 = vld [vmem:[#allocation11 + $0x3d0] sm:$0xf0]  ;;  %v5496_v58 = vld [vmem:[#allocation11 + $0x88] sm:$0xf] }
 0x1c7   :  { %3553 = vmatpush.bf16.msrb.mxu3 %v5425_v2  ;;  %v6456_v2 = vld [vmem:[#allocation11 + $0x22c] sm:$0xf0]  ;;  %3618 = vmatpush.bf16.msra.mxu1 %v5637_v0 }
 0x1c8   :  { %v5697_v63 = vor.u32 %v6456_v2, %v5696_v1 }
 0x1ca   :  { %3580 = vmatpush.bf16.msrb.mxu2 %v5697_v63  ;;  %v5840_v63 = vld [vmem:[#allocation11 + $0x340] sm:$0xf] }
 0x1cb   :  { %3602 = vmatpush.bf16.msra.mxu3 %v5541_v11  ;;  %v5429_v11 = vor.u32 %v6386_v3, %v5426_v5  ;;  %3619 = vmatpush.bf16.msra.mxu1 %v5621_v12  ;;  %v6492_v3 = vld [vmem:[#allocation11 + $0x34c] sm:$0xf0]  ;;  %v2597_v5 = vpop.f32.mrf.mxu3  ;;  %v5714_v12 = vld [vmem:[#allocation11 + $0x250] sm:$0xf0] }
 0x1cc   :  { %v5717_v15 = vor.u32 %v6458_v10, %v5714_v12  ;;  %v6401_v10 = vld [vmem:[#allocation11 + $0x74] sm:$0xf0] }
 0x1ce   :  { %3581 = vmatpush.bf16.msrb.mxu2 %v5681_v16 }
 0x1cf   :  { %3603 = vmatpush.bf16.msra.mxu3 %v5525_v18  ;;  %v6430_v18 = vld [vmem:[#allocation11 + $0x164] sm:$0xf] }
 0x1d0   :  { %v5605_v20 = vor.u32 %v6430_v18, %v5602_v19  ;;  %v5824_v19 = vld [vmem:[#allocation11 + $0x320] sm:$0xf] }
 0x1d2   :  { %3620 = vmatpush.bf16.msra.mxu1 %v5605_v20  ;;  %3630 = vmatpush.bf16.msra.mxu2 %v5797_v27  ;;  %v5825_v20 = vor.u32 %v6488_v22, %v5824_v19  ;;  %v5544_v27 = vld [vmem:[#allocation11 + $0xe8] sm:$0xf] }
 0x1d3   :  { %3604 = vmatpush.bf16.msra.mxu3 %v5509_v4  ;;  %v5904_v4 = vld [vmem:[#allocation11 + $0x3c0] sm:$0xf]  ;;  %v2599_v43 = vpop.f32.mrf.mxu3 }
 0x1d4   :  { %v5905_v50 = vor.u32 %v6508_v26, %v5904_v4  ;;  %v6417_v4 = vld [vmem:[#allocation11 + $0xf4] sm:$0xf0]  ;;  %v5701_v26 = vor.u32 %v6454_v23, %v5698_v55  ;;  %v5464_v23 = vld [vmem:[#allocation11 + $0x48] sm:$0xf] }
 0x1d5   :  { %v6397_v55 = vld [vmem:[#allocation11 + $0x54] sm:$0xf0] }
 0x1d6   :  { %3589 = vmatpush.bf16.msrb.mxu0 %v5905_v50  ;;  %3621 = vmatpush.bf16.msra.mxu1 %v5589_v30  ;;  %v1885_v50 = vperm.slane %v6953_v44, 1  ;;  %v5545_v30 = vor.u32 %v6417_v4, %v5544_v27  ;;  %v6445_v4 = vld [vmem:[#allocation11 + $0x1d4] sm:$0xf0]  ;;  %v5465_v29 = vor.u32 %v6397_v55, %v5464_v23  ;;  %v6407_v55 = vld [vmem:[#allocation11 + $0xac] sm:$0xf] }
 0x1d7   :  { %3605 = vmatpush.bf16.msra.mxu3 %v5493_v8  ;;  %v5888_v8 = vld [vmem:[#allocation11 + $0x3a0] sm:$0xf]  ;;  %3631 = vmatpush.bf16.msra.mxu2 %v5781_v32  ;;  %v6450_v32 = vld [vmem:[#allocation11 + $0x204] sm:$0xf]  ;;  %v6477_v23 = vld [vmem:[#allocation11 + $0x2d4] sm:$0xf0] }
 0x1d8   :  { %v5889_v45 = vor.u32 %v6504_v34, %v5888_v8  ;;  %v5682_v8 = vld [vmem:[#allocation11 + $0x210] sm:$0xf0]  ;;  %v6510_v34 = vld [vmem:[#allocation11 + $0x3e4] sm:$0xf] }
 0x1d9   :  { %v5685_v39 = vor.u32 %v6450_v32, %v5682_v8  ;;  %v6393_v32 = vld [vmem:[#allocation11 + $0x34] sm:$0xf0]  ;;  %v5640_v8 = vld [vmem:[#allocation11 + $0x1a8] sm:$0xf] }
 0x1da   :  { %3590 = vmatpush.bf16.msrb.mxu0 %v5889_v45  ;;  %3622 = vmatpush.bf16.msra.mxu1 %v5573_v41  ;;  %v5922_v41 = vld [vmem:[#allocation11 + $0x3f0] sm:$0xf0] }
 0x1db   :  { %3606 = vmatpush.bf16.msra.mxu3 %v5477_v54  ;;  %v2557_v54 = vpop.f32.mrf.mxu1  ;;  %3632 = vmatpush.bf16.msra.mxu2 %v5765_v46  ;;  %v5925_v46 = vor.u32 %v6510_v34, %v5922_v41 }
 0x1de   :  { %3591 = vmatpush.bf16.msrb.mxu0 %v5873_v49  ;;  %3623 = vmatpush.bf16.msra.mxu1 %v5557_v60  ;;  %v2598_v49 = vadd.f32 %v2597_v5, %v1885_v50  ;;  %v2600_v60 = vadd.f32 %v2599_v43, %v1885_v50  ;;  %v5858_v50 = vld [vmem:[#allocation11 + $0x370] sm:$0xf0] }
 0x1df   :  { %3607 = vmatpush.bf16.msra.mxu3 %v5461_v56  ;;  %v6951_v25 = vpop.f32.mrf.mxu2  ;;  %v1884_v56 = vperm.slane %v6953_v44, 0  ;;  %3633 = vmatpush.bf16.msra.mxu2 %v5749_v37 }
 0x1e1   :  { %v2542_v61 = vadd.f32 %v2541_v24, %v1884_v56  ;;  %v2544_v1 = vadd.f32 %v2543_v47, %v1884_v56  ;;  %v5529_v47 = vor.u32 %v6413_v38, %v5528_v36  ;;  %v5909_v56 = vor.u32 %v6506_v52, %v5906_v53  ;;  %v6441_v36 = vld [vmem:[#allocation11 + $0x1b4] sm:$0xf0]  ;;  %v6490_v38 = vld [vmem:[#allocation11 + $0x344] sm:$0xf] }
 0x1e2   :  { %3592 = vmatpush.bf16.msrb.mxu0 %v5857_v40  ;;  %v6405_v40 = vld [vmem:[#allocation11 + $0x94] sm:$0xf0] }
 0x1e3   :  { %3608 = vmatpush.bf16.msra.mxu3 %v5445_v62  ;;  %v5730_v62 = vld [vmem:[#allocation11 + $0x270] sm:$0xf0]  ;;  %v2556_v2 = vadd.f32 %v6949_v35, %v2542_v61  ;;  %v2611_v6 = vpop.f32.mrf.mxu1  ;;  %v2558_v13 = vadd.f32 %v2557_v54, %v2544_v1  ;;  %v2653_v61 = vpop.f32.mrf.mxu3  ;;  %v5497_v5 = vor.u32 %v6405_v40, %v5496_v58  ;;  %v5546_v58 = vld [vmem:[#allocation11 + $0xf8] sm:$0xf0] }
 0x1e4   :  { %v5733_v0 = vor.u32 %v6462_v42, %v5730_v62  ;;  %v2612_v57 = vadd.f32 %v2611_v6, %v2598_v49  ;;  %v6502_v42 = vld [vmem:[#allocation11 + $0x3a4] sm:$0xf]  ;;  %v5890_v62 = vld [vmem:[#allocation11 + $0x3b0] sm:$0xf0]  ;;  %v5672_v6 = vld [vmem:[#allocation11 + $0x1e8] sm:$0xf] }
 0x1e5   :  { %v2570_v14 = vadd.f32 %v6951_v25, %v2556_v2  ;;  %v6389_v49 = vld [vmem:[#allocation11 + $0x14] sm:$0xf0] }
 0x1e6   :  { %3634 = vmatpush.bf16.msra.mxu2 %v5733_v0  ;;  %v5893_v0 = vor.u32 %v6502_v42, %v5890_v62 }
 0x1e7   :  { %3609 = vmatpush.bf16.msra.mxu3 %v5429_v11  ;;  %v2571_v48 = vpop.f32.mrf.mxu2  ;;  %v5841_v11 = vor.u32 %v6492_v3, %v5840_v63 }
 0x1e8   :  { %v2572_v17 = vadd.f32 %v2571_v48, %v2558_v13  ;;  %v5512_v48 = vld [vmem:[#allocation11 + $0xa8] sm:$0xf]  ;;  %v6449_v13 = vld [vmem:[#allocation11 + $0x1f4] sm:$0xf0] }
 0x1e9   :  { %3593 = vmatpush.bf16.msrb.mxu0 %v5841_v11  ;;  %v5513_v37 = vor.u32 %v6409_v51, %v5512_v48  ;;  %v5480_v11 = vld [vmem:[#allocation11 + $0x68] sm:$0xf] }
 0x1ea   :  { %3635 = vmatpush.bf16.msra.mxu2 %v5717_v15  ;;  %v5874_v15 = vld [vmem:[#allocation11 + $0x390] sm:$0xf0]  ;;  %v5432_v48 = vld [vmem:[#allocation11 + $0x8] sm:$0xf] }
 0x1eb   :  { %v2613_v54 = vpop.f32.mrf.mxu1  ;;  %v5624_v51 = vld [vmem:[#allocation11 + $0x188] sm:$0xf]  ;;  %v5433_v62 = vor.u32 %v6389_v49, %v5432_v48  ;;  %v5674_v48 = vld [vmem:[#allocation11 + $0x1f8] sm:$0xf0] }
 0x1ec   :  { %v2614_v33 = vadd.f32 %v2613_v54, %v2600_v60  ;;  %v6486_v60 = vld [vmem:[#allocation11 + $0x324] sm:$0xf] }
 0x1ed   :  { %3594 = vmatpush.bf16.msrb.mxu0 %v5825_v20  ;;  %v5673_v20 = vor.u32 %v6449_v13, %v5672_v6  ;;  %v6411_v6 = vld [vmem:[#allocation11 + $0xcc] sm:$0xf] }
 0x1ee   :  { %3636 = vmatpush.bf16.msra.mxu2 %v5701_v26  ;;  %v6494_v26 = vld [vmem:[#allocation11 + $0x364] sm:$0xf] }
 0x1ef   :  { %v2625_v16 = vpop.f32.mrf.mxu2 }
 0x1f1   :  { %3595 = vmatpush.bf16.msrb.mxu0 %v5809_v31  ;;  %v5448_v31 = vld [vmem:[#allocation11 + $0x28] sm:$0xf] }
 0x1f2   :  { %3637 = vmatpush.bf16.msra.mxu2 %v5685_v39  ;;  %v5842_v39 = vld [vmem:[#allocation11 + $0x350] sm:$0xf0] }
 0x1f3   :  { %v2667_v63 = vpop.f32.mrf.mxu1  ;;  %v5845_v43 = vor.u32 %v6490_v38, %v5842_v39  ;;  %v5560_v39 = vld [vmem:[#allocation11 + $0x108] sm:$0xf] }
 0x1f5   :  { %3644 = vmatpush.bf16.msra.mxu0 %v5925_v46 }
 0x1f7   :  { %v2627_v9 = vpop.f32.mrf.mxu2 }
 0x1f8   :  { %v2628_v1 = vadd.f32 %v2627_v9, %v2614_v33 }
 0x1f9   :  { %3645 = vmatpush.bf16.msra.mxu0 %v5909_v56  ;;  %v6437_v56 = vld [vmem:[#allocation11 + $0x194] sm:$0xf0] }
 0x1fb   :  { %v2669_v41 = vpop.f32.mrf.mxu1 }
 0x1fd   :  { %v2583_v59 = vpop.f32.mrf.mxu0  ;;  %3646 = vmatpush.bf16.msra.mxu0 %v5893_v0  ;;  %v5608_v0 = vld [vmem:[#allocation11 + $0x168] sm:$0xf] }
 0x1fe   :  { %v2584_v18 = vadd.f32 %v2583_v59, %v2570_v14  ;;  %v2626_v59 = vadd.f32 %v2625_v16, %v2612_v57  ;;  %v6498_v14 = vld [vmem:[#allocation11 + $0x384] sm:$0xf]  ;;  %v5826_v57 = vld [vmem:[#allocation11 + $0x330] sm:$0xf0] }
 0x1ff   :  { %v5829_v33 = vor.u32 %v6486_v60, %v5826_v57  ;;  %v6465_v57 = vld [vmem:[#allocation11 + $0x274] sm:$0xf0] }
 0x200   :  { %v2756_v28 = vmax.f32 %v2584_v18, 0.0  ;;  %v1886_v18 = vperm.slane %v6953_v44, 2 }
 0x202   :  { %v2654_v34 = vadd.f32 %v2653_v61, %v1886_v18  ;;  %v5625_v61 = vor.u32 %v6437_v56, %v5624_v51  ;;  %v1887_v51 = vperm.slane %v6953_v44, 3  ;;  %v5736_v56 = vld [vmem:[#allocation11 + $0x268] sm:$0xf] }
 0x204   :  { %v2668_v46 = vadd.f32 %v2667_v63, %v2654_v34  ;;  %v2723_v34 = vpop.f32.mrf.mxu1 }
 0x205   :  { %v2585_v35 = vpop.f32.mrf.mxu0  ;;  %v2681_v16 = vpop.f32.mrf.mxu2 }
 0x206   :  { %v2586_v24 = vadd.f32 %v2585_v35, %v2572_v17  ;;  %v5877_v17 = vor.u32 %v6498_v14, %v5874_v15  ;;  %v5481_v35 = vor.u32 %v6401_v10, %v5480_v11  ;;  %v2682_v53 = vadd.f32 %v2681_v16, %v2668_v46  ;;  %v5810_v11 = vld [vmem:[#allocation11 + $0x310] sm:$0xf0]  ;;  %v6481_v10 = vld [vmem:[#allocation11 + $0x2f4] sm:$0xf0]  ;;  %v6399_v46 = vld [vmem:[#allocation11 + $0x6c] sm:$0xf] }
 0x208   :  { %v2760_v25 = vmax.f32 %v2586_v24, 0.0  ;;  %v5656_v24 = vld [vmem:[#allocation11 + $0x1c8] sm:$0xf]  ;;  %3647 = vmatpush.bf16.msra.mxu0 %v5877_v17 }
 0x20a   :  { %v6959_v45 = vpack.c.bf16 %v2760_v25, %v2756_v28  ;;  %v5861_v28 = vor.u32 %v6494_v26, %v5858_v50  ;;  %v2655_v25 = vpop.f32.mrf.mxu3 }
 0x20b   :  { %v2656_v54 = vadd.f32 %v2655_v25, %v1886_v18  ;;  %v6425_v25 = vld [vmem:[#allocation11 + $0x134] sm:$0xf0] }
 0x20c   :  { %3554 = vmatmul.bf16.vlgmr.msrb.gmra.mxu3 %v6959_v45  ;;  %3648 = vmatpush.bf16.msra.mxu0 %v5861_v28  ;;  %v5576_v28 = vld [vmem:[#allocation11 + $0x128] sm:$0xf] }
 0x20d   :  { %3658 = vmatpush.bf16.msrb.mxu3 %v5545_v30  ;;  %v2639_v7 = vpop.f32.mrf.mxu0  ;;  %v5657_v30 = vor.u32 %v6445_v4, %v5656_v24  ;;  %v2683_v9 = vpop.f32.mrf.mxu2  ;;  %v2670_v52 = vadd.f32 %v2669_v41, %v2656_v54  ;;  %v5514_v24 = vld [vmem:[#allocation11 + $0xb8] sm:$0xf0]  ;;  %v6421_v41 = vld [vmem:[#allocation11 + $0x114] sm:$0xf0] }
 0x20e   :  { %v2640_v2 = vadd.f32 %v2639_v7, %v2626_v59  ;;  %v5449_v7 = vor.u32 %v6393_v32, %v5448_v31  ;;  %v5517_v50 = vor.u32 %v6407_v55, %v5514_v24  ;;  %v5498_v31 = vld [vmem:[#allocation11 + $0x98] sm:$0xf0]  ;;  %v6469_v54 = vld [vmem:[#allocation11 + $0x294] sm:$0xf0]  ;;  %v5561_v49 = vor.u32 %v6421_v41, %v5560_v39  ;;  %v6435_v55 = vld [vmem:[#allocation11 + $0x18c] sm:$0xf] }
 0x20f   :  { %v2684_v59 = vadd.f32 %v2683_v9, %v2670_v52  ;;  %v5482_v9 = vld [vmem:[#allocation11 + $0x78] sm:$0xf0] }
 0x210   :  { %v2757_v19 = vmax.f32 %v2640_v2, 0.0  ;;  %3649 = vmatpush.bf16.msra.mxu0 %v5845_v43  ;;  %v5752_v43 = vld [vmem:[#allocation11 + $0x288] sm:$0xf]  ;;  %v5626_v24 = vld [vmem:[#allocation11 + $0x198] sm:$0xf0] }
 0x211   :  { %3659 = vmatpush.bf16.msrb.mxu3 %v5529_v47  ;;  %v5641_v47 = vor.u32 %v6441_v36, %v5640_v8  ;;  %v5577_v8 = vor.u32 %v6425_v25, %v5576_v28  ;;  %v5753_v52 = vor.u32 %v6469_v54, %v5752_v43  ;;  %v5802_v39 = vld [vmem:[#allocation11 + $0x2f8] sm:$0xf0] }
 0x212   :  { %v2709_v32 = vpop.f32.mrf.mxu3 }
 0x213   :  { %v2710_v44 = vadd.f32 %v2709_v32, %v1887_v51  ;;  %v5928_v32 = vld [vmem:[#allocation11 + $0x3e8] sm:$0xf] }
 0x214   :  { %3650 = vmatpush.bf16.msra.mxu0 %v5829_v33  ;;  %v6443_v33 = vld [vmem:[#allocation11 + $0x1cc] sm:$0xf] }
 0x215   :  { %3660 = vmatpush.bf16.msrb.mxu3 %v5513_v37  ;;  %v2641_v3 = vpop.f32.mrf.mxu0  ;;  %v6415_v37 = vld [vmem:[#allocation11 + $0xec] sm:$0xf] }
 0x216   :  { %v2642_v12 = vadd.f32 %v2641_v3, %v2628_v1  ;;  %v6433_v1 = vld [vmem:[#allocation11 + $0x174] sm:$0xf0]  ;;  %v5549_v63 = vor.u32 %v6415_v37, %v5546_v58  ;;  %v5800_v3 = vld [vmem:[#allocation11 + $0x2e8] sm:$0xf]  ;;  %v6395_v37 = vld [vmem:[#allocation11 + $0x4c] sm:$0xf] }
 0x217   :  { %v5609_v16 = vor.u32 %v6433_v1, %v5608_v0  ;;  %v5801_v18 = vor.u32 %v6481_v10, %v5800_v3  ;;  %v5466_v58 = vld [vmem:[#allocation11 + $0x58] sm:$0xf0]  ;;  %v5720_v0 = vld [vmem:[#allocation11 + $0x248] sm:$0xf] }
 0x218   :  { %v2761_v22 = vmax.f32 %v2642_v12, 0.0  ;;  %v5530_v12 = vld [vmem:[#allocation11 + $0xd8] sm:$0xf0] }
 0x219   :  { %3661 = vmatpush.bf16.msrb.mxu3 %v5497_v5  ;;  %v6482_v5 = vld [vmem:[#allocation11 + $0x304] sm:$0xf]  ;;  %v5450_v3 = vld [vmem:[#allocation11 + $0x38] sm:$0xf0] }
 0x21a   :  { %v6963_v27 = vpack.c.bf16 %v2761_v22, %v2757_v19  ;;  %v5813_v13 = vor.u32 %v6482_v5, %v5810_v11  ;;  %v5533_v19 = vor.u32 %v6411_v6, %v5530_v12  ;;  %v5592_v22 = vld [vmem:[#allocation11 + $0x148] sm:$0xf]  ;;  %v2725_v5 = vpop.f32.mrf.mxu1  ;;  %v6439_v11 = vld [vmem:[#allocation11 + $0x1ac] sm:$0xf]  ;;  %v5642_v10 = vld [vmem:[#allocation11 + $0x1b8] sm:$0xf0]  ;;  %v2724_v12 = vadd.f32 %v2723_v34, %v2710_v44 }
 0x21b   :  { %v6431_v34 = vld [vmem:[#allocation11 + $0x16c] sm:$0xf]  ;;  %v5880_v44 = vld [vmem:[#allocation11 + $0x388] sm:$0xf] }
 0x21c   :  { %3568 = vmatmul.bf16.vlgmr.msrb.gmra.mxu1 %v6963_v27  ;;  %3610 = vmatmul.bf16.vlgmr.msra.gmra.mxu3 %v6959_v45 }
 0x21d   :  { %3662 = vmatpush.bf16.msrb.mxu3 %v5481_v35  ;;  %3672 = vmatpush.bf16.msrb.mxu1 %v5673_v20  ;;  %v2695_v21 = vpop.f32.mrf.mxu0  ;;  %v6429_v35 = vld [vmem:[#allocation11 + $0x154] sm:$0xf0]  ;;  %v5784_v20 = vld [vmem:[#allocation11 + $0x2c8] sm:$0xf] }
 0x21e   :  { %v2696_v40 = vadd.f32 %v2695_v21, %v2682_v53  ;;  %3651 = vmatpush.bf16.msra.mxu0 %v5813_v13  ;;  %v5593_v4 = vor.u32 %v6429_v35, %v5592_v22  ;;  %v5785_v26 = vor.u32 %v6477_v23, %v5784_v20  ;;  %v5768_v21 = vld [vmem:[#allocation11 + $0x2a8] sm:$0xf]  ;;  %v5485_v53 = vor.u32 %v6399_v46, %v5482_v9  ;;  %v6457_v35 = vld [vmem:[#allocation11 + $0x234] sm:$0xf0]  ;;  %v6387_v20 = vld [vmem:[#allocation11 + $0xc] sm:$0xf] }
 0x21f   :  { %v5645_v22 = vor.u32 %v6439_v11, %v5642_v10  ;;  %v5434_v23 = vld [vmem:[#allocation11 + $0x18] sm:$0xf0] }
 0x220   :  { %v2758_v14 = vmax.f32 %v2696_v40, 0.0  ;;  %v2711_v40 = vpop.f32.mrf.mxu3  ;;  %v5437_v25 = vor.u32 %v6387_v20, %v5434_v23  ;;  %v5722_v20 = vld [vmem:[#allocation11 + $0x258] sm:$0xf0] }
 0x221   :  { %3663 = vmatpush.bf16.msrb.mxu3 %v5465_v29  ;;  %3673 = vmatpush.bf16.msrb.mxu1 %v5657_v30  ;;  %v6473_v29 = vld [vmem:[#allocation11 + $0x2b4] sm:$0xf0]  ;;  %v6403_v30 = vld [vmem:[#allocation11 + $0x8c] sm:$0xf]  ;;  %v2712_v6 = vadd.f32 %v2711_v40, %v1887_v51  ;;  %v5578_v40 = vld [vmem:[#allocation11 + $0x138] sm:$0xf0] }
 0x222   :  { %v5769_v36 = vor.u32 %v6473_v29, %v5768_v21  ;;  %v5501_v38 = vor.u32 %v6403_v30, %v5498_v31  ;;  %v5688_v21 = vld [vmem:[#allocation11 + $0x208] sm:$0xf]  ;;  %v6453_v29 = vld [vmem:[#allocation11 + $0x214] sm:$0xf0]  ;;  %v5629_v31 = vor.u32 %v6435_v55, %v5626_v24  ;;  %v6427_v51 = vld [vmem:[#allocation11 + $0x14c] sm:$0xf] }
 0x223   :  { %v5689_v54 = vor.u32 %v6453_v29, %v5688_v21  ;;  %v5832_v24 = vld [vmem:[#allocation11 + $0x328] sm:$0xf]  ;;  %v6485_v29 = vld [vmem:[#allocation11 + $0x314] sm:$0xf0] }
 0x224   :  { %v5816_v21 = vld [vmem:[#allocation11 + $0x308] sm:$0xf] }
 0x225   :  { %3664 = vmatpush.bf16.msrb.mxu3 %v5449_v7  ;;  %3674 = vmatpush.bf16.msrb.mxu1 %v5641_v47  ;;  %v2697_v42 = vpop.f32.mrf.mxu0  ;;  %v2737_v7 = vpop.f32.mrf.mxu2  ;;  %v6447_v47 = vld [vmem:[#allocation11 + $0x1ec] sm:$0xf] }
 0x226   :  { %v2698_v2 = vadd.f32 %v2697_v42, %v2684_v59  ;;  %v5677_v60 = vor.u32 %v6447_v47, %v5674_v48  ;;  %v5658_v59 = vld [vmem:[#allocation11 + $0x1d8] sm:$0xf0]  ;;  %v5912_v48 = vld [vmem:[#allocation11 + $0x3c8] sm:$0xf] }
 0x227   :  { %v5661_v1 = vor.u32 %v6443_v33, %v5658_v59  ;;  %v6505_v33 = vld [vmem:[#allocation11 + $0x3b4] sm:$0xf0]  ;;  %v6423_v59 = vld [vmem:[#allocation11 + $0x12c] sm:$0xf] }
 0x228   :  { %v2762_v15 = vmax.f32 %v2698_v2, 0.0  ;;  %v6461_v2 = vld [vmem:[#allocation11 + $0x254] sm:$0xf0] }
 0x229   :  { %3665 = vmatpush.bf16.msrb.mxu3 %v5433_v62  ;;  %3675 = vmatpush.bf16.msrb.mxu1 %v5625_v61  ;;  %v5737_v62 = vor.u32 %v6465_v57, %v5736_v56  ;;  %v5469_v61 = vor.u32 %v6395_v37, %v5466_v58  ;;  %v5786_v56 = vld [vmem:[#allocation11 + $0x2d8] sm:$0xf0]  ;;  %v5896_v58 = vld [vmem:[#allocation11 + $0x3a8] sm:$0xf] }
 0x22a   :  { %v6967_v17 = vpack.c.bf16 %v2762_v15, %v2758_v14  ;;  %v5721_v14 = vor.u32 %v6461_v2, %v5720_v0  ;;  %v6419_v2 = vld [vmem:[#allocation11 + $0x10c] sm:$0xf] }
 0x22c   :  { %3582 = vmatmul.bf16.vlgmr.msrb.gmra.mxu2 %v6967_v17  ;;  %3624 = vmatmul.bf16.vlgmr.msra.gmra.mxu1 %v6963_v27 }
 0x22d   :  { %3714 = vmatpush.bf16.msra.mxu3 %v5549_v63  ;;  %3676 = vmatpush.bf16.msrb.mxu1 %v5609_v16  ;;  %v6391_v63 = vld [vmem:[#allocation11 + $0x2c] sm:$0xf]  ;;  %v2739_v13 = vpop.f32.mrf.mxu2  ;;  %v5704_v16 = vld [vmem:[#allocation11 + $0x228] sm:$0xf] }
 0x22e   :  { %3666 = vmatmul.bf16.vlgmr.msrb.gmra.mxu3 %v6959_v45  ;;  %3686 = vmatpush.bf16.msrb.mxu2 %v5801_v18  ;;  %v5453_v15 = vor.u32 %v6391_v63, %v5450_v3  ;;  %v2726_v18 = vadd.f32 %v2725_v5, %v2712_v6  ;;  %v5705_v28 = vor.u32 %v6457_v35, %v5704_v16  ;;  %v5562_v63 = vld [vmem:[#allocation11 + $0x118] sm:$0xf0]  ;;  %v6467_v3 = vld [vmem:[#allocation11 + $0x28c] sm:$0xf] }
 0x22f   :  { %v5754_v5 = vld [vmem:[#allocation11 + $0x298] sm:$0xf0]  ;;  %v5565_v10 = vor.u32 %v6419_v2, %v5562_v63  ;;  %v6459_v35 = vld [vmem:[#allocation11 + $0x24c] sm:$0xf] }
 0x230   :  { %v5757_v6 = vor.u32 %v6467_v3, %v5754_v5  ;;  %v5725_v55 = vor.u32 %v6459_v35, %v5722_v20  ;;  %v6515_v2 = vld [vmem:[#allocation13 + $0x8] sm:$0xff]  ;;  %v6526_v3 = vld [vmem:[#allocation13 + $0x60] sm:$0xff] }
 0x231   :  { %3715 = vmatpush.bf16.msra.mxu3 %v5533_v19  ;;  %3677 = vmatpush.bf16.msrb.mxu1 %v5593_v4  ;;  %v2738_v19 = vadd.f32 %v2737_v7, %v2724_v12  ;;  %v2740_v4 = vadd.f32 %v2739_v13, %v2726_v18  ;;  %v5864_v12 = vld [vmem:[#allocation11 + $0x368] sm:$0xf]  ;;  %v6497_v13 = vld [vmem:[#allocation11 + $0x374] sm:$0xf0]  ;;  %v6522_v35 = vld [vmem:[#allocation13 + $0x40] sm:$0xff] }
 0x232   :  { %3687 = vmatpush.bf16.msrb.mxu2 %v5785_v26  ;;  %v5865_v16 = vor.u32 %v6497_v13, %v5864_v12  ;;  %v6527_v63 = vld [vmem:[#allocation13 + $0x68] sm:$0xff]  ;;  %v6524_v13 = vld [vmem:[#allocation13 + $0x50] sm:$0xff]  ;;  %v6534_v20 = vld [vmem:[#allocation13 + $0xa0] sm:$0xff] }
 0x235   :  { %3716 = vmatpush.bf16.msra.mxu3 %v5517_v50  ;;  %3678 = vmatpush.bf16.msrb.mxu1 %v5577_v8  ;;  %v6513_v8 = vld [vmem:[#allocation11 + $0x3f4] sm:$0xf0] }
 0x236   :  { %3688 = vmatpush.bf16.msrb.mxu2 %v5769_v36  ;;  %v5610_v36 = vld [vmem:[#allocation11 + $0x178] sm:$0xf0]  ;;  %v5929_v46 = vor.u32 %v6513_v8, %v5928_v32  ;;  %v6511_v32 = vld [vmem:[#allocation11 + $0x3ec] sm:$0xf] }
 0x237   :  { %v5613_v7 = vor.u32 %v6431_v34, %v5610_v36  ;;  %v5930_v8 = vld [vmem:[#allocation11 + $0x3f8] sm:$0xf0]  ;;  %v5817_v34 = vor.u32 %v6485_v29, %v5816_v21  ;;  %v6532_v21 = vld [vmem:[#allocation13 + $0x90] sm:$0xff] }
 0x238   :  { %v5933_v36 = vor.u32 %v6511_v32, %v5930_v8 }
 0x239   :  { %3717 = vmatpush.bf16.msra.mxu3 %v5501_v38  ;;  %3679 = vmatpush.bf16.msrb.mxu1 %v5561_v49  ;;  %v6479_v38 = vld [vmem:[#allocation11 + $0x2ec] sm:$0xf]  ;;  %v6509_v49 = vld [vmem:[#allocation11 + $0x3d4] sm:$0xf0] }
 0x23a   :  { %3689 = vmatpush.bf16.msrb.mxu2 %v5753_v52  ;;  %v5805_v47 = vor.u32 %v6479_v38, %v5802_v39  ;;  %v5594_v52 = vld [vmem:[#allocation11 + $0x158] sm:$0xf0]  ;;  %v6507_v38 = vld [vmem:[#allocation11 + $0x3cc] sm:$0xf] }
 0x23b   :  { %v5597_v57 = vor.u32 %v6427_v51, %v5594_v52  ;;  %v5914_v39 = vld [vmem:[#allocation11 + $0x3d8] sm:$0xf0] }
 0x23c   :  { %3638 = vmatmul.bf16.vlgmr.msra.gmra.mxu2 %v6967_v17  ;;  %3680 = vmatmul.bf16.vlgmr.msrb.gmra.mxu1 %v6963_v27  ;;  %v5866_v51 = vld [vmem:[#allocation11 + $0x378] sm:$0xf0] }
 0x23d   :  { %v2751_v42 = vpop.f32.mrf.mxu0  ;;  %3718 = vmatpush.bf16.msra.mxu3 %v5485_v53  ;;  %3728 = vmatpush.bf16.msra.mxu1 %v5677_v60  ;;  %v6475_v53 = vld [vmem:[#allocation11 + $0x2cc] sm:$0xf]  ;;  %v5913_v60 = vor.u32 %v6509_v49, %v5912_v48 }
 0x23e   :  { %3690 = vmatpush.bf16.msrb.mxu2 %v5737_v62  ;;  %v2752_v26 = vadd.f32 %v2751_v42, %v2738_v19  ;;  %v5789_v37 = vor.u32 %v6475_v53, %v5786_v56  ;;  %v6471_v42 = vld [vmem:[#allocation11 + $0x2ac] sm:$0xf]  ;;  %v5770_v62 = vld [vmem:[#allocation11 + $0x2b8] sm:$0xf0]  ;;  %v5848_v19 = vld [vmem:[#allocation11 + $0x348] sm:$0xf] }
 0x23f   :  { %v5773_v0 = vor.u32 %v6471_v42, %v5770_v62  ;;  %v6495_v49 = vld [vmem:[#allocation11 + $0x36c] sm:$0xf]  ;;  %v5850_v56 = vld [vmem:[#allocation11 + $0x358] sm:$0xf0]  ;;  %v6520_v42 = vld [vmem:[#allocation13 + $0x30] sm:$0xff] }
 0x240   :  { %v2759_v41 = vmax.f32 %v2752_v26, 0.0  ;;  %v6455_v26 = vld [vmem:[#allocation11 + $0x22c] sm:$0xf]  ;;  %v5869_v52 = vor.u32 %v6495_v49, %v5866_v51  ;;  %v6544_v49 = vld [vmem:[#allocation13 + $0xf0] sm:$0xff] }
 0x241   :  { %3719 = vmatpush.bf16.msra.mxu3 %v5469_v61  ;;  %3729 = vmatpush.bf16.msra.mxu1 %v5661_v1  ;;  %v5897_v61 = vor.u32 %v6505_v33, %v5896_v58  ;;  %v6501_v1 = vld [vmem:[#allocation11 + $0x394] sm:$0xf0]  ;;  %v6491_v53 = vld [vmem:[#allocation11 + $0x34c] sm:$0xf] }
 0x242   :  { %3691 = vmatpush.bf16.msrb.mxu2 %v5721_v14  ;;  %v5881_v11 = vor.u32 %v6501_v1, %v5880_v44  ;;  %v6463_v14 = vld [vmem:[#allocation11 + $0x26c] sm:$0xf]  ;;  %v6516_v44 = vld [vmem:[#allocation13 + $0x10] sm:$0xff] }
 0x243   :  { %v6483_v33 = vld [vmem:[#allocation11 + $0x30c] sm:$0xf]  ;;  %v6528_v1 = vld [vmem:[#allocation13 + $0x70] sm:$0xff] }
 0x244   :  { %v6519_v62 = vld [vmem:[#allocation13 + $0x28] sm:$0xff] }
 0x245   :  { %v2753_v50 = vpop.f32.mrf.mxu0  ;;  %3720 = vmatpush.bf16.msra.mxu3 %v5453_v15  ;;  %3730 = vmatpush.bf16.msra.mxu1 %v5645_v22  ;;  %v5738_v15 = vld [vmem:[#allocation11 + $0x278] sm:$0xf0]  ;;  %v6493_v22 = vld [vmem:[#allocation11 + $0x354] sm:$0xf0] }
 0x246   :  { %v2754_v30 = vadd.f32 %v2753_v50, %v2740_v4  ;;  %3692 = vmatpush.bf16.msrb.mxu2 %v5705_v28  ;;  %v5741_v18 = vor.u32 %v6463_v14, %v5738_v15  ;;  %v5849_v23 = vor.u32 %v6493_v22, %v5848_v19  ;;  %v6489_v4 = vld [vmem:[#allocation11 + $0x334] sm:$0xf0]  ;;  %v5706_v50 = vld [vmem:[#allocation11 + $0x238] sm:$0xf0]  ;;  %v6536_v14 = vld [vmem:[#allocation13 + $0xb0] sm:$0xff] }
 0x247   :  { %v5833_v28 = vor.u32 %v6489_v4, %v5832_v24  ;;  %v6523_v15 = vld [vmem:[#allocation13 + $0x48] sm:$0xff]  ;;  %v6533_v24 = vld [vmem:[#allocation13 + $0x98] sm:$0xff] }
 0x248   :  { %v2763_v43 = vmax.f32 %v2754_v30, 0.0  ;;  %v6451_v30 = vld [vmem:[#allocation11 + $0x20c] sm:$0xf]  ;;  %v6988_v19 = vld [vmem:[%s7006_s6] sm:$0xf] }
 0x249   :  { %3721 = vmatpush.bf16.msra.mxu3 %v5437_v25  ;;  %3731 = vmatpush.bf16.msra.mxu1 %v5629_v31  ;;  %v5709_v25 = vor.u32 %v6455_v26, %v5706_v50  ;;  %v5690_v31 = vld [vmem:[#allocation11 + $0x218] sm:$0xf0] }
 0x24a   :  { %v6975_v9 = vpack.c.bf16 %v2763_v43, %v2759_v41  ;;  %3693 = vmatpush.bf16.msrb.mxu2 %v5689_v54  ;;  %v5917_v41 = vor.u32 %v6507_v38, %v5914_v39  ;;  %v6503_v43 = vld [vmem:[#allocation11 + $0x3ac] sm:$0xf]  ;;  %v5898_v54 = vld [vmem:[#allocation11 + $0x3b8] sm:$0xf0] }
 0x24c   :  { %3596 = vmatmul.bf16.vlgmr.msrb.gmra.mxu0 %v6975_v9  ;;  %3722 = vmatmul.bf16.vlgmr.msra.gmra.mxu3 %v6959_v45  ;;  %v5581_v45 = vor.u32 %v6423_v59, %v5578_v40  ;;  %v6521_v40 = vld [vmem:[#allocation13 + $0x38] sm:$0xff] }
 0x24d   :  { %3700 = vmatpush.bf16.msrb.mxu0 %v5929_v46  ;;  %3732 = vmatpush.bf16.msra.mxu1 %v5613_v7  ;;  %v5901_v46 = vor.u32 %v6503_v43, %v5898_v54  ;;  %v6499_v7 = vld [vmem:[#allocation11 + $0x38c] sm:$0xf]  ;;  %v6530_v43 = vld [vmem:[#allocation13 + $0x80] sm:$0xff]  ;;  %v6545_v54 = vld [vmem:[#allocation13 + $0xf8] sm:$0xff] }
 0x24e   :  { %3742 = vmatpush.bf16.msra.mxu2 %v5805_v47  ;;  %v5882_v47 = vld [vmem:[#allocation11 + $0x398] sm:$0xf0]  ;;  %4042 = vmatpush.bf16.msrb.mxu3 %v6521_v40 }
 0x24f   :  { %3694 = vmatmul.bf16.vlgmr.msrb.gmra.mxu2 %v6967_v17  ;;  %v5885_v48 = vor.u32 %v6499_v7, %v5882_v47  ;;  %v2899_v7 = vperm.slane %v6988_v19, 1 }
 0x251   :  { %3701 = vmatpush.bf16.msrb.mxu0 %v5913_v60  ;;  %3733 = vmatpush.bf16.msra.mxu1 %v5597_v57  ;;  %v5853_v60 = vor.u32 %v6491_v53, %v5850_v56  ;;  %v6487_v57 = vld [vmem:[#allocation11 + $0x32c] sm:$0xf] }
 0x252   :  { %3743 = vmatpush.bf16.msra.mxu2 %v5789_v37  ;;  %v5834_v37 = vld [vmem:[#allocation11 + $0x338] sm:$0xf0]  ;;  %4043 = vmatpush.bf16.msrb.mxu3 %v6520_v42  ;;  %v6543_v56 = vld [vmem:[#allocation13 + $0xe8] sm:$0xff] }
 0x253   :  { %v5837_v58 = vor.u32 %v6487_v57, %v5834_v37 }
 0x255   :  { %3702 = vmatpush.bf16.msrb.mxu0 %v5897_v61  ;;  %3734 = vmatpush.bf16.msra.mxu1 %v5581_v45  ;;  %v6518_v61 = vld [vmem:[#allocation13 + $0x20] sm:$0xff]  ;;  %v6517_v45 = vld [vmem:[#allocation13 + $0x18] sm:$0xff] }
 0x256   :  { %3744 = vmatpush.bf16.msra.mxu2 %v5773_v0  ;;  %4044 = vmatpush.bf16.msrb.mxu3 %v6519_v62  ;;  %v6529_v0 = vld [vmem:[#allocation13 + $0x78] sm:$0xff] }
 0x259   :  { %3703 = vmatpush.bf16.msrb.mxu0 %v5881_v11  ;;  %3735 = vmatpush.bf16.msra.mxu1 %v5565_v10  ;;  %v6525_v11 = vld [vmem:[#allocation13 + $0x58] sm:$0xff] }
 0x25a   :  { %3745 = vmatpush.bf16.msra.mxu2 %v5757_v6  ;;  %4045 = vmatpush.bf16.msrb.mxu3 %v6518_v61  ;;  %v6537_v10 = vld [vmem:[#allocation13 + $0xb8] sm:$0xff] }
 0x25c   :  { %3652 = vmatmul.bf16.vlgmr.msra.gmra.mxu0 %v6975_v9  ;;  %3736 = vmatmul.bf16.vlgmr.msra.gmra.mxu1 %v6963_v27  ;;  %v5693_v27 = vor.u32 %v6451_v30, %v5690_v31 }
 0x25d   :  { %3704 = vmatpush.bf16.msrb.mxu0 %v5865_v16  ;;  %4056 = vmatpush.bf16.msrb.mxu1 %v6529_v0  ;;  %v6535_v16 = vld [vmem:[#allocation13 + $0xa8] sm:$0xff] }
 0x25e   :  { %3746 = vmatpush.bf16.msra.mxu2 %v5741_v18  ;;  %4046 = vmatpush.bf16.msrb.mxu3 %v6517_v45 }
 0x261   :  { %3705 = vmatpush.bf16.msrb.mxu0 %v5849_v23  ;;  %4057 = vmatpush.bf16.msrb.mxu1 %v6528_v1  ;;  %v6541_v1 = vld [vmem:[#allocation13 + $0xd8] sm:$0xff] }
 0x262   :  { %3747 = vmatpush.bf16.msra.mxu2 %v5725_v55  ;;  %4047 = vmatpush.bf16.msrb.mxu3 %v6516_v44  ;;  %v2898_v55 = vperm.slane %v6988_v19, 0 }
 0x265   :  { %3706 = vmatpush.bf16.msrb.mxu0 %v5833_v28  ;;  %4058 = vmatpush.bf16.msrb.mxu1 %v6527_v63 }
 0x266   :  { %3748 = vmatpush.bf16.msra.mxu2 %v5709_v25  ;;  %4048 = vmatpush.bf16.msrb.mxu3 %v6515_v2  ;;  %v2900_v2 = vperm.slane %v6988_v19, 2 }
 0x269   :  { %3707 = vmatpush.bf16.msrb.mxu0 %v5817_v34  ;;  %4059 = vmatpush.bf16.msrb.mxu1 %v6526_v3 }
 0x26a   :  { %3749 = vmatpush.bf16.msra.mxu2 %v5693_v27  ;;  %v6531_v27 = vld [vmem:[#allocation13 + $0x88] sm:$0xff] }
 0x26c   :  { %3708 = vmatmul.bf16.vlgmr.msrb.gmra.mxu0 %v6975_v9 }
 0x26d   :  { %3756 = vmatpush.bf16.msra.mxu0 %v5933_v36  ;;  %3750 = vmatmul.bf16.vlgmr.msra.gmra.mxu2 %v6967_v17  ;;  %v5818_v17 = vld [vmem:[#allocation11 + $0x318] sm:$0xf0] }
 0x26e   :  { %v5821_v59 = vor.u32 %v6483_v33, %v5818_v17  ;;  %4060 = vmatpush.bf16.msrb.mxu1 %v6525_v11  ;;  %4070 = vmatpush.bf16.msrb.mxu2 %v6537_v10  ;;  %v6542_v33 = vld [vmem:[#allocation13 + $0xe0] sm:$0xff] }
 0x271   :  { %3757 = vmatpush.bf16.msra.mxu0 %v5917_v41 }
 0x272   :  { %4061 = vmatpush.bf16.msrb.mxu1 %v6524_v13  ;;  %4071 = vmatpush.bf16.msrb.mxu2 %v6536_v14  ;;  %v6539_v13 = vld [vmem:[#allocation13 + $0xc8] sm:$0xff] }
 0x275   :  { %3758 = vmatpush.bf16.msra.mxu0 %v5901_v46 }
 0x276   :  { %4062 = vmatpush.bf16.msrb.mxu1 %v6523_v15  ;;  %4072 = vmatpush.bf16.msrb.mxu2 %v6535_v16 }
 0x279   :  { %3759 = vmatpush.bf16.msra.mxu0 %v5885_v48 }
 0x27a   :  { %4063 = vmatpush.bf16.msrb.mxu1 %v6522_v35  ;;  %4073 = vmatpush.bf16.msrb.mxu2 %v6534_v20  ;;  %v6538_v35 = vld [vmem:[#allocation13 + $0xc0] sm:$0xff] }
 0x27d   :  { %3760 = vmatpush.bf16.msra.mxu0 %v5869_v52 }
 0x27e   :  { %4074 = vmatpush.bf16.msrb.mxu2 %v6533_v24 }
 0x281   :  { %3761 = vmatpush.bf16.msra.mxu0 %v5853_v60 }
 0x282   :  { %4075 = vmatpush.bf16.msrb.mxu2 %v6532_v21 }
 0x285   :  { %3762 = vmatpush.bf16.msra.mxu0 %v5837_v58 }
 0x286   :  { %4076 = vmatpush.bf16.msrb.mxu2 %v6531_v27 }
 0x289   :  { %3763 = vmatpush.bf16.msra.mxu0 %v5821_v59 }
 0x28a   :  { %4077 = vmatpush.bf16.msrb.mxu2 %v6530_v43 }
 0x28c   :  { %3764 = vmatmul.bf16.vlgmr.msra.gmra.mxu0 %v6975_v9  ;;  %v6514_v9 = vld [vmem:[#allocation13] sm:$0xff] }
 0x28d   :  { %4049 = vmatpush.bf16.msrb.mxu3 %v6514_v9  ;;  %4084 = vmatpush.bf16.msrb.mxu0 %v6545_v54  ;;  %v6540_v9 = vld [vmem:[#allocation13 + $0xd0] sm:$0xff] }
 0x28f   :  { %v3555_v5 = vpop.f32.mrf.mxu3 }
 0x290   :  { %v3556_v26 = vadd.f32 %v3555_v5, %v2898_v55 }
 0x291   :  { %4085 = vmatpush.bf16.msrb.mxu0 %v6544_v49 }
 0x295   :  { %4086 = vmatpush.bf16.msrb.mxu0 %v6543_v56 }
 0x297   :  { %v3557_v18 = vpop.f32.mrf.mxu3 }
 0x298   :  { %v3558_v28 = vadd.f32 %v3557_v18, %v2898_v55 }
 0x299   :  { %v3569_v6 = vpop.f32.mrf.mxu1  ;;  %4087 = vmatpush.bf16.msrb.mxu0 %v6542_v33 }
 0x29a   :  { %v3570_v25 = vadd.f32 %v3569_v6, %v3556_v26 }
 0x29d   :  { %4088 = vmatpush.bf16.msrb.mxu0 %v6541_v1 }
 0x29f   :  { %v3611_v50 = vpop.f32.mrf.mxu3 }
 0x2a0   :  { %v3612_v53 = vadd.f32 %v3611_v50, %v2899_v7 }
 0x2a1   :  { %v3571_v22 = vpop.f32.mrf.mxu1  ;;  %4089 = vmatpush.bf16.msrb.mxu0 %v6540_v9 }
 0x2a2   :  { %v3572_v30 = vadd.f32 %v3571_v22, %v3558_v28 }
 0x2a5   :  { %4090 = vmatpush.bf16.msrb.mxu0 %v6539_v13 }
 0x2a7   :  { %v3613_v46 = vpop.f32.mrf.mxu3 }
 0x2a8   :  { %v3614_v60 = vadd.f32 %v3613_v46, %v2899_v7 }
 0x2a9   :  { %v3625_v29 = vpop.f32.mrf.mxu1  ;;  %4091 = vmatpush.bf16.msrb.mxu0 %v6538_v35 }
 0x2aa   :  { %v3626_v57 = vadd.f32 %v3625_v29, %v3612_v53 }
 0x2af   :  { %v3583_v12 = vpop.f32.mrf.mxu2 }
 0x2b0   :  { %v3584_v31 = vadd.f32 %v3583_v12, %v3570_v25  ;;  %v2901_v25 = vperm.slane %v6988_v19, 3  ;;  %v6562_v19 = vld [vmem:[%s7008_s8] ss:$0 sm:$0xff]  ;;  %s6779_s8 = smov 128  }
 0x2b1   :  { %v3627_v48 = vpop.f32.mrf.mxu1  ;;  %v3667_v17 = vpop.f32.mrf.mxu3 }
 0x2b2   :  { %v3628_v37 = vadd.f32 %v3627_v48, %v3614_v60  ;;  %v3668_v11 = vadd.f32 %v3667_v17, %v2900_v2 }
 0x2b7   :  { %v3585_v23 = vpop.f32.mrf.mxu2 }
 0x2b8   :  { %v3586_v8 = vadd.f32 %v3585_v23, %v3572_v30 }
 0x2b9   :  { %v3681_v42 = vpop.f32.mrf.mxu1  ;;  %v3669_v3 = vpop.f32.mrf.mxu3 }
 0x2ba   :  { %v3670_v6 = vadd.f32 %v3669_v3, %v2900_v2  ;;  %v3682_v12 = vadd.f32 %v3681_v42, %v3668_v11 }
 0x2bf   :  { %v3639_v32 = vpop.f32.mrf.mxu2 }
 0x2c0   :  { %v3640_v58 = vadd.f32 %v3639_v32, %v3626_v57 }
 0x2c1   :  { %v3683_v10 = vpop.f32.mrf.mxu1 }
 0x2c2   :  { %v3684_v15 = vadd.f32 %v3683_v10, %v3670_v6 }
 0x2c7   :  { %v3641_v51 = vpop.f32.mrf.mxu2 }
 0x2c8   :  { %v3642_v59 = vadd.f32 %v3641_v51, %v3628_v37 }
 0x2c9   :  { %v3597_v4 = vpop.f32.mrf.mxu0 }
 0x2ca   :  { %v3598_v34 = vadd.f32 %v3597_v4, %v3584_v31 }
 0x2cc   :  { %v3770_v39 = vmax.f32 %v3598_v34, 0.0 }
 0x2cf   :  { %v3723_v26 = vpop.f32.mrf.mxu3 }
 0x2d0   :  { %v3724_v30 = vadd.f32 %v3723_v26, %v2901_v25 }
 0x2d1   :  { %v3599_v36 = vpop.f32.mrf.mxu0 }
 0x2d2   :  { %v3600_v38 = vadd.f32 %v3599_v36, %v3586_v8  ;;  %v3695_v45 = vpop.f32.mrf.mxu2 }
 0x2d3   :  { %v3696_v16 = vadd.f32 %v3695_v45, %v3682_v12 }
 0x2d4   :  { %v3774_v41 = vmax.f32 %v3600_v38, 0.0 }
 0x2d6   :  { %v3778_v47 = vpack.c.bf16 %v3774_v41, %v3770_v39 }
 0x2d7   :  { %v3725_v21 = vpop.f32.mrf.mxu3 }
 0x2d8   :  { %4050 = vmatmul.bf16.vlgmr.msrb.gmra.mxu3 %v3778_v47  ;;  %v3726_v32 = vadd.f32 %v3725_v21, %v2901_v25 }
 0x2d9   :  { %v3653_v52 = vpop.f32.mrf.mxu0  ;;  %v3737_v50 = vpop.f32.mrf.mxu1 }
 0x2da   :  { %v3654_v40 = vadd.f32 %v3653_v52, %v3640_v58  ;;  %v3697_v14 = vpop.f32.mrf.mxu2  ;;  %v3738_v8 = vadd.f32 %v3737_v50, %v3724_v30 }
 0x2db   :  { %v3698_v18 = vadd.f32 %v3697_v14, %v3684_v15 }
 0x2dc   :  { %v3771_v0 = vmax.f32 %v3654_v40, 0.0 }
 0x2e1   :  { %v3655_v62 = vpop.f32.mrf.mxu0  ;;  %v3739_v31 = vpop.f32.mrf.mxu1 }
 0x2e2   :  { %v3656_v61 = vadd.f32 %v3655_v62, %v3642_v59  ;;  %v3740_v27 = vadd.f32 %v3739_v31, %v3726_v32 }
 0x2e4   :  { %v3775_v44 = vmax.f32 %v3656_v61, 0.0 }
 0x2e6   :  { %v3779_v63 = vpack.c.bf16 %v3775_v44, %v3771_v0 }
 0x2e8   :  { %4064 = vmatmul.bf16.vlgmr.msrb.gmra.mxu1 %v3779_v63 }
 0x2e9   :  { %v3709_v5 = vpop.f32.mrf.mxu0 }
 0x2ea   :  { %v3710_v22 = vadd.f32 %v3709_v5, %v3696_v16 }
 0x2ec   :  { %v3772_v55 = vmax.f32 %v3710_v22, 0.0 }
 0x2f0   :  { %v3751_v28 = vpop.f32.mrf.mxu2 }
 0x2f1   :  { %v3711_v20 = vpop.f32.mrf.mxu0  ;;  %v3752_v36 = vadd.f32 %v3751_v28, %v3738_v8 }
 0x2f2   :  { %v3712_v23 = vadd.f32 %v3711_v20, %v3698_v18 }
 0x2f4   :  { %v3776_v24 = vmax.f32 %v3712_v23, 0.0 }
 0x2f6   :  { %v3780_v4 = vpack.c.bf16 %v3776_v24, %v3772_v55 }
 0x2f8   :  { %4078 = vmatmul.bf16.vlgmr.msrb.gmra.mxu2 %v3780_v4  ;;  %v3753_v34 = vpop.f32.mrf.mxu2 }
 0x2f9   :  { %v3754_v38 = vadd.f32 %v3753_v34, %v3740_v27 }
 0x309   :  { %v3765_v29 = vpop.f32.mrf.mxu0 }
 0x30a   :  { %v3766_v39 = vadd.f32 %v3765_v29, %v3752_v36 }
 0x30c   :  { %v3773_v54 = vmax.f32 %v3766_v39, 0.0 }
 0x311   :  { %v3767_v41 = vpop.f32.mrf.mxu0 }
 0x312   :  { %v3768_v43 = vadd.f32 %v3767_v41, %v3754_v38 }
 0x314   :  { %v3777_v46 = vmax.f32 %v3768_v43, 0.0 }
 0x316   :  { %v3781_v7 = vpack.c.bf16 %v3777_v46, %v3773_v54 }
 0x318   :  { %4092 = vmatmul.bf16.vlgmr.msrb.gmra.mxu0 %v3781_v7 }
 0x35b   :  { %v4051_v47 = vpop.f32.mrf.mxu3 }
 0x35c   :  { %v4052_v51 = vadd.f32 %v6562_v19, %v4051_v47 }
 0x363   :  { %v4053_v56 = vpop.f32.mrf.mxu3 }
 0x364   :  { %v4054_v58 = vadd.f32 %v6562_v19, %v4053_v56 }
 0x365   :  { %v4065_v48 = vpop.f32.mrf.mxu1 }
 0x366   :  { %v4066_v52 = vadd.f32 %v4065_v48, %v4052_v51 }
 0x36d   :  { %v4067_v37 = vpop.f32.mrf.mxu1 }
 0x36e   :  { %v4068_v17 = vadd.f32 %v4067_v37, %v4054_v58 }
 0x37b   :  { %v4079_v49 = vpop.f32.mrf.mxu2 }
 0x37c   :  { %v4080_v53 = vadd.f32 %v4079_v49, %v4066_v52 }
 0x383   :  { %v4081_v33 = vpop.f32.mrf.mxu2 }
 0x384   :  { %v4082_v59 = vadd.f32 %v4081_v33, %v4068_v17 }
 0x395   :  { %v4093_v60 = vpop.f32.mrf.mxu0 }
 0x396   :  { %v4094_v57 = vadd.f32 %v4093_v60, %v4080_v53 }
 0x398   :  { %4098 = vst [vmem:[#allocation14] sm:$0xff] %v4094_v57 }
 0x39d   :  { %v4095_v40 = vpop.f32.mrf.mxu0 }
 0x39e   :  { %v4096_v42 = vadd.f32 %v4095_v40, %v4082_v59 }
 0x3a0   :  { %4099 = vst [vmem:[#allocation14 + $0x8] sm:$0xff] %v4096_v42 }
 0x3a1   :  { %4112 = dma.vmem_to_hbm [thread:$0]  %s4105_s25, 256, %s4107_s3, [#allocation4], %s6779_s8, %s6779_s8, %s6780_s28  }
 0x3a2   :  { %6763 = dma.done.wait [#allocation4], 256  }
 0x3a3   :  { %6764 = vsyncadd [#allocation4], 4294967040 }
 0x3a4   :  { %4117 = vsyncpa [#allocation3], 1 }
 0x3a5   :  { %4118 = vsyncpa [#allocation6], 1 }
 0x3a6   :  { %4119 = vsyncpa [#allocation9], 1 }
 0x3a7   :  { %4120 = vsyncpa [#allocation12], 1 }
 0x3a8   :  { %4121 = vsyncpa [#allocation4], 1 }

</bundles_post_ra>
